<compile_context>
chip_gen: v7x
topology: tpu7x:2x2x1
jax: 0.10.0
libtpu: 0.0.40
codegen_flags: <defaults>
</compile_context>

<pallas_src>
import functools
import numpy as np

import jax
import jax.numpy as jnp
from jax import lax
from jax.experimental import pallas as pl
from jax.experimental.pallas import tpu as pltpu

LANE = 128


def _round_up(v, m):
    return ((v + m - 1) // m) * m


# ----------------------------------------------------------------------------
# Pallas kernel.  grid = (T, 2): repetition x traversal order.  The per-node
# loop runs inside the kernel with a manually double-buffered DMA of the
# (Bp, Np) adjacency slab.  out_ref is the resident hx accumulator (its block
# index never changes, so it is written back to HBM exactly once).
# ----------------------------------------------------------------------------
def gated_gnn_kernel(x_hbm, a_hbm, off_row_ref, nn_row_ref, off_col_ref,
                     nn_col_ref, lidx_ref, w1_ref, b1_ref, w2_ref, b2_ref,
                     wih_ref, bih_ref, whh_ref, bhh_ref,
                     out_ref, a_buf, sems, *, L, Cp):
    t = pl.program_id(0)          # traversal repetition
    o = pl.program_id(1)          # 0 = forward (torch order=1), 1 = backward

    Np = out_ref.shape[0]
    Bp = nn_col_ref.shape[0]

    def node_of(i):               # local node index visited at loop step i
        return jnp.where(o == 0, i, L - 1 - i)

    def fetch(i, slot):           # stream A[order, node] (Bp, Np) into VMEM
        pltpu.make_async_copy(a_hbm.at[o * L + node_of(i)], a_buf.at[slot],
                              sems.at[slot]).start()

    fetch(0, 0)                   # prime the adjacency pipeline

    # hx <- x exactly once, at the very first step of the whole traversal
    @pl.when((t == 0) & (o == 0))
    def _init():
        cp = pltpu.make_async_copy(x_hbm, out_ref, sems.at[2])
        cp.start()
        cp.wait()

    @pl.loop(0, L)
    def _step(i):
        slot = i % 2
        pltpu.make_async_copy(a_hbm.at[0], a_buf.at[slot], sems.at[slot]).wait()

        @pl.when(i + 1 < L)
        def _prefetch():
            fetch(i + 1, 1 - slot)

        le = node_of(i)
        hx = out_ref[...]                                   # (Np, Cp) f32 state
        hx_b = hx.astype(jnp.bfloat16)

        # ---- message MLP (Linear->ReLU->Linear->ReLU) on the current hx -----
        h1 = jnp.maximum(
            jnp.dot(hx_b, w1_ref[...], preferred_element_type=jnp.float32)
            + b1_ref[...], 0.0)
        msg = jnp.maximum(
            jnp.dot(h1.astype(jnp.bfloat16), w2_ref[...],
                    preferred_element_type=jnp.float32) + b2_ref[...], 0.0)

        # ---- per-graph aggregation: m[b] = sum_src A[b, src] * msg[src] -----
        m = jnp.dot(a_buf[slot], msg.astype(jnp.bfloat16),
                    preferred_element_type=jnp.float32)     # (Bp, Cp)

        # ---- gather hx of the (<=1 per graph) node updated at this step -----
        tgt_c = off_col_ref[...] + le                       # (Bp, 1)
        valid_c = le < nn_col_ref[...]                      # (Bp, 1) bool
        ut = jnp.where(
            valid_c
            & (lax.broadcasted_iota(jnp.int32, (Bp, Np), 1) == tgt_c),
            1.0, 0.0).astype(jnp.bfloat16)                  # U[l]^T, (Bp, Np)
        hx_sel = jnp.dot(ut, hx_b,
                         preferred_element_type=jnp.float32)  # (Bp, Cp)

        # ---- GRUCell on the selected rows (PyTorch gate order r, z, n) ------
        gi = jnp.dot(m, wih_ref[...],
                     preferred_element_type=jnp.float32) + bih_ref[...]
        gh = jnp.dot(hx_sel, whh_ref[...],
                     preferred_element_type=jnp.float32) + bhh_ref[...]
        r = jax.nn.sigmoid(gi[:, :Cp] + gh[:, :Cp])
        z = jax.nn.sigmoid(gi[:, Cp:2 * Cp] + gh[:, Cp:2 * Cp])
        n = jnp.tanh(gi[:, 2 * Cp:] + r * gh[:, 2 * Cp:])
        h_new = (1.0 - z) * n + z * hx_sel                  # (Bp, Cp)

        # ---- scatter back onto the node rows with local index == le ---------
        tgt_r = off_row_ref[...] + le                       # (1, Bp)
        valid_r = le < nn_row_ref[...]                      # (1, Bp)
        u = jnp.where(
            valid_r
            & (lax.broadcasted_iota(jnp.int32, (Np, Bp), 0) == tgt_r),
            1.0, 0.0).astype(jnp.bfloat16)                  # U[l], (Np, Bp)
        h_full = jnp.dot(u, h_new.astype(jnp.bfloat16),
                         preferred_element_type=jnp.float32)  # (Np, Cp)
        upd = lidx_ref[...] == le                           # (Np, 1) bool
        out_ref[...] = jnp.where(upd, h_full, hx)


# ----------------------------------------------------------------------------
# Host-side glue: densify the edge list into per-(order, node) 1-hop adjacency
# slabs (replaces torch.nonzero + gather + scatter_add_) and build the small
# per-graph / per-node scalar tables used for the in-kernel selectors.
# ----------------------------------------------------------------------------
def build_structure(edges, node_graph_ind):
    edges = np.asarray(edges)
    ngi = np.asarray(node_graph_ind)
    N = int(ngi.shape[0])
    n_nodes = np.bincount(ngi)
    B = int(len(n_nodes))
    assert int(n_nodes.sum()) == N
    offsets = np.concatenate([[0], np.cumsum(n_nodes)[:-1]]).astype(np.int64)
    L = int(edges[:, 1].max()) + 1                 # torch: all_nodes = arange(L)
    node_local = np.concatenate([np.arange(int(n)) for n in n_nodes])

    Bp = LANE                                      # graph axis -> one lane tile
    Np = max(LANE, _round_up(N, LANE))             # node axis lane-dense
    assert B <= Bp, f"B={B} graphs > {Bp}: tile the graph axis (not implemented)"

    # A[0*L + l][g][src_global]: #1-hop edges of graph g entering local node l
    # A[1*L + l][g][dst_global]: #1-hop edges of graph g leaving  local node l
    a = np.zeros((2 * L, Bp, Np), np.float32)
    indeg = np.zeros((2 * L, B), np.int64)
    for src, dst, dist, g in edges:
        if int(dist) != 1:
            continue
        off = int(offsets[int(g)])
        a[int(dst), int(g), int(src) + off] += 1.0
        indeg[int(dst), int(g)] += 1
        # backward pass only visits node indices < L, so edges with src >= L
        # are never aggregated by the torch loop either -> dropping is exact.
        if int(src) < L:
            a[L + int(src), int(g), int(dst) + off] += 1.0
            indeg[L + int(src), int(g)] += 1
    # edge multiplicities are stored in bf16: exact only for integers <= 256
    assert indeg.max() <= 256, "per-(graph, node) 1-hop fan-in too large for bf16"

    off_vec = np.zeros((Bp,), np.int32)
    off_vec[:B] = offsets
    nn_vec = np.zeros((Bp,), np.int32)
    nn_vec[:B] = n_nodes
    lidx = np.full((Np, 1), -1, np.int32)          # padded rows never match
    lidx[:N, 0] = node_local
    return a, off_vec, nn_vec, lidx, L, Np, Bp


def gated_gnn_forward(x, edges, node_graph_ind, params, T=1):
    """Pallas GatedGNN forward. edges / node_graph_ind are concrete host ints."""
    a, off_vec, nn_vec, lidx, L, Np, Bp = build_structure(edges, node_graph_ind)
    x = np.asarray(x, np.float32)
    N, C = x.shape
    Cp = max(LANE, _round_up(C, LANE))

    # Zero padding is exact: padded weight rows/cols and biases are zero, so
    # padded feature columns stay exactly 0 (r=z=0.5, n=0 -> h_new_pad=0), and
    # padded node rows / graph columns never match the in-kernel selectors.
    xp = np.zeros((Np, Cp), np.float32)
    xp[:N, :C] = x

    def padw(w):                                    # (C, C) -> (Cp, Cp)
        o = np.zeros((Cp, Cp), np.float32)
        o[:C, :C] = np.asarray(w)
        return o

    def padb(b):                                    # (1, C) -> (1, Cp)
        o = np.zeros((1, Cp), np.float32)
        o[:, :C] = np.asarray(b)
        return o

    w1, b1 = padw(params['w1']), padb(params['b1'])
    w2, b2 = padw(params['w2']), padb(params['b2'])
    # fuse the 3 GRU gates (r, z, n): (3,C,C) -> (Cp, 3Cp), (3,1,C) -> (1, 3Cp)
    wih = np.concatenate([padw(params['wih'][g]) for g in range(3)], axis=1)
    whh = np.concatenate([padw(params['whh'][g]) for g in range(3)], axis=1)
    bih = np.concatenate([padb(params['bih'][g]) for g in range(3)], axis=1)
    bhh = np.concatenate([padb(params['bhh'][g]) for g in range(3)], axis=1)

    grid = (T, 2)                                   # repetition x traversal order

    def vspec(shape):                               # full array, VMEM-resident
        return pl.BlockSpec(shape, lambda t, o: (0,) * len(shape))

    anyspec = pl.BlockSpec(memory_space=pl.ANY)     # raw HBM ref, manual DMA

    est = (10 * Np * Cp * 4                         # hx block + f32 temporaries
           + 3 * (2 * Bp * Np * 2)                  # A double buffer + one-hots
           + 4 * (Cp * Cp * 2)                      # MLP weights (x2 buffers)
           + 4 * (Cp * 3 * Cp * 4)                  # GRU weights (x2 buffers)
           + 8 * 1024 * 1024)                       # headroom
    vmem_limit = int(min(64 * 1024 * 1024, max(32 * 1024 * 1024, est)))

    out = pl.pallas_call(
        functools.partial(gated_gnn_kernel, L=L, Cp=Cp),
        out_shape=jax.ShapeDtypeStruct((Np, Cp), jnp.float32),
        grid=grid,
        in_specs=[
            anyspec,                                # x (HBM, copied once into hx)
            anyspec,                                # A (HBM, streamed per step)
            vspec((1, Bp)), vspec((1, Bp)),         # graph offsets / sizes (rows)
            vspec((Bp, 1)), vspec((Bp, 1)),         # graph offsets / sizes (cols)
            vspec((Np, 1)),                         # per-node local index
            vspec((Cp, Cp)), vspec((1, Cp)),        # MLP layer 1
            vspec((Cp, Cp)), vspec((1, Cp)),        # MLP layer 2
            vspec((Cp, 3 * Cp)), vspec((1, 3 * Cp)),  # GRU W_ih, b_ih (fused)
            vspec((Cp, 3 * Cp)), vspec((1, 3 * Cp)),  # GRU W_hh, b_hh (fused)
        ],
        out_specs=vspec((Np, Cp)),                  # resident hx accumulator
        scratch_shapes=[
            pltpu.VMEM((2, Bp, Np), jnp.bfloat16),  # A double buffer
            pltpu.SemaphoreType.DMA((3,)),          # [slot0, slot1, x-init]
        ],
        compiler_params=pltpu.CompilerParams(
            dimension_semantics=("arbitrary", "arbitrary"),
            vmem_limit_bytes=vmem_limit),
    )(jnp.asarray(xp),
      jnp.asarray(a, jnp.bfloat16),
      jnp.asarray(off_vec.reshape(1, Bp)), jnp.asarray(nn_vec.reshape(1, Bp)),
      jnp.asarray(off_vec.reshape(Bp, 1)), jnp.asarray(nn_vec.reshape(Bp, 1)),
      jnp.asarray(lidx),
      jnp.asarray(w1, jnp.bfloat16), jnp.asarray(b1),
      jnp.asarray(w2, jnp.bfloat16), jnp.asarray(b2),
      jnp.asarray(wih), jnp.asarray(bih),
      jnp.asarray(whh), jnp.asarray(bhh))
    return out[:N, :C]


# ----------------------------------------------------------------------------
# Deterministic synthetic parameters (shapes from GatedGNN.__init__, ve=False).
# ----------------------------------------------------------------------------
def init_params(key, C):
    bound = 1.0 / np.sqrt(C)
    ks = jax.random.split(key, 8)

    def u(k, shape):
        return jax.random.uniform(k, shape, jnp.float32, -bound, bound)

    return dict(
        w1=u(ks[0], (C, C)),     b1=u(ks[1], (1, C)),        # MLP layer 1
        w2=u(ks[2], (C, C)),     b2=u(ks[3], (1, C)),        # MLP layer 2
        wih=u(ks[4], (3, C, C)), bih=u(ks[5], (3, 1, C)),    # GRU input (r,z,n)
        whh=u(ks[6], (3, C, C)), bhh=u(ks[7], (3, 1, C)),    # GRU hidden (r,z,n)
    )


# ----------------------------------------------------------------------------
# NumPy reference that mirrors the PyTorch forward loop exactly.
# ----------------------------------------------------------------------------
def _sigmoid(v):
    return 1.0 / (1.0 + np.exp(-v))


def reference_forward(x, edges, node_graph_ind, p, T=1):
    hx = np.array(x, np.float64)
    edges = np.asarray(edges)
    ngi = np.asarray(node_graph_ind)
    n_nodes = np.bincount(ngi)
    B, C = len(n_nodes), hx.shape[1]
    dist, eg = edges[:, 2], edges[:, 3]
    is_1hop = dist == 1
    offsets = np.concatenate([[0], np.cumsum(n_nodes)[:-1]])
    edge_offset = offsets[eg]
    node_inds = np.concatenate([np.arange(int(n)) for n in n_nodes])
    L = int(edges[:, 1].max()) + 1

    w1, b1 = np.asarray(p['w1'], np.float64), np.asarray(p['b1'], np.float64)[0]
    w2, b2 = np.asarray(p['w2'], np.float64), np.asarray(p['b2'], np.float64)[0]
    wih, bih = np.asarray(p['wih'], np.float64), np.asarray(p['bih'], np.float64)[:, 0]
    whh, bhh = np.asarray(p['whh'], np.float64), np.asarray(p['bhh'], np.float64)[:, 0]

    def mlp(h):
        h = np.maximum(h @ w1 + b1, 0.0)
        return np.maximum(h @ w2 + b2, 0.0)

    def gru(m, h):
        r = _sigmoid(m @ wih[0] + bih[0] + h @ whh[0] + bhh[0])
        z = _sigmoid(m @ wih[1] + bih[1] + h @ whh[1] + bhh[1])
        n = np.tanh(m @ wih[2] + bih[2] + r * (h @ whh[2] + bhh[2]))
        return (1.0 - z) * n + z * h

    for _ in range(T):
        for order in (1, 0):
            start = edges[:, 1 - order] + edge_offset
            node_seq = range(L) if order else range(L - 1, -1, -1)
            for node in node_seq:
                e_1hop = np.nonzero((edges[:, order] == node) & is_1hop)[0]
                m_e = mlp(hx[start[e_1hop]])
                m = np.zeros((B, C), np.float64)
                np.add.at(m, eg[e_1hop], m_e)
                ind = np.nonzero(node_inds == node)[0]
                if len(ind) == 0:
                    continue
                m_sel = m[ngi[ind]] if B > 1 else m
                hx[ind] = gru(m_sel, hx[ind])
    return hx.astype(np.float32)


# ----------------------------------------------------------------------------
if __name__ == "__main__":
    C = 32                      # in_features (default of GatedGNN)
    T = 1                       # traversal repetitions (default)
    B = 2                       # graphs in the batch
    n_nodes = [4, 4]
    N = sum(n_nodes)

    node_graph_ind = np.array([0] * 4 + [1] * 4, np.int32)
    # edges: [src_local, dst_local, shortest_path_dist, graph_id]
    edges = np.array([
        [0, 1, 1, 0],
        [1, 2, 1, 0],
        [2, 3, 1, 0],
        [0, 2, 2, 0],
        [0, 3, 3, 0],
        [0, 1, 1, 1],
        [0, 2, 1, 1],
        [1, 3, 1, 1],
        [2, 3, 1, 1],
        [0, 3, 2, 1],
    ], np.int32)

    key = jax.random.PRNGKey(0)
    kx, kp = jax.random.split(key)
    x = np.asarray(jax.random.normal(kx, (N, C), jnp.float32))
    params = init_params(kp, C)

    out = gated_gnn_forward(x, edges, node_graph_ind, params, T=T)
    out = jax.block_until_ready(out)

    ref = reference_forward(x, edges, node_graph_ind, params, T=T)
    # bf16 matmul operands (f32 accumulation) -> loosened tolerance
    np.testing.assert_allclose(np.asarray(out), ref, atol=1e-1, rtol=1e-1)
    print("KERNEL_OK")
</pallas_src>

<mosaic_0001>
module attributes {stable_mosaic.version = 11 : i64} {
  func.func @gated_gnn_kernel(%arg0: i32, %arg1: i32, %arg2: memref<128x128xf32, #tpu.memory_space<any>>, %arg3: memref<8x128x128xbf16, #tpu.memory_space<any>>, %arg4: memref<1x128xi32, #tpu.memory_space<vmem>>, %arg5: memref<1x128xi32, #tpu.memory_space<vmem>>, %arg6: memref<128x1xi32, #tpu.memory_space<vmem>>, %arg7: memref<128x1xi32, #tpu.memory_space<vmem>>, %arg8: memref<128x1xi32, #tpu.memory_space<vmem>>, %arg9: memref<128x128xbf16, #tpu.memory_space<vmem>>, %arg10: memref<1x128xf32, #tpu.memory_space<vmem>>, %arg11: memref<128x128xbf16, #tpu.memory_space<vmem>>, %arg12: memref<1x128xf32, #tpu.memory_space<vmem>>, %arg13: memref<128x384xf32, #tpu.memory_space<vmem>>, %arg14: memref<1x384xf32, #tpu.memory_space<vmem>>, %arg15: memref<128x384xf32, #tpu.memory_space<vmem>>, %arg16: memref<1x384xf32, #tpu.memory_space<vmem>>, %arg17: memref<128x128xf32, #tpu.memory_space<vmem>>, %arg18: memref<2x128x128xbf16, #tpu.memory_space<vmem>>, %arg19: memref<3x!tpu.dma_semaphore, #tpu.memory_space<semaphore_mem>>) attributes {dimension_semantics = [#tpu.dimension_semantics<arbitrary>, #tpu.dimension_semantics<arbitrary>], iteration_bounds = array<i64: 1, 2>, scalar_prefetch = 0 : i64, scratch_operands = 2 : i64, tpu.core_type = #tpu.core_type<tc>, window_params = [{}, {}, {pipeline_mode = #tpu.pipeline_mode<synchronous>, transform_indices = @transform_2, window_bounds = array<i64: 1, 128>}, {pipeline_mode = #tpu.pipeline_mode<synchronous>, transform_indices = @transform_3, window_bounds = array<i64: 1, 128>}, {pipeline_mode = #tpu.pipeline_mode<synchronous>, transform_indices = @transform_4, window_bounds = array<i64: 128, 1>}, {pipeline_mode = #tpu.pipeline_mode<synchronous>, transform_indices = @transform_5, window_bounds = array<i64: 128, 1>}, {pipeline_mode = #tpu.pipeline_mode<synchronous>, transform_indices = @transform_6, window_bounds = array<i64: 128, 1>}, {pipeline_mode = #tpu.pipeline_mode<synchronous>, transform_indices = @transform_7, window_bounds = array<i64: 128, 128>}, {pipeline_mode = #tpu.pipeline_mode<synchronous>, transform_indices = @transform_8, window_bounds = array<i64: 1, 128>}, {pipeline_mode = #tpu.pipeline_mode<synchronous>, transform_indices = @transform_9, window_bounds = array<i64: 128, 128>}, {pipeline_mode = #tpu.pipeline_mode<synchronous>, transform_indices = @transform_10, window_bounds = array<i64: 1, 128>}, {pipeline_mode = #tpu.pipeline_mode<synchronous>, transform_indices = @transform_11, window_bounds = array<i64: 128, 384>}, {pipeline_mode = #tpu.pipeline_mode<synchronous>, transform_indices = @transform_12, window_bounds = array<i64: 1, 384>}, {pipeline_mode = #tpu.pipeline_mode<synchronous>, transform_indices = @transform_13, window_bounds = array<i64: 128, 384>}, {pipeline_mode = #tpu.pipeline_mode<synchronous>, transform_indices = @transform_14, window_bounds = array<i64: 1, 384>}, {pipeline_mode = #tpu.pipeline_mode<synchronous>, transform_indices = @transform_15, window_bounds = array<i64: 128, 128>}]} {
    %c4_i32 = arith.constant 4 : i32
    %0 = arith.muli %arg1, %c4_i32 : i32
    %c0_i32 = arith.constant 0 : i32
    %1 = arith.cmpi eq, %arg1, %c0_i32 : i32
    %c0_i32_0 = arith.constant 0 : i32
    %c3_i32 = arith.constant 3 : i32
    %2 = arith.select %1, %c0_i32_0, %c3_i32 : i32
    %3 = arith.addi %0, %2 : i32
    %c0_i32_1 = arith.constant 0 : i32
    %c0_i32_2 = arith.constant 0 : i32
    %c0_i32_3 = arith.constant 0 : i32
    %c0_i32_4 = arith.constant 0 : i32
    %4 = tpu.memref_slice %arg3[%3, %c0_i32_3, %c0_i32_4] : memref<8x128x128xbf16, #tpu.memory_space<any>> -> memref<1x128x128xbf16, #tpu.memory_space<any>>
    %5 = tpu.memref_squeeze %4 : memref<1x128x128xbf16, #tpu.memory_space<any>> -> memref<128x128xbf16, #tpu.memory_space<any>>
    %c0_i32_5 = arith.constant 0 : i32
    %c0_i32_6 = arith.constant 0 : i32
    %6 = tpu.memref_slice %arg18[%c0_i32_1, %c0_i32_5, %c0_i32_6] : memref<2x128x128xbf16, #tpu.memory_space<vmem>> -> memref<1x128x128xbf16, #tpu.memory_space<vmem>>
    %7 = tpu.memref_squeeze %6 : memref<1x128x128xbf16, #tpu.memory_space<vmem>> -> memref<128x128xbf16, #tpu.memory_space<vmem>>
    %8 = tpu.memref_slice %arg19[%c0_i32_2] : memref<3x!tpu.dma_semaphore, #tpu.memory_space<semaphore_mem>> -> memref<1x!tpu.dma_semaphore, #tpu.memory_space<semaphore_mem>>
    %9 = tpu.memref_squeeze %8 : memref<1x!tpu.dma_semaphore, #tpu.memory_space<semaphore_mem>> -> memref<!tpu.dma_semaphore, #tpu.memory_space<semaphore_mem>>
    tpu.enqueue_dma source(%5 : memref<128x128xbf16, #tpu.memory_space<any>>) target(%7 : memref<128x128xbf16, #tpu.memory_space<vmem>>) target_semaphore(%9 : memref<!tpu.dma_semaphore, #tpu.memory_space<semaphore_mem>>)
    %c0_i32_7 = arith.constant 0 : i32
    %10 = arith.cmpi eq, %arg0, %c0_i32_7 : i32
    %c0_i32_8 = arith.constant 0 : i32
    %11 = arith.cmpi eq, %arg1, %c0_i32_8 : i32
    %12 = arith.andi %10, %11 : i1
    %13 = arith.extui %12 : i1 to i32
    %c0_i32_9 = arith.constant 0 : i32
    %14 = arith.cmpi ne, %13, %c0_i32_9 : i32
    scf.if %14 {
      %c2_i32 = arith.constant 2 : i32
      %16 = tpu.memref_slice %arg19[%c2_i32] : memref<3x!tpu.dma_semaphore, #tpu.memory_space<semaphore_mem>> -> memref<1x!tpu.dma_semaphore, #tpu.memory_space<semaphore_mem>>
      %17 = tpu.memref_squeeze %16 : memref<1x!tpu.dma_semaphore, #tpu.memory_space<semaphore_mem>> -> memref<!tpu.dma_semaphore, #tpu.memory_space<semaphore_mem>>
      tpu.enqueue_dma source(%arg2 : memref<128x128xf32, #tpu.memory_space<any>>) target(%arg17 : memref<128x128xf32, #tpu.memory_space<vmem>>) target_semaphore(%17 : memref<!tpu.dma_semaphore, #tpu.memory_space<semaphore_mem>>)
      %c2_i32_13 = arith.constant 2 : i32
      %18 = tpu.memref_slice %arg19[%c2_i32_13] : memref<3x!tpu.dma_semaphore, #tpu.memory_space<semaphore_mem>> -> memref<1x!tpu.dma_semaphore, #tpu.memory_space<semaphore_mem>>
      %19 = tpu.memref_squeeze %18 : memref<1x!tpu.dma_semaphore, #tpu.memory_space<semaphore_mem>> -> memref<!tpu.dma_semaphore, #tpu.memory_space<semaphore_mem>>
      tpu.wait_dma2 semaphore(%19 : memref<!tpu.dma_semaphore, #tpu.memory_space<semaphore_mem>>) src(%arg2 : memref<128x128xf32, #tpu.memory_space<any>>) dst(%arg17 : memref<128x128xf32, #tpu.memory_space<vmem>>)
    } else {
    }
    %c0_i32_10 = arith.constant 0 : i32
    %c4_i32_11 = arith.constant 4 : i32
    %15 = arith.addi %c0_i32_10, %c4_i32_11 : i32
    %c1_i32 = arith.constant 1 : i32
    scf.for %arg20 = %c0_i32_10 to %15 step %c1_i32  : i32 {
      %c1_i32_13 = arith.constant 1 : i32
      %16 = arith.muli %arg20, %c1_i32_13 : i32
      %c0_i32_14 = arith.constant 0 : i32
      %17 = arith.addi %c0_i32_14, %16 : i32
      %c2_i32 = arith.constant 2 : i32
      %c0_i32_15 = arith.constant 0 : i32
      %18 = arith.cmpi eq, %c2_i32, %c0_i32_15 : i32
      %c1_i32_16 = arith.constant 1 : i32
      %19 = arith.select %18, %c1_i32_16, %c2_i32 : i32
      %20 = arith.remsi %17, %19 : i32
      %c0_i32_17 = arith.constant 0 : i32
      %21 = arith.cmpi ne, %20, %c0_i32_17 : i32
      %c0_i32_18 = arith.constant 0 : i32
      %22 = arith.cmpi slt, %20, %c0_i32_18 : i32
      %c0_i32_19 = arith.constant 0 : i32
      %23 = arith.cmpi slt, %19, %c0_i32_19 : i32
      %24 = arith.xori %22, %23 : i1
      %25 = arith.andi %24, %21 : i1
      %26 = arith.addi %20, %19 : i32
      %27 = arith.select %25, %26, %20 : i32
      %c0_i32_20 = arith.constant 0 : i32
      %c0_i32_21 = arith.constant 0 : i32
      %c0_i32_22 = arith.constant 0 : i32
      %28 = tpu.memref_slice %arg3[%c0_i32_20, %c0_i32_21, %c0_i32_22] : memref<8x128x128xbf16, #tpu.memory_space<any>> -> memref<1x128x128xbf16, #tpu.memory_space<any>>
      %29 = tpu.memref_squeeze %28 : memref<1x128x128xbf16, #tpu.memory_space<any>> -> memref<128x128xbf16, #tpu.memory_space<any>>
      %c0_i32_23 = arith.constant 0 : i32
      %c0_i32_24 = arith.constant 0 : i32
      %30 = tpu.memref_slice %arg18[%27, %c0_i32_23, %c0_i32_24] : memref<2x128x128xbf16, #tpu.memory_space<vmem>> -> memref<1x128x128xbf16, #tpu.memory_space<vmem>>
      %31 = tpu.memref_squeeze %30 : memref<1x128x128xbf16, #tpu.memory_space<vmem>> -> memref<128x128xbf16, #tpu.memory_space<vmem>>
      %32 = tpu.memref_slice %arg19[%27] : memref<3x!tpu.dma_semaphore, #tpu.memory_space<semaphore_mem>> -> memref<1x!tpu.dma_semaphore, #tpu.memory_space<semaphore_mem>>
      %33 = tpu.memref_squeeze %32 : memref<1x!tpu.dma_semaphore, #tpu.memory_space<semaphore_mem>> -> memref<!tpu.dma_semaphore, #tpu.memory_space<semaphore_mem>>
      tpu.wait_dma2 semaphore(%33 : memref<!tpu.dma_semaphore, #tpu.memory_space<semaphore_mem>>) src(%29 : memref<128x128xbf16, #tpu.memory_space<any>>) dst(%31 : memref<128x128xbf16, #tpu.memory_space<vmem>>)
      %c1_i32_25 = arith.constant 1 : i32
      %34 = arith.addi %17, %c1_i32_25 : i32
      %c4_i32_26 = arith.constant 4 : i32
      %35 = arith.cmpi slt, %34, %c4_i32_26 : i32
      %36 = arith.extui %35 : i1 to i32
      %c0_i32_27 = arith.constant 0 : i32
      %37 = arith.cmpi ne, %36, %c0_i32_27 : i32
      scf.if %37 {
        %c1_i32_76 = arith.constant 1 : i32
        %139 = arith.addi %17, %c1_i32_76 : i32
        %c1_i32_77 = arith.constant 1 : i32
        %140 = arith.subi %c1_i32_77, %27 : i32
        %c4_i32_78 = arith.constant 4 : i32
        %141 = arith.muli %arg1, %c4_i32_78 : i32
        %c0_i32_79 = arith.constant 0 : i32
        %142 = arith.cmpi eq, %arg1, %c0_i32_79 : i32
        %c3_i32_80 = arith.constant 3 : i32
        %143 = arith.subi %c3_i32_80, %139 : i32
        %144 = arith.select %142, %139, %143 : i32
        %145 = arith.addi %141, %144 : i32
        %c0_i32_81 = arith.constant 0 : i32
        %c0_i32_82 = arith.constant 0 : i32
        %146 = tpu.memref_slice %arg3[%145, %c0_i32_81, %c0_i32_82] : memref<8x128x128xbf16, #tpu.memory_space<any>> -> memref<1x128x128xbf16, #tpu.memory_space<any>>
        %147 = tpu.memref_squeeze %146 : memref<1x128x128xbf16, #tpu.memory_space<any>> -> memref<128x128xbf16, #tpu.memory_space<any>>
        %c0_i32_83 = arith.constant 0 : i32
        %c0_i32_84 = arith.constant 0 : i32
        %148 = tpu.memref_slice %arg18[%140, %c0_i32_83, %c0_i32_84] : memref<2x128x128xbf16, #tpu.memory_space<vmem>> -> memref<1x128x128xbf16, #tpu.memory_space<vmem>>
        %149 = tpu.memref_squeeze %148 : memref<1x128x128xbf16, #tpu.memory_space<vmem>> -> memref<128x128xbf16, #tpu.memory_space<vmem>>
        %150 = tpu.memref_slice %arg19[%140] : memref<3x!tpu.dma_semaphore, #tpu.memory_space<semaphore_mem>> -> memref<1x!tpu.dma_semaphore, #tpu.memory_space<semaphore_mem>>
        %151 = tpu.memref_squeeze %150 : memref<1x!tpu.dma_semaphore, #tpu.memory_space<semaphore_mem>> -> memref<!tpu.dma_semaphore, #tpu.memory_space<semaphore_mem>>
        tpu.enqueue_dma source(%147 : memref<128x128xbf16, #tpu.memory_space<any>>) target(%149 : memref<128x128xbf16, #tpu.memory_space<vmem>>) target_semaphore(%151 : memref<!tpu.dma_semaphore, #tpu.memory_space<semaphore_mem>>)
      } else {
      }
      %c0_i32_28 = arith.constant 0 : i32
      %38 = arith.cmpi eq, %arg1, %c0_i32_28 : i32
      %c3_i32_29 = arith.constant 3 : i32
      %39 = arith.subi %c3_i32_29, %17 : i32
      %40 = arith.select %38, %17, %39 : i32
      %c0 = arith.constant 0 : index
      %c0_30 = arith.constant 0 : index
      %41 = vector.load %arg17[%c0, %c0_30] : memref<128x128xf32, #tpu.memory_space<vmem>>, vector<128x128xf32>
      %42 = arith.truncf %41 : vector<128x128xf32> to vector<128x128xbf16>
      %c0_31 = arith.constant 0 : index
      %c0_32 = arith.constant 0 : index
      %43 = vector.load %arg9[%c0_31, %c0_32] : memref<128x128xbf16, #tpu.memory_space<vmem>>, vector<128x128xbf16>
      %cst = arith.constant dense<0.000000e+00> : vector<128x128xf32>
      %44 = tpu.matmul %42, %43, %cst {dimension_numbers = #tpu.dot_dimension_numbers<[1], [0], [0], [1], [0, 0, 1, 1], [], []>} : vector<128x128xbf16>, vector<128x128xbf16>, vector<128x128xf32> -> vector<128x128xf32>
      %c0_33 = arith.constant 0 : index
      %c0_34 = arith.constant 0 : index
      %45 = vector.load %arg10[%c0_33, %c0_34] : memref<1x128xf32, #tpu.memory_space<vmem>>, vector<1x128xf32>
      %46 = vector.broadcast %45 : vector<1x128xf32> to vector<128x128xf32>
      %47 = arith.addf %44, %46 : vector<128x128xf32>
      %cst_35 = arith.constant 0.000000e+00 : f32
      %48 = vector.broadcast %cst_35 : f32 to vector<128x128xf32>
      %49 = arith.maximumf %47, %48 : vector<128x128xf32>
      %50 = arith.truncf %49 : vector<128x128xf32> to vector<128x128xbf16>
      %c0_36 = arith.constant 0 : index
      %c0_37 = arith.constant 0 : index
      %51 = vector.load %arg11[%c0_36, %c0_37] : memref<128x128xbf16, #tpu.memory_space<vmem>>, vector<128x128xbf16>
      %cst_38 = arith.constant dense<0.000000e+00> : vector<128x128xf32>
      %52 = tpu.matmul %50, %51, %cst_38 {dimension_numbers = #tpu.dot_dimension_numbers<[1], [0], [0], [1], [0, 0, 1, 1], [], []>} : vector<128x128xbf16>, vector<128x128xbf16>, vector<128x128xf32> -> vector<128x128xf32>
      %c0_39 = arith.constant 0 : index
      %c0_40 = arith.constant 0 : index
      %53 = vector.load %arg12[%c0_39, %c0_40] : memref<1x128xf32, #tpu.memory_space<vmem>>, vector<1x128xf32>
      %54 = vector.broadcast %53 : vector<1x128xf32> to vector<128x128xf32>
      %55 = arith.addf %52, %54 : vector<128x128xf32>
      %cst_41 = arith.constant 0.000000e+00 : f32
      %56 = vector.broadcast %cst_41 : f32 to vector<128x128xf32>
      %57 = arith.maximumf %55, %56 : vector<128x128xf32>
      %58 = arith.index_cast %27 : i32 to index
      %c0_42 = arith.constant 0 : index
      %c0_43 = arith.constant 0 : index
      %59 = vector.load %arg18[%58, %c0_42, %c0_43] : memref<2x128x128xbf16, #tpu.memory_space<vmem>>, vector<1x128x128xbf16>
      %60 = vector.shape_cast %59 : vector<1x128x128xbf16> to vector<128x128xbf16>
      %61 = arith.truncf %57 : vector<128x128xf32> to vector<128x128xbf16>
      %cst_44 = arith.constant dense<0.000000e+00> : vector<128x128xf32>
      %62 = tpu.matmul %60, %61, %cst_44 {dimension_numbers = #tpu.dot_dimension_numbers<[1], [0], [0], [1], [0, 0, 1, 1], [], []>} : vector<128x128xbf16>, vector<128x128xbf16>, vector<128x128xf32> -> vector<128x128xf32>
      %c0_45 = arith.constant 0 : index
      %c0_46 = arith.constant 0 : index
      %63 = vector.load %arg6[%c0_45, %c0_46] : memref<128x1xi32, #tpu.memory_space<vmem>>, vector<128x1xi32>
      %64 = vector.broadcast %40 : i32 to vector<128x1xi32>
      %65 = arith.addi %63, %64 : vector<128x1xi32>
      %c0_47 = arith.constant 0 : index
      %c0_48 = arith.constant 0 : index
      %66 = vector.load %arg7[%c0_47, %c0_48] : memref<128x1xi32, #tpu.memory_space<vmem>>, vector<128x1xi32>
      %67 = vector.broadcast %40 : i32 to vector<128x1xi32>
      %68 = arith.cmpi slt, %67, %66 : vector<128x1xi32>
      %69 = tpu.iota {dimensions = array<i32: 1>} : vector<128x128xi32>
      %70 = vector.broadcast %65 : vector<128x1xi32> to vector<128x128xi32>
      %71 = arith.cmpi eq, %69, %70 : vector<128x128xi32>
      %72 = vector.broadcast %68 : vector<128x1xi1> to vector<128x128xi1>
      %73 = arith.andi %72, %71 : vector<128x128xi1>
      %cst_49 = arith.constant 1.000000e+00 : f32
      %cst_50 = arith.constant 0.000000e+00 : f32
      %74 = vector.broadcast %cst_49 : f32 to vector<128x128xf32>
      %75 = vector.broadcast %cst_50 : f32 to vector<128x128xf32>
      %76 = arith.select %73, %74, %75 : vector<128x128xi1>, vector<128x128xf32>
      %77 = arith.truncf %76 : vector<128x128xf32> to vector<128x128xbf16>
      %cst_51 = arith.constant dense<0.000000e+00> : vector<128x128xf32>
      %78 = tpu.matmul %77, %42, %cst_51 {dimension_numbers = #tpu.dot_dimension_numbers<[1], [0], [0], [1], [0, 0, 1, 1], [], []>} : vector<128x128xbf16>, vector<128x128xbf16>, vector<128x128xf32> -> vector<128x128xf32>
      %c0_52 = arith.constant 0 : index
      %c0_53 = arith.constant 0 : index
      %79 = vector.load %arg13[%c0_52, %c0_53] : memref<128x384xf32, #tpu.memory_space<vmem>>, vector<128x384xf32>
      %cst_54 = arith.constant dense<0.000000e+00> : vector<128x384xf32>
      %80 = tpu.matmul %62, %79, %cst_54 {dimension_numbers = #tpu.dot_dimension_numbers<[1], [0], [0], [1], [0, 0, 1, 1], [], []>} : vector<128x128xf32>, vector<128x384xf32>, vector<128x384xf32> -> vector<128x384xf32>
      %c0_55 = arith.constant 0 : index
      %c0_56 = arith.constant 0 : index
      %81 = vector.load %arg14[%c0_55, %c0_56] : memref<1x384xf32, #tpu.memory_space<vmem>>, vector<1x384xf32>
      %82 = vector.broadcast %81 : vector<1x384xf32> to vector<128x384xf32>
      %83 = arith.addf %80, %82 : vector<128x384xf32>
      %c0_57 = arith.constant 0 : index
      %c0_58 = arith.constant 0 : index
      %84 = vector.load %arg15[%c0_57, %c0_58] : memref<128x384xf32, #tpu.memory_space<vmem>>, vector<128x384xf32>
      %cst_59 = arith.constant dense<0.000000e+00> : vector<128x384xf32>
      %85 = tpu.matmul %78, %84, %cst_59 {dimension_numbers = #tpu.dot_dimension_numbers<[1], [0], [0], [1], [0, 0, 1, 1], [], []>} : vector<128x128xf32>, vector<128x384xf32>, vector<128x384xf32> -> vector<128x384xf32>
      %c0_60 = arith.constant 0 : index
      %c0_61 = arith.constant 0 : index
      %86 = vector.load %arg16[%c0_60, %c0_61] : memref<1x384xf32, #tpu.memory_space<vmem>>, vector<1x384xf32>
      %87 = vector.broadcast %86 : vector<1x384xf32> to vector<128x384xf32>
      %88 = arith.addf %85, %87 : vector<128x384xf32>
      %89 = vector.extract_strided_slice %83 {offsets = [0, 0], sizes = [128, 128], strides = [1, 1]} : vector<128x384xf32> to vector<128x128xf32>
      %90 = vector.extract_strided_slice %88 {offsets = [0, 0], sizes = [128, 128], strides = [1, 1]} : vector<128x384xf32> to vector<128x128xf32>
      %91 = arith.addf %89, %90 : vector<128x128xf32>
      %92 = arith.negf %91 : vector<128x128xf32>
      %93 = math.exp %92 : vector<128x128xf32>
      %cst_62 = arith.constant 1.000000e+00 : f32
      %94 = vector.broadcast %cst_62 : f32 to vector<128x128xf32>
      %95 = arith.addf %94, %93 : vector<128x128xf32>
      %96 = arith.divf %94, %95 : vector<128x128xf32>
      %97 = vector.extract_strided_slice %83 {offsets = [0, 128], sizes = [128, 128], strides = [1, 1]} : vector<128x384xf32> to vector<128x128xf32>
      %98 = vector.extract_strided_slice %88 {offsets = [0, 128], sizes = [128, 128], strides = [1, 1]} : vector<128x384xf32> to vector<128x128xf32>
      %99 = arith.addf %97, %98 : vector<128x128xf32>
      %100 = arith.negf %99 : vector<128x128xf32>
      %101 = math.exp %100 : vector<128x128xf32>
      %cst_63 = arith.constant 1.000000e+00 : f32
      %102 = vector.broadcast %cst_63 : f32 to vector<128x128xf32>
      %103 = arith.addf %102, %101 : vector<128x128xf32>
      %104 = arith.divf %102, %103 : vector<128x128xf32>
      %105 = vector.extract_strided_slice %83 {offsets = [0, 256], sizes = [128, 128], strides = [1, 1]} : vector<128x384xf32> to vector<128x128xf32>
      %106 = vector.extract_strided_slice %88 {offsets = [0, 256], sizes = [128, 128], strides = [1, 1]} : vector<128x384xf32> to vector<128x128xf32>
      %107 = arith.mulf %96, %106 : vector<128x128xf32>
      %108 = arith.addf %105, %107 : vector<128x128xf32>
      %109 = math.tanh %108 : vector<128x128xf32>
      %cst_64 = arith.constant 1.000000e+00 : f32
      %110 = vector.broadcast %cst_64 : f32 to vector<128x128xf32>
      %111 = arith.subf %110, %104 : vector<128x128xf32>
      %112 = arith.mulf %111, %109 : vector<128x128xf32>
      %113 = arith.mulf %104, %78 : vector<128x128xf32>
      %114 = arith.addf %112, %113 : vector<128x128xf32>
      %c0_65 = arith.constant 0 : index
      %c0_66 = arith.constant 0 : index
      %115 = vector.load %arg4[%c0_65, %c0_66] : memref<1x128xi32, #tpu.memory_space<vmem>>, vector<1x128xi32>
      %116 = vector.broadcast %40 : i32 to vector<1x128xi32>
      %117 = arith.addi %115, %116 : vector<1x128xi32>
      %c0_67 = arith.constant 0 : index
      %c0_68 = arith.constant 0 : index
      %118 = vector.load %arg5[%c0_67, %c0_68] : memref<1x128xi32, #tpu.memory_space<vmem>>, vector<1x128xi32>
      %119 = vector.broadcast %40 : i32 to vector<1x128xi32>
      %120 = arith.cmpi slt, %119, %118 : vector<1x128xi32>
      %121 = tpu.iota {dimensions = array<i32: 0>} : vector<128x128xi32>
      %122 = vector.broadcast %117 : vector<1x128xi32> to vector<128x128xi32>
      %123 = arith.cmpi eq, %121, %122 : vector<128x128xi32>
      %124 = vector.broadcast %120 : vector<1x128xi1> to vector<128x128xi1>
      %125 = arith.andi %124, %123 : vector<128x128xi1>
      %cst_69 = arith.constant 1.000000e+00 : f32
      %cst_70 = arith.constant 0.000000e+00 : f32
      %126 = vector.broadcast %cst_69 : f32 to vector<128x128xf32>
      %127 = vector.broadcast %cst_70 : f32 to vector<128x128xf32>
      %128 = arith.select %125, %126, %127 : vector<128x128xi1>, vector<128x128xf32>
      %129 = arith.truncf %128 : vector<128x128xf32> to vector<128x128xbf16>
      %130 = arith.truncf %114 : vector<128x128xf32> to vector<128x128xbf16>
      %cst_71 = arith.constant dense<0.000000e+00> : vector<128x128xf32>
      %131 = tpu.matmul %129, %130, %cst_71 {dimension_numbers = #tpu.dot_dimension_numbers<[1], [0], [0], [1], [0, 0, 1, 1], [], []>} : vector<128x128xbf16>, vector<128x128xbf16>, vector<128x128xf32> -> vector<128x128xf32>
      %c0_72 = arith.constant 0 : index
      %c0_73 = arith.constant 0 : index
      %132 = vector.load %arg8[%c0_72, %c0_73] : memref<128x1xi32, #tpu.memory_space<vmem>>, vector<128x1xi32>
      %133 = vector.broadcast %40 : i32 to vector<128x1xi32>
      %134 = arith.cmpi eq, %132, %133 : vector<128x1xi32>
      %135 = vector.shape_cast %134 : vector<128x1xi1> to vector<128x1xi1>
      %136 = vector.broadcast %135 : vector<128x1xi1> to vector<128x128xi1>
      %137 = arith.select %136, %131, %41 : vector<128x128xi1>, vector<128x128xf32>
      %c0_74 = arith.constant 0 : index
      %c0_75 = arith.constant 0 : index
      %138 = vector.load %arg17[%c0_74, %c0_75] : memref<128x128xf32, #tpu.memory_space<vmem>>, vector<128x128xf32>
      tpu.vector_store %arg17[%c0_74, %c0_75], %137 {strides = array<i32>} : memref<128x128xf32, #tpu.memory_space<vmem>>, vector<128x128xf32>,
    }
    %c4_i32_12 = arith.constant 4 : i32
    return
  }
  func.func @transform_2(%arg0: i32, %arg1: i32) -> (i32, i32) {
    %c0_i32 = arith.constant 0 : i32
    %c0_i32_0 = arith.constant 0 : i32
    %c0_i32_1 = arith.constant 0 : i32
    return %c0_i32, %c0_i32_0 : i32, i32
  }
  func.func @transform_3(%arg0: i32, %arg1: i32) -> (i32, i32) {
    %c0_i32 = arith.constant 0 : i32
    %c0_i32_0 = arith.constant 0 : i32
    %c0_i32_1 = arith.constant 0 : i32
    return %c0_i32, %c0_i32_0 : i32, i32
  }
  func.func @transform_4(%arg0: i32, %arg1: i32) -> (i32, i32) {
    %c0_i32 = arith.constant 0 : i32
    %c0_i32_0 = arith.constant 0 : i32
    %c0_i32_1 = arith.constant 0 : i32
    return %c0_i32, %c0_i32_0 : i32, i32
  }
  func.func @transform_5(%arg0: i32, %arg1: i32) -> (i32, i32) {
    %c0_i32 = arith.constant 0 : i32
    %c0_i32_0 = arith.constant 0 : i32
    %c0_i32_1 = arith.constant 0 : i32
    return %c0_i32, %c0_i32_0 : i32, i32
  }
  func.func @transform_6(%arg0: i32, %arg1: i32) -> (i32, i32) {
    %c0_i32 = arith.constant 0 : i32
    %c0_i32_0 = arith.constant 0 : i32
    %c0_i32_1 = arith.constant 0 : i32
    return %c0_i32, %c0_i32_0 : i32, i32
  }
  func.func @transform_7(%arg0: i32, %arg1: i32) -> (i32, i32) {
    %c0_i32 = arith.constant 0 : i32
    %c0_i32_0 = arith.constant 0 : i32
    %c0_i32_1 = arith.constant 0 : i32
    return %c0_i32, %c0_i32_0 : i32, i32
  }
  func.func @transform_8(%arg0: i32, %arg1: i32) -> (i32, i32) {
    %c0_i32 = arith.constant 0 : i32
    %c0_i32_0 = arith.constant 0 : i32
    %c0_i32_1 = arith.constant 0 : i32
    return %c0_i32, %c0_i32_0 : i32, i32
  }
  func.func @transform_9(%arg0: i32, %arg1: i32) -> (i32, i32) {
    %c0_i32 = arith.constant 0 : i32
    %c0_i32_0 = arith.constant 0 : i32
    %c0_i32_1 = arith.constant 0 : i32
    return %c0_i32, %c0_i32_0 : i32, i32
  }
  func.func @transform_10(%arg0: i32, %arg1: i32) -> (i32, i32) {
    %c0_i32 = arith.constant 0 : i32
    %c0_i32_0 = arith.constant 0 : i32
    %c0_i32_1 = arith.constant 0 : i32
    return %c0_i32, %c0_i32_0 : i32, i32
  }
  func.func @transform_11(%arg0: i32, %arg1: i32) -> (i32, i32) {
    %c0_i32 = arith.constant 0 : i32
    %c0_i32_0 = arith.constant 0 : i32
    %c0_i32_1 = arith.constant 0 : i32
    return %c0_i32, %c0_i32_0 : i32, i32
  }
  func.func @transform_12(%arg0: i32, %arg1: i32) -> (i32, i32) {
    %c0_i32 = arith.constant 0 : i32
    %c0_i32_0 = arith.constant 0 : i32
    %c0_i32_1 = arith.constant 0 : i32
    return %c0_i32, %c0_i32_0 : i32, i32
  }
  func.func @transform_13(%arg0: i32, %arg1: i32) -> (i32, i32) {
    %c0_i32 = arith.constant 0 : i32
    %c0_i32_0 = arith.constant 0 : i32
    %c0_i32_1 = arith.constant 0 : i32
    return %c0_i32, %c0_i32_0 : i32, i32
  }
  func.func @transform_14(%arg0: i32, %arg1: i32) -> (i32, i32) {
    %c0_i32 = arith.constant 0 : i32
    %c0_i32_0 = arith.constant 0 : i32
    %c0_i32_1 = arith.constant 0 : i32
    return %c0_i32, %c0_i32_0 : i32, i32
  }
  func.func @transform_15(%arg0: i32, %arg1: i32) -> (i32, i32) {
    %c0_i32 = arith.constant 0 : i32
    %c0_i32_0 = arith.constant 0 : i32
    %c0_i32_1 = arith.constant 0 : i32
    return %c0_i32, %c0_i32_0 : i32, i32
  }
}

</mosaic_0001>

<bundles_post_ra>
// kernel: tpu_custom_call.1
= control target key start
LH: loop header
LB: loop body
LE: loop exit
PB: predicated region body
PF: predicated region fallthrough
CT: control target
= control target key end

     0   :  { %s5815_s0 = inlined_call_operand.hbm [shape: f32[128,128], index: 0, kind: input, shape index: {}]   ;;  %s5816_s1 = inlined_call_operand.hbm [shape: bf16[8,128,128], index: 1, kind: input, shape index: {}]   ;;  %s5817_s2 = inlined_call_operand.vmem [shape: s32[1,128], index: 2, kind: input, shape index: {}]   ;;  %s5818_s3 = inlined_call_operand.vmem [shape: s32[1,128], index: 3, kind: input, shape index: {}]   ;;  %s5819_s4 = inlined_call_operand.vmem [shape: s32[128,1], index: 4, kind: input, shape index: {}]   ;;  %s5820_s5 = inlined_call_operand.vmem [shape: s32[128,1], index: 5, kind: input, shape index: {}]   ;;  %s5821_s6 = inlined_call_operand.vmem [shape: s32[128,1], index: 6, kind: input, shape index: {}]   ;;  %s5822_s7 = inlined_call_operand.hbm [shape: bf16[128,128], index: 7, kind: input, shape index: {}]   ;;  %s5823_s8 = inlined_call_operand.vmem [shape: f32[1,128], index: 8, kind: input, shape index: {}]   ;;  %s5824_s9 = inlined_call_operand.hbm [shape: bf16[128,128], index: 9, kind: input, shape index: {}]   ;;  %s5825_s10 = inlined_call_operand.vmem [shape: f32[1,128], index: 10, kind: input, shape index: {}]   ;;  %s5826_s11 = inlined_call_operand.vmem [shape: f32[128,384], index: 11, kind: input, shape index: {}]   ;;  %s5827_s12 = inlined_call_operand.vmem [shape: f32[1,384], index: 12, kind: input, shape index: {}]   ;;  %s5828_s13 = inlined_call_operand.hbm [shape: f32[128,384], index: 13, kind: input, shape index: {}]   ;;  %s5829_s14 = inlined_call_operand.vmem [shape: f32[1,384], index: 14, kind: input, shape index: {}]   ;;  %s5830_s15 = inlined_call_operand.hbm [shape: f32[128,128], index: 15, kind: output, shape index: {}]  }
   0x1   :  { %5865 = sst [smem:[#allocation47_spill]] %s5815_s0 }
   0x2   :  { %5866 = sst [smem:[#allocation48_spill]] %s5817_s2 }
   0x3   :  { %5867 = sst [smem:[#allocation49_spill]] %s5818_s3 }
   0x4   :  { %5868 = sst [smem:[#allocation50_spill]] %s5819_s4 }
   0x5   :  { %5869 = sst [smem:[#allocation51_spill]] %s5820_s5 }
   0x6   :  { %5870 = sst [smem:[#allocation52_spill]] %s5827_s12 }
   0x7   :  { %5871 = sst [smem:[#allocation53_spill]] %s5829_s14 }
   0x8   :  { %5872 = sst [smem:[#allocation54_spill]] %s5830_s15 }
   0x9   :  { %20 = vsyncpa [#allocation5], 0 }
   0xa   :  { %21 = vsyncpa [#allocation8], 0 }
   0xb   :  { %22 = vsyncpa [#allocation6], 0  ;;  %s4317_s18 = smov 0   ;;  %s4319_s19 = smov 0  }
   0xc   :  { %s4321_s20 = smov 0  }
   0xd LB: > { %5873 = sst [smem:[#allocation24_spill]] %s4213_s19  ;;  %s5831_s21 = sadd.s32 4294967295, %s4217_s20   ;;  %s4217_s20 = sphi %s4321_s20, %s28_s20   ;;  %s4213_s19 = sphi %s4319_s19, %s6014_s19   ;;  %s4209_s18 = sphi %s4317_s18, %s6013_s18  }
   0xe   : > { %5874 = sst [smem:[#allocation25_spill]] %s4217_s20  ;;  %p2950_p0 = scmp.ge.s32.totalorder %s4217_s20, 1 }
   0xf   : > { %p339_p1 = scmp.lt.s32.totalorder %s4217_s20, 3  ;;  %p4337_p2 = scmp.eq.s32.totalorder %s5831_s21, 0 }
  0x10   : > { %s4223_s24 = smov [#allocation7]   ;;  %s37_s27 = sadd.s32 1, %s4213_s19 }
  0x11   : > { %s5875_s22 = scalar_select %p4337_p2, 1, 0 }
  0x12   : > { %p4341_p3 = pnand %p2950_p0, %p339_p1  ;;  %s382_s25 = sshll.u32 %s4223_s24, 4  ;;  %s4345_s25 = int_to_ptr.vmem [resolvable:$true] %s382_s25 }
  0x13   : > { %p4356_p6 = scmp.ge.s32.totalorder %s37_s27, 2  ;;  %s4224_s29 = smov [#allocation4]  }
  0x14   : > { %s5876_s23 = scalar_select %p4341_p3, 1, 0 }
  0x15   : > { %p3726_p4 = pneg %p4341_p3  ;;  %s366_s30 = sshll.u32 %s4224_s29, 4  ;;  %s367_s30 = int_to_ptr.vmem [resolvable:$true] %s366_s30 }
  0x16   : > { %s3985_s24 = scalar_lea.hbm %s5824_s9, 1024 }
  0x17   : > { %p4351_p5 = pnand %p4337_p2, %p3726_p4  ;;  %p3986_p7 = scmp.ne.s32.totalorder %s5824_s9, %s3985_s24 }
  0x18   : > { %p3992_p11 = scmp.lt.u32.totalorder %s3985_s24, %s5824_s9 }
  0x19   : > { %p4368_p8 = pneg %p4351_p5 }
  0x1b   : > { %p3988_p9 = pnand %p4368_p8, %p3986_p7 }
  0x1d   : > { %p3989_p10 = pneg %p3988_p9 }
  0x1f   : > { %p3994_p12 = pnand %p3992_p11, %p3989_p10 }
  0x21   : > { %3997 = shalt.err (!%p3994_p12)
}
  0x22   : > { %s3998_s15 = scalar_lea.vmem %s4345_s25, 1024  ;;  %p4006_p4 = scmp.lt.s32.totalorder %s4345_s25, %s4345_s25 }
  0x23   : > { %p3999_p13 = scmp.ne.s32.totalorder %s4345_s25, %s3998_s15  ;;  %p4007_p2 = scmp.lt.s32.totalorder %s3998_s15, %s3998_s15 }
  0x25   : > { %p4001_p0 = pnand %p3999_p13, %p4368_p8  ;;  %p4008_p7 = por %p4007_p2, %p4006_p4 }
  0x27   : > { %p4002_p1 = pneg %p4001_p0 }
  0x29   : > { %p4009_p9 = pnand %p4008_p7, %p4002_p1 }
  0x2b   : > { %4012 = shalt.err (!%p4009_p9)
}
  0x2c   : > { %s4225_s21 = smov 64   ;;  %s4226_s14 = smov 4  }
  0x2d   : > { %3732 = dma.hbm_to_vmem [thread:$0]  (!%p4351_p5), %s5824_s9, 1024, %s4345_s25, [#allocation8], %s4225_s21, %s4225_s21, %s4226_s14  }
  0x2e   : > { %s6016_s27 = smov (%p4356_p6, %s37_s27), 0  ;;  %s4013_s24 = scalar_lea.hbm %s5822_s7, 1024 }
  0x2f   : > { %p4014_p2 = scmp.ne.s32.totalorder %s5822_s7, %s4013_s24  ;;  %p4020_p12 = scmp.lt.u32.totalorder %s4013_s24, %s5822_s7 }
  0x31   : > { %p4016_p10 = pnand %p4014_p2, %p4368_p8 }
  0x33   : > { %p4017_p11 = pneg %p4016_p10 }
  0x35   : > { %p4022_p13 = pnand %p4020_p12, %p4017_p11 }
  0x37   : > { %4025 = shalt.err (!%p4022_p13)
}
  0x38   : > { %s4026_s25 = scalar_lea.vmem %s367_s30, 1024  ;;  %p4034_p4 = scmp.lt.s32.totalorder %s367_s30, %s367_s30 }
  0x39   : > { %p4027_p6 = scmp.ne.s32.totalorder %s367_s30, %s4026_s25  ;;  %p4035_p7 = scmp.lt.s32.totalorder %s4026_s25, %s4026_s25 }
  0x3b   : > { %p4029_p0 = pnand %p4027_p6, %p4368_p8  ;;  %p4036_p9 = por %p4035_p7, %p4034_p4 }
  0x3d   : > { %p4030_p1 = pneg %p4029_p0 }
  0x3f   : > { %p4037_p3 = pnand %p4036_p9, %p4030_p1 }
  0x41   : > { %4040 = shalt.err (!%p4037_p3)
}
  0x42   : > { %3729 = dma.hbm_to_vmem [thread:$0]  (!%p4351_p5), %s5822_s7, 1024, %s367_s30, [#allocation5], %s4225_s21, %s4225_s21, %s4226_s14  }
  0x43   : > { %s4227_s2 = smov [#allocation9]   ;;  %s4041_s16 = scalar_lea.hbm %s5828_s13, 6144 }
  0x44   : > { %s404_s12 = sshll.u32 %s4227_s2, 4  ;;  %p4042_p2 = scmp.ne.s32.totalorder %s5828_s13, %s4041_s16  ;;  %s405_s12 = int_to_ptr.vmem [resolvable:$true] %s404_s12 }
  0x45   : > { %p4048_p11 = scmp.lt.u32.totalorder %s4041_s16, %s5828_s13 }
  0x46   : > { %p4044_p3 = pnand %p4042_p2, %p4368_p8 }
  0x48   : > { %p4045_p10 = pneg %p4044_p3 }
  0x4a   : > { %p4050_p12 = pnand %p4048_p11, %p4045_p10 }
  0x4c   : > { %4053 = shalt.err (!%p4050_p12)
}
  0x4d   : > { %s4054_s30 = scalar_lea.vmem %s405_s12, 6144  ;;  %p4062_p1 = scmp.lt.s32.totalorder %s405_s12, %s405_s12 }
  0x4e   : > { %p4055_p13 = scmp.ne.s32.totalorder %s405_s12, %s4054_s30  ;;  %p4063_p4 = scmp.lt.s32.totalorder %s4054_s30, %s4054_s30 }
  0x50   : > { %p4057_p6 = pnand %p4055_p13, %p4368_p8  ;;  %p4064_p7 = por %p4063_p4, %p4062_p1 }
  0x52   : > { %p4058_p0 = pneg %p4057_p6 }
  0x54   : > { %p4065_p9 = pnand %p4064_p7, %p4058_p0 }
  0x56   : > { %4068 = shalt.err (!%p4065_p9)
}
  0x57   : > { %s4228_s21 = smov 384   ;;  %s4229_s14 = smov 24  }
  0x58   : > { %3735 = dma.hbm_to_vmem [thread:$0]  (!%p4351_p5), %s5828_s13, 6144, %s405_s12, [#allocation8], %s4228_s21, %s4228_s21, %s4229_s14  }
  0x59   : > { %p5880_p2 = scmp.ne.s32.totalorder %s5876_s23, 0 }
  0x5a   : > { %p5881_p3 = scmp.ne.s32.totalorder (!%p5880_p2), %s5875_s22, 0 }
  0x5b   : > { %423 = sbr.rel (%p5880_p2) target bundleno = 1553 (0x611), region = 72 }
  0x62   : > { %4190 = dma.done.wait (%p5881_p3), [#allocation5], 1024  }
  0x63   : > { %4192 = vsyncadd (%p5881_p3), [#allocation5], 4294966272 }
  0x64   : > { %4194 = dma.done.wait (%p5881_p3), [#allocation8], 7168  }
  0x65   : > { %4196 = vsyncadd (%p5881_p3), [#allocation8], 4294960128  ;;  %s5840_s20 = sshll.u32 %s4209_s18, 2  ;;  %p5841_p5 = scmp.eq.s32.totalorder %s4209_s18, 0 }
  0x66   : > { %s4230_s26 = smov [#allocation2]   ;;  %s4231_s12 = smov [#allocation10]  }
  0x67   : > { %s468_s23 = scalar_select %p5841_p5, 0, 3 }
  0x68   : > { %s480_s2 = sshll.u32 %s4230_s26, 4  ;;  %s497_s19 = sshll.u32 %s4231_s12, 4  ;;  %s4445_s2 = int_to_ptr.vmem [resolvable:$true] %s480_s2  ;;  %s4447_s19 = int_to_ptr.vmem [resolvable:$true] %s497_s19 }
  0x69   : > { %s469_s29 = sadd.s32 %s5840_s20, %s468_s23  ;;  %s5839_s21 = scalar_lea.hbm %s5816_s1, 8192 }
  0x6a   : > { %s3061_s16 = sshll.u32 %s469_s29, 10 }
  0x6b   : > { %s472_s24 = scalar_lea.hbm %s5816_s1, %s3061_s16 }
  0x6c   : > { %s4069_s15 = scalar_lea.hbm %s472_s24, 1024  ;;  %p4072_p10 = scmp.lt.u32.totalorder %s472_s24, %s5816_s1 }
  0x6d   : > { %p4070_p8 = scmp.ne.s32.totalorder %s472_s24, %s4069_s15  ;;  %p4073_p11 = scmp.lt.u32.totalorder %s5839_s21, %s4069_s15 }
  0x6e   : > { %p4075_p13 = scmp.lt.u32.totalorder %s4069_s15, %s472_s24 }
  0x6f   : > { %p4074_p12 = por %p4073_p11, %p4072_p10 }
  0x71   : > { %p4076_p6 = por %p4075_p13, %p4074_p12 }
  0x73   : > { %p4077_p0 = pnand %p4076_p6, %p4070_p8 }
  0x75   : > { %4080 = shalt.err (!%p4077_p0)  }
  0x76   : > { %s4081_s26 = scalar_lea.vmem %s4445_s2, 1024  ;;  %s5838_s12 = scalar_lea.vmem %s4445_s2, 2048 }
  0x77   : > { %p4082_p1 = scmp.ne.s32.totalorder %s4445_s2, %s4081_s26  ;;  %p4086_p4 = scmp.lt.s32.totalorder %s4445_s2, %s4445_s2 }
  0x78   : > { %p4087_p7 = scmp.lt.s32.totalorder %s5838_s12, %s4081_s26 }
  0x7a   : > { %p4088_p9 = por %p4087_p7, %p4086_p4 }
  0x7c   : > { %p4089_p2 = pnand %p4088_p9, %p4082_p1 }
  0x7e   : > { %4092 = shalt.err (!%p4089_p2)  }
  0x7f   : > { %483 = dma.hbm_to_vmem [thread:$0]  %s472_s24, 1024, %s4445_s2, [#allocation3] }
  0x80   : > { %s5882_s0 = sld [smem:[#allocation47_spill]] }
  0x86   : > { %s4093_s22 = scalar_lea.hbm %s5882_s0, 2048 }
  0x87   : > { %p4094_p3 = scmp.ne.s32.totalorder %s5882_s0, %s4093_s22  ;;  %p4099_p11 = scmp.lt.u32.totalorder %s4093_s22, %s5882_s0 }
  0x89   : > { %p4095_p8 = pnand %p4094_p3, %p5841_p5 }
  0x8b   : > { %p4096_p10 = pneg %p4095_p8 }
  0x8d   : > { %p4101_p12 = pnand %p4099_p11, %p4096_p10 }
  0x8f   : > { %4104 = shalt.err (!%p4101_p12)  }
  0x90   : > { %s4482_s24 = scalar_lea.vmem %s4447_s19, 2048  ;;  %p4112_p1 = scmp.lt.s32.totalorder %s4447_s19, %s4447_s19 }
  0x91   : > { %p5842_p13 = scmp.ne.s32.totalorder %s4447_s19, %s4482_s24  ;;  %p4113_p4 = scmp.lt.s32.totalorder %s4482_s24, %s4482_s24 }
  0x93   : > { %p4107_p6 = pnand %p5842_p13, %p5841_p5  ;;  %p4495_p7 = por %p4113_p4, %p4112_p1 }
  0x95   : > { %p4108_p0 = pneg %p4107_p6 }
  0x96   : > { %s5883_s14 = scalar_select %p4495_p7, 1, 0 }
  0x97   : > { %p4115_p9 = pnand %p4495_p7, %p4108_p0 }
  0x99   : > { %4118 = shalt.err (!%p4115_p9)  }
  0x9a   : > { %3718 = dma.hbm_to_vmem [thread:$0]  (%p5841_p5), %s5882_s0, 2048, %s4447_s19, [#allocation3 + $0x2] }
  0x9b   : > { %4198 = dma.done.wait (%p5841_p5), [#allocation3 + $0x2], 2048 }
  0x9c   : > { %4200 = vsyncadd (%p5841_p5), [#allocation3 + $0x2], 4294965248  ;;  %s4511_s23 = smov 0  }
  0x9d LB: >> { %p510_p2 = scmp.lt.s32.totalorder %s4221_s23, 0  ;;  %s511_s26 = ssub.s32 0, %s4221_s23  ;;  %s4221_s23 = sphi %s4511_s23, %s6004_s23  }
  0x9e   : >> { %s2962_s29 = smin.u32 %s4221_s23, %s511_s26 }
  0x9f   : >> { %s513_s16 = sand.u32 1, %s2962_s29  }
  0xa0   : >> { %s514_s22 = ssub.s32 0, %s513_s16 }
  0xa1   : >> { %s6018_s22 = smov (!%p510_p2, %s514_s22), %s513_s16 }
  0xa2   : >> { %p2964_p3 = scmp.lt.s32.totalorder %s6018_s22, 0  ;;  %s520_s17 = sadd.s32 2, %s6018_s22 }
  0xa4   : >> { %s6020_s17 = smov (!%p2964_p3, %s520_s17), %s6018_s22 }
  0xa5   : >> { %s3063_s15 = sshll.u32 %s6020_s17, 6  ;;  %s525_s30 = scalar_lea.sflag [#allocation3], %s6020_s17 }
  0xa6   : >> { %s4522_s25 = scalar_lea.vmem [#allocation2], %s3063_s15 }
  0xa7   : >> { %4201 = dma.done.wait %s525_s30, 1024 }
  0xa8   : >> { %4202 = vsyncadd %s525_s30, 4294966272  ;;  %v3793_v0 = vld [vmem:[#allocation4] sm:$0xff]   ;;  %v3794_v1 = vld [vmem:[#allocation4 + $0x8] sm:$0xff]   ;;  %s557_s3 = ssub.s32 3, %s4221_s23  ;;  %v4232_v40 = vmov 0   ;;  %p5884_p5 = scmp.eq.s32.totalorder %s4209_s18, 0 }
  0xa9   : >> { %3210 = vmatprep.subr.bf16.mxu0 %v3793_v0  ;;  %v3795_v2 = vld [vmem:[#allocation4 + $0x10] sm:$0xff]   ;;  %v3796_v3 = vld [vmem:[#allocation4 + $0x18] sm:$0xff]   ;;  %v559_v4 = vld [vmem:[#allocation10] sm:$0xff]  ;;  %3792 = vset.pattern.permute.xlu1 %v4232_v40  ;;  %s5885_s5 = sld [smem:[#allocation51_spill]]  ;;  %s5886_s4 = sld [smem:[#allocation50_spill]] }
  0xaa   : >> { %3211 = vmatpush3.bf16.msra.mxu0 %v3793_v0  ;;  %v560_v5 = vld [vmem:[#allocation10 + $0x8] sm:$0xff]  ;;  %v3797_v7 = vld [vmem:[#allocation4 + $0x20] sm:$0xff]   ;;  %v3803_v11 = vld [vmem:[#allocation7 + $0x10] sm:$0xff]   ;;  %3791 = vset.pattern.permute.xlu0 %v4232_v40  ;;  %s558_s28 = scalar_select %p5884_p5, %s4221_s23, %s557_s3 }
  0xab   : >> { %3212 = vmatprep.subr.bf16.mxu0 %v3794_v1  ;;  %v4525_v6 = vpack.c.bf16 %v560_v5, %v559_v4  ;;  %v3801_v8 = vld [vmem:[#allocation7] sm:$0xff]   ;;  %v3802_v9 = vld [vmem:[#allocation7 + $0x8] sm:$0xff]   ;;  %v3799_v12 = vld [vmem:[#allocation4 + $0x30] sm:$0xff]   ;;  %s4847_s3 = sadd.s32 1, %s4221_s23   ;;  %s535_s21 = ssub.s32 1, %s6020_s17 }
  0xac   : >> { %v3798_v10 = vld [vmem:[#allocation4 + $0x28] sm:$0xff]   ;;  %3242 = vmatprep.subr.bf16.mxu1 %v3801_v8  ;;  %v3804_v13 = vld [vmem:[#allocation7 + $0x18] sm:$0xff]   ;;  %v3805_v15 = vld [vmem:[#allocation7 + $0x20] sm:$0xff]   ;;  %v4565_v44 = vstv %s558_s28  ;;  %s536_s28 = ssub.s32 2, %s4221_s23  ;;  %s3065_s26 = sshll.u32 %s535_s21, 6 }
  0xad   : >> { %3226 = vmatprep.mubr.bf16.mxu0 %v4525_v6  ;;  %3243 = vmatpush3.bf16.msra.mxu1 %v3801_v8  ;;  %v3800_v14 = vld [vmem:[#allocation4 + $0x38] sm:$0xff]   ;;  %v561_v16 = vld [vmem:[#allocation10 + $0x10] sm:$0xff]  ;;  %v563_v18 = vld [vmem:[#allocation10 + $0x20] sm:$0xff]  ;;  %s537_s12 = scalar_select %p5884_p5, %s4847_s3, %s536_s28 }
  0xae   : >> { %3213 = vmatpush3.bf16.msra.mxu0 %v3794_v1  ;;  %3244 = vmatprep.subr.bf16.mxu1 %v3802_v9  ;;  %v562_v17 = vld [vmem:[#allocation10 + $0x18] sm:$0xff]  ;;  %v564_v19 = vld [vmem:[#allocation10 + $0x28] sm:$0xff]  ;;  %v565_v23 = vld [vmem:[#allocation10 + $0x30] sm:$0xff]  ;;  %p3742_p8 = scmp.lt.s32.totalorder %s4847_s3, 4  ;;  %s5887_s20 = sshll.u32 %s4209_s18, 2 }
  0xaf   : >> { %3214 = vmatprep.subr.bf16.mxu0 %v3795_v2  ;;  %v4528_v20 = vpack.c.bf16 %v562_v17, %v561_v16  ;;  %v3806_v21 = vld [vmem:[#allocation7 + $0x28] sm:$0xff]   ;;  %v4530_v22 = vpack.c.bf16 %v564_v19, %v563_v18  ;;  %v566_v24 = vld [vmem:[#allocation10 + $0x38] sm:$0xff]  ;;  %v567_v25 = vld [vmem:[#allocation10 + $0x40] sm:$0xff]  ;;  %s538_s29 = sadd.s32 %s5887_s20, %s537_s12  ;;  %s544_s0 = scalar_lea.vmem [#allocation2], %s3065_s26 }
  0xb0   : >> { %v568_v26 = vld [vmem:[#allocation10 + $0x48] sm:$0xff]  ;;  %v4534_v27 = vpack.c.bf16 %v566_v24, %v565_v23  ;;  %v569_v29 = vld [vmem:[#allocation10 + $0x50] sm:$0xff]  ;;  %v570_v30 = vld [vmem:[#allocation10 + $0x58] sm:$0xff]  ;;  %s3064_s16 = sshll.u32 %s538_s29, 10  ;;  %s553_s23 = sshll.u32 %s544_s0, 4  ;;  %s554_s23 = int_to_ptr.vmem [resolvable:$true] %s553_s23 }
  0xb1   : >> { %3245 = vmatpush3.bf16.msra.mxu1 %v3802_v9  ;;  %v4536_v28 = vpack.c.bf16 %v568_v26, %v567_v25  ;;  %v571_v31 = vld [vmem:[#allocation10 + $0x60] sm:$0xff]  ;;  %v572_v32 = vld [vmem:[#allocation10 + $0x68] sm:$0xff]  ;;  %v4540_v33 = vpack.c.bf16 %v570_v30, %v569_v29  ;;  %v573_v35 = vld [vmem:[#allocation10 + $0x70] sm:$0xff]  ;;  %s541_s30 = scalar_lea.hbm %s5816_s1, %s3064_s16  ;;  %s545_s17 = scalar_lea.sflag [#allocation3], %s535_s21 }
  0xb2   : >> { %3215 = vmatpush3.bf16.msra.mxu0 %v3795_v2  ;;  %3246 = vmatprep.subr.bf16.mxu1 %v3803_v11  ;;  %v4542_v34 = vpack.c.bf16 %v572_v32, %v571_v31  ;;  %v574_v36 = vld [vmem:[#allocation10 + $0x78] sm:$0xff]  ;;  %v3807_v38 = vld [vmem:[#allocation7 + $0x30] sm:$0xff]   ;;  %v1105_v41 = vld [vmem:[%s5885_s5] sm:$0xff]  ;;  %p4124_p0 = scmp.lt.u32.totalorder %s541_s30, %s5816_s1 }
  0xb3   : >> { %3216 = vmatprep.subr.bf16.mxu0 %v3796_v3  ;;  %v4546_v37 = vpack.c.bf16 %v574_v36, %v573_v35  ;;  %v3808_v39 = vld [vmem:[#allocation7 + $0x38] sm:$0xff]   ;;  %v1072_v42 = vld [vmem:[%s5886_s4] sm:$0xff]  ;;  %v1106_v43 = vld [vmem:[%s5885_s5 + $0x8] sm:$0xff]  ;;  %vm1121_vm0 = vcmp.lt.s32.totalorder %v4565_v44, %v1105_v41 }
  0xb4   : >> { %v1073_v45 = vld [vmem:[%s5886_s4 + $0x8] sm:$0xff]  ;;  %v1089_v46 = vadd.s32 %v4565_v44, %v1072_v42  ;;  %vm1122_vm1 = vcmp.lt.s32.totalorder %v4565_v44, %v1106_v43  ;;  %v1203_v47 = vsel %vm1121_vm0, 1, %v4232_v40  ;;  %v1075_v50 = vld [vmem:[%s5886_s4 + $0x18] sm:$0xff]  ;;  %v1074_v51 = vld [vmem:[%s5886_s4 + $0x10] sm:$0xff] }
  0xb5   : >> { %3247 = vmatpush3.bf16.msra.mxu1 %v3803_v11  ;;  %1220 = vperm.xlu1 %3792, %v1203_v47   ;;  %v1090_v48 = vadd.s32 %v4565_v44, %v1073_v45  ;;  %v1204_v49 = vsel %vm1122_vm1, 1, %v4232_v40  ;;  %v1108_v52 = vld [vmem:[%s5885_s5 + $0x18] sm:$0xff]  ;;  %v1107_v53 = vld [vmem:[%s5885_s5 + $0x10] sm:$0xff]  ;;  %v1092_v54 = vadd.s32 %v4565_v44, %v1075_v50  ;;  %v1091_v55 = vadd.s32 %v4565_v44, %v1074_v51  ;;  %v1077_v58 = vld [vmem:[%s5886_s4 + $0x28] sm:$0xff] }
  0xb6   : >> { %3217 = vmatpush3.bf16.msra.mxu0 %v3796_v3  ;;  %3248 = vmatprep.subr.bf16.mxu1 %v3804_v13  ;;  %vm1124_vm2 = vcmp.lt.s32.totalorder %v4565_v44, %v1108_v52  ;;  %vm1123_vm3 = vcmp.lt.s32.totalorder %v4565_v44, %v1107_v53  ;;  %v1076_v59 = vld [vmem:[%s5886_s4 + $0x20] sm:$0xff]  ;;  %v1110_v60 = vld [vmem:[%s5885_s5 + $0x28] sm:$0xff]  ;;  %v1094_v62 = vadd.s32 %v4565_v44, %v1077_v58  ;;  %v1079_v2 = vld [vmem:[%s5886_s4 + $0x38] sm:$0xff] }
  0xb7   : >> { %3218 = vmatprep.subr.bf16.mxu0 %v3797_v7  ;;  %1140 = vperm.xlu0 %3791, %v1089_v46   ;;  %v1206_v56 = vsel %vm1124_vm2, 1, %v4232_v40  ;;  %v1205_v57 = vsel %vm1123_vm3, 1, %v4232_v40  ;;  %v1109_v61 = vld [vmem:[%s5885_s5 + $0x20] sm:$0xff]  ;;  %v1093_v63 = vadd.s32 %v4565_v44, %v1076_v59  ;;  %vm1126_vm4 = vcmp.lt.s32.totalorder %v4565_v44, %v1110_v60  ;;  %v1078_v3 = vld [vmem:[%s5886_s4 + $0x30] sm:$0xff]  ;;  %v1112_v4 = vld [vmem:[%s5885_s5 + $0x38] sm:$0xff] }
  0xb8   : >> { %vm1125_vm5 = vcmp.lt.s32.totalorder %v4565_v44, %v1109_v61  ;;  %v1208_v0 = vsel %vm1126_vm4, 1, %v4232_v40  ;;  %v1111_v5 = vld [vmem:[%s5885_s5 + $0x30] sm:$0xff]  ;;  %v1095_v8 = vadd.s32 %v4565_v44, %v1078_v3  ;;  %vm1128_vm6 = vcmp.lt.s32.totalorder %v4565_v44, %v1112_v4  ;;  %v1081_v11 = vld [vmem:[%s5886_s4 + $0x48] sm:$0xff]  ;;  %v1083_v19 = vld [vmem:[%s5886_s4 + $0x58] sm:$0xff] }
  0xb9   : >> { %3249 = vmatpush3.bf16.msra.mxu1 %v3804_v13  ;;  %1223 = vperm.xlu1 %3792, %v1204_v49   ;;  %v1207_v1 = vsel %vm1125_vm5, 1, %v4232_v40  ;;  %vm1127_vm7 = vcmp.lt.s32.totalorder %v4565_v44, %v1111_v5  ;;  %v1210_v9 = vsel %vm1128_vm6, 1, %v4232_v40  ;;  %v1114_v13 = vld [vmem:[%s5885_s5 + $0x48] sm:$0xff]  ;;  %v1116_v23 = vld [vmem:[%s5885_s5 + $0x58] sm:$0xff]  ;;  %v1115_v24 = vld [vmem:[%s5885_s5 + $0x50] sm:$0xff]  ;;  %v1100_v25 = vadd.s32 %v4565_v44, %v1083_v19 }
  0xba   : >> { %3219 = vmatpush3.bf16.msra.mxu0 %v3797_v7  ;;  %3250 = vmatprep.subr.bf16.mxu1 %v3805_v15  ;;  %v1096_v7 = vadd.s32 %v4565_v44, %v1079_v2  ;;  %vm1130_vm8 = vcmp.lt.s32.totalorder %v4565_v44, %v1114_v13  ;;  %vm1132_vm10 = vcmp.lt.s32.totalorder %v4565_v44, %v1116_v23  ;;  %v1085_v31 = vld [vmem:[%s5886_s4 + $0x68] sm:$0xff]  ;;  %v1084_v32 = vld [vmem:[%s5886_s4 + $0x60] sm:$0xff]  ;;  %v1087_v43 = vld [vmem:[%s5886_s4 + $0x78] sm:$0xff] }
  0xbb   : >> { %3220 = vmatprep.subr.bf16.mxu0 %v3798_v10  ;;  %1143 = vperm.xlu0 %3791, %v1090_v48   ;;  %v1212_v17 = vsel %vm1130_vm8, 1, %v4232_v40  ;;  %vm1131_vm11 = vcmp.lt.s32.totalorder %v4565_v44, %v1115_v24  ;;  %v1214_v29 = vsel %vm1132_vm10, 1, %v4232_v40  ;;  %v1118_v35 = vld [vmem:[%s5885_s5 + $0x68] sm:$0xff]  ;;  %v1117_v36 = vld [vmem:[%s5885_s5 + $0x60] sm:$0xff]  ;;  %v1086_v45 = vld [vmem:[%s5886_s4 + $0x70] sm:$0xff]  ;;  %v1104_v48 = vadd.s32 %v4565_v44, %v1087_v43 }
  0xbc   : >> { %v1213_v30 = vsel %vm1131_vm11, 1, %v4232_v40  ;;  %vm1134_vm12 = vcmp.lt.s32.totalorder %v4565_v44, %v1118_v35  ;;  %vm1133_vm13 = vcmp.lt.s32.totalorder %v4565_v44, %v1117_v36  ;;  %v1120_v46 = vld [vmem:[%s5885_s5 + $0x78] sm:$0xff]  ;;  %v1119_v47 = vld [vmem:[%s5885_s5 + $0x70] sm:$0xff]  ;;  %v1103_v49 = vadd.s32 %v4565_v44, %v1086_v45  ;;  %v2691_v50 = vld [vmem:[%s5821_s6 + $0x8] sm:$0xff] }
  0xbd   : >> { %3251 = vmatpush3.bf16.msra.mxu1 %v3805_v15  ;;  %1149 = vperm.xlu1 %3792, %v1092_v54   ;;  %v1098_v15 = vadd.s32 %v4565_v44, %v1081_v11  ;;  %v1216_v41 = vsel %vm1134_vm12, 1, %v4232_v40  ;;  %v1215_v42 = vsel %vm1133_vm13, 1, %v4232_v40  ;;  %vm1136_vm14 = vcmp.lt.s32.totalorder %v4565_v44, %v1120_v46  ;;  %v2690_v51 = vld [vmem:[%s5821_s6] sm:$0xff]  ;;  %v2693_v54 = vld [vmem:[%s5821_s6 + $0x18] sm:$0xff]  ;;  %v2695_v58 = vld [vmem:[%s5821_s6 + $0x28] sm:$0xff] }
  0xbe   : >> { %3221 = vmatpush3.bf16.msra.mxu0 %v3798_v10  ;;  %3252 = vmatprep.subr.bf16.mxu1 %v3806_v21  ;;  %v1209_v10 = vsel %vm1127_vm7, 1, %v4232_v40  ;;  %vm1135_vm15 = vcmp.lt.s32.totalorder %v4565_v44, %v1119_v47  ;;  %v1218_v52 = vsel %vm1136_vm14, 1, %v4232_v40  ;;  %vm2707_vm0 = vcmp.eq.s32.totalorder %v2691_v50, %v4565_v44  ;;  %v2694_v59 = vld [vmem:[%s5821_s6 + $0x20] sm:$0xff]  ;;  %v2699_v2 = vld [vmem:[%s5821_s6 + $0x48] sm:$0xff] }
  0xbf   : >> { %3222 = vmatprep.subr.bf16.mxu0 %v3799_v12  ;;  %1146 = vperm.xlu0 %3791, %v1091_v55   ;;  %v1217_v53 = vsel %vm1135_vm15, 1, %v4232_v40  ;;  %vm2706_vm1 = vcmp.eq.s32.totalorder %v2690_v51, %v4565_v44  ;;  %v2692_v55 = vld [vmem:[%s5821_s6 + $0x10] sm:$0xff]  ;;  %vm2709_vm2 = vcmp.eq.s32.totalorder %v2693_v54, %v4565_v44  ;;  %vm2711_vm4 = vcmp.eq.s32.totalorder %v2695_v58, %v4565_v44  ;;  %v2698_v3 = vld [vmem:[%s5821_s6 + $0x40] sm:$0xff]  ;;  %v2703_v11 = vld [vmem:[%s5821_s6 + $0x68] sm:$0xff] }
  0xc0   : >> { %vm2708_vm3 = vcmp.eq.s32.totalorder %v2692_v55, %v4565_v44  ;;  %v2725_v60 = vsel %vm2709_vm2, 1, %v4232_v40  ;;  %vm2710_vm5 = vcmp.eq.s32.totalorder %v2694_v59, %v4565_v44  ;;  %vm2715_vm8 = vcmp.eq.s32.totalorder %v2699_v2, %v4565_v44 }
  0xc1   : >> { %3253 = vmatpush3.bf16.msra.mxu1 %v3806_v21  ;;  %1229 = vperm.xlu1 %3792, %v1206_v56   ;;  %v1082_v21 = vld [vmem:[%s5886_s4 + $0x50] sm:$0xff]  ;;  %v2723_v56 = vsel %vm2707_vm0, 1, %v4232_v40  ;;  %v2724_v61 = vsel %vm2708_vm3, 1, %v4232_v40  ;;  %vm2719_vm12 = vcmp.eq.s32.totalorder %v2703_v11, %v4565_v44 }
  0xc2   : >> { %3223 = vmatpush3.bf16.msra.mxu0 %v3799_v12  ;;  %3254 = vmatprep.subr.bf16.mxu1 %v3807_v38  ;;  %v1080_v12 = vld [vmem:[%s5886_s4 + $0x40] sm:$0xff]  ;;  %v1099_v26 = vadd.s32 %v4565_v44, %v1082_v21  ;;  %s4119_s4 = scalar_lea.hbm %s541_s30, 1024 }
  0xc3   : >> { %3224 = vmatprep.subr.bf16.mxu0 %v3800_v14  ;;  %1226 = vperm.xlu0 %3791, %v1205_v57   ;;  %v1097_v16 = vadd.s32 %v4565_v44, %v1080_v12  ;;  %v2722_v57 = vsel %vm2706_vm1, 1, %v4232_v40  ;;  %v2702_v12 = vld [vmem:[%s5821_s6 + $0x60] sm:$0xff]  ;;  %p4120_p11 = scmp.ne.s32.totalorder %s541_s30, %s4119_s4  ;;  %p4127_p9 = scmp.lt.u32.totalorder %s4119_s4, %s541_s30 }
  0xc4   : >> { %vm2718_vm13 = vcmp.eq.s32.totalorder %v2702_v12, %v4565_v44 }
  0xc5   : >> { %3255 = vmatpush3.bf16.msra.mxu1 %v3807_v38  ;;  %1155 = vperm.xlu1 %3792, %v1094_v62   ;;  %v1102_v38 = vadd.s32 %v4565_v44, %v1085_v31  ;;  %v2697_v62 = vld [vmem:[%s5821_s6 + $0x38] sm:$0xff]  ;;  %v2734_v19 = vsel %vm2718_vm13, 1, %v4232_v40  ;;  %p4121_p12 = pnand %p4120_p11, %p3742_p8 }
  0xc6   : >> { %3225 = vmatpush3.bf16.msra.mxu0 %v3800_v14  ;;  %3256 = vmatprep.subr.bf16.mxu1 %v3808_v39  ;;  %v1113_v14 = vld [vmem:[%s5885_s5 + $0x40] sm:$0xff]  ;;  %vm2713_vm6 = vcmp.eq.s32.totalorder %v2697_v62, %v4565_v44  ;;  %s5888_s5 = scalar_lea.hbm %s5816_s1, 8192 }
  0xc7   : >> { %1152 = vperm.xlu0 %3791, %v1093_v63   ;;  %vm1129_vm9 = vcmp.lt.s32.totalorder %v4565_v44, %v1113_v14  ;;  %v2696_v63 = vld [vmem:[%s5821_s6 + $0x30] sm:$0xff]  ;;  %v2729_v4 = vsel %vm2713_vm6, 1, %v4232_v40  ;;  %p4122_p6 = pneg %p4121_p12  ;;  %p4125_p1 = scmp.lt.u32.totalorder %s5888_s5, %s4119_s4 }
  0xc8   : >> { %v1211_v18 = vsel %vm1129_vm9, 1, %v4232_v40  ;;  %vm2712_vm7 = vcmp.eq.s32.totalorder %v2696_v63, %v4565_v44  ;;  %vm2714_vm9 = vcmp.eq.s32.totalorder %v2698_v3, %v4565_v44 }
  0xc9   : >> { %3227 = vmatmul.mubr.bf16.vlgmr.msra.gmra.mrb[0].mxu0 %v4528_v20  ;;  %3257 = vmatpush3.bf16.msra.mxu1 %v3808_v39  ;;  %v1101_v39 = vadd.s32 %v4565_v44, %v1084_v32  ;;  %v2728_v5 = vsel %vm2712_vm7, 1, %v4232_v40  ;;  %p4126_p4 = por %p4125_p1, %p4124_p0 }
  0xca   : >> { %3230 = vmatprep.mubr.bf16.mxu0 %v4530_v22  ;;  %3306 = vmatprep.subr.bf16.mxu1 %v4525_v6 }
  0xcb   : >> { %1235 = vperm.xlu1 %3792, %v1208_v0   ;;  %1232 = vperm.xlu0 %3791, %v1207_v1   ;;  %v2727_v0 = vsel %vm2711_vm4, 1, %v4232_v40  ;;  %v2726_v1 = vsel %vm2710_vm5, 1, %v4232_v40  ;;  %p4128_p2 = por %p4127_p9, %p4126_p4 }
  0xcd   : >> { %p4129_p3 = pnand %p4128_p2, %p4122_p6 }
  0xcf   : >> { %1161 = vperm.xlu1 %3792, %v1096_v7   ;;  %1158 = vperm.xlu0 %3791, %v1095_v8   ;;  %v2701_v7 = vld [vmem:[%s5821_s6 + $0x58] sm:$0xff]  ;;  %v2700_v8 = vld [vmem:[%s5821_s6 + $0x50] sm:$0xff] }
  0xd0   : >> { %vm2717_vm10 = vcmp.eq.s32.totalorder %v2701_v7, %v4565_v44  ;;  %vm2716_vm11 = vcmp.eq.s32.totalorder %v2700_v8, %v4565_v44 }
  0xd1   : >> { %3231 = vmatmul.mubr.bf16.gmra.mrb[4].mxu0 %v4534_v27  ;;  %v2733_v13 = vsel %vm2717_vm10, 1, %v4232_v40  ;;  %v2732_v14 = vsel %vm2716_vm11, 1, %v4232_v40 }
  0xd2   : >> { %3234 = vmatprep.mubr.bf16.mxu0 %v4536_v28 }
  0xd3   : >> { %1241 = vperm.xlu1 %3792, %v1210_v9   ;;  %1238 = vperm.xlu0 %3791, %v1209_v10   ;;  %v2731_v9 = vsel %vm2715_vm8, 1, %v4232_v40  ;;  %v2730_v10 = vsel %vm2714_vm9, 1, %v4232_v40 }
  0xd7   : >> { %1167 = vperm.xlu1 %3792, %v1098_v15   ;;  %1164 = vperm.xlu0 %3791, %v1097_v16   ;;  %v2705_v15 = vld [vmem:[%s5821_s6 + $0x78] sm:$0xff]  ;;  %v2704_v16 = vld [vmem:[%s5821_s6 + $0x70] sm:$0xff] }
  0xd8   : >> { %vm2721_vm14 = vcmp.eq.s32.totalorder %v2705_v15, %v4565_v44  ;;  %vm2720_vm15 = vcmp.eq.s32.totalorder %v2704_v16, %v4565_v44 }
  0xd9   : >> { %3235 = vmatmul.mubr.bf16.gmra.mrb[8].mxu0 %v4540_v33 }
  0xda   : >> { %3238 = vmatprep.mubr.bf16.mxu0 %v4542_v34 }
  0xdb   : >> { %1247 = vperm.xlu1 %3792, %v1212_v17   ;;  %1244 = vperm.xlu0 %3791, %v1211_v18   ;;  %v4779_v17 = vld [vmem:[%s5823_s8] ss:$0 sm:$0xff]  ;;  %v2735_v18 = vsel %vm2719_vm12, 1, %v4232_v40 }
  0xdf   : >> { %1173 = vperm.xlu1 %3792, %v1100_v25   ;;  %1170 = vperm.xlu0 %3791, %v1099_v26  }
  0xe1   : >> { %3239 = vmatmul.mubr.bf16.gmra.mrb[12].mxu0 %v4546_v37 }
  0xe3   : >> { %1253 = vperm.xlu1 %3792, %v1214_v29   ;;  %1250 = vperm.xlu0 %3791, %v1213_v30   ;;  %v2737_v29 = vsel %vm2721_vm14, 1, %v4232_v40  ;;  %v2736_v30 = vsel %vm2720_vm15, 1, %v4232_v40 }
  0xe7   : >> { %1179 = vperm.xlu1 %3792, %v1102_v38   ;;  %1176 = vperm.xlu0 %3791, %v1101_v39  }
  0xeb   : >> { %1259 = vperm.xlu1 %3792, %v1216_v41   ;;  %1256 = vperm.xlu0 %3791, %v1215_v42  }
  0xef   : >> { %1185 = vperm.xlu1 %3792, %v1104_v48   ;;  %1182 = vperm.xlu0 %3791, %v1103_v49  }
  0xf3   : >> { %1265 = vperm.xlu1 %3792, %v1218_v52   ;;  %1262 = vperm.xlu0 %3791, %v1217_v53  }
  0xf7   : >> { %2742 = vperm.xlu1 %3792, %v2723_v56   ;;  %2739 = vperm.xlu0 %3791, %v2722_v57  }
  0xfb   : >> { %2748 = vperm.xlu1 %3792, %v2725_v60   ;;  %2745 = vperm.xlu0 %3791, %v2724_v61  }
  0xff   : >> { %2754 = vperm.xlu1 %3792, %v2727_v0   ;;  %2751 = vperm.xlu0 %3791, %v2726_v1  }
 0x103   : >> { %2760 = vperm.xlu1 %3792, %v2729_v4   ;;  %2757 = vperm.xlu0 %3791, %v2728_v5  }
 0x107   : >> { %2766 = vperm.xlu1 %3792, %v2731_v9   ;;  %2763 = vperm.xlu0 %3791, %v2730_v10  }
 0x10b   : >> { %2772 = vperm.xlu1 %3792, %v2733_v13   ;;  %2769 = vperm.xlu0 %3791, %v2732_v14  }
 0x10f   : >> { %2778 = vperm.xlu1 %3792, %v2735_v18   ;;  %2775 = vperm.xlu0 %3791, %v2734_v19  }
 0x113   : >> { %2784 = vperm.xlu1 %3792, %v2737_v29   ;;  %2781 = vperm.xlu0 %3791, %v2736_v30  }
 0x19c   : >> { %v3228_v21 = vpop.f32.mrb[0].mxu0 }
 0x19d   : >> { %v697_v23 = vadd.f32 %v3228_v21, %v4779_v17  ;;  %v688_v24 = vpop.f32.mrb[1].mxu0 }
 0x19e   : >> { %v689_v25 = vadd.f32 %v4779_v17, %v688_v24  ;;  %v3229_v26 = vpop.f32.mrb[2].mxu0 }
 0x19f   : >> { %v700_v31 = vadd.f32 %v3229_v26, %v4779_v17  ;;  %v691_v32 = vpop.f32.mrb[3].mxu0  ;;  %v753_v36 = vmax.f32 %v697_v23, 0.0 }
 0x1a0   : >> { %v692_v35 = vadd.f32 %v4779_v17, %v691_v32  ;;  %v751_v39 = vmax.f32 %v689_v25, 0.0 }
 0x1a1   : >> { %v754_v38 = vmax.f32 %v700_v31, 0.0 }
 0x1a2   : >> { %v752_v41 = vmax.f32 %v692_v35, 0.0 }
 0x1a3   : >> { %v768_v42 = vpack.c.bf16 %v754_v38, %v753_v36 }
 0x1a4   : >> { %v3232_v43 = vpop.f32.mrb[4].mxu0  ;;  %v767_v45 = vpack.c.bf16 %v752_v41, %v751_v39 }
 0x1a5   : >> { %v713_v46 = vadd.f32 %v3232_v43, %v4779_v17  ;;  %v704_v47 = vpop.f32.mrb[5].mxu0 }
 0x1a6   : >> { %v705_v48 = vadd.f32 %v4779_v17, %v704_v47  ;;  %v3233_v49 = vpop.f32.mrb[6].mxu0  ;;  %3258 = vmatprep.mubr.bf16.mxu1 %v767_v45 }
 0x1a7   : >> { %v716_v50 = vadd.f32 %v3233_v49, %v4779_v17  ;;  %v707_v51 = vpop.f32.mrb[7].mxu0  ;;  %3259 = vmatmul.mubr.bf16.vlgmr.msra.gmra.mrb[0].mxu1 %v768_v42  ;;  %v757_v53 = vmax.f32 %v713_v46, 0.0 }
 0x1a8   : >> { %v708_v52 = vadd.f32 %v4779_v17, %v707_v51  ;;  %3307 = vmatpush3.bf16.msra.mxu1 %v4525_v6  ;;  %v755_v55 = vmax.f32 %v705_v48, 0.0 }
 0x1a9   : >> { %v758_v54 = vmax.f32 %v716_v50, 0.0  ;;  %3308 = vmatprep.subr.bf16.mxu1 %v4528_v20 }
 0x1aa   : >> { %v756_v56 = vmax.f32 %v708_v52, 0.0 }
 0x1ab   : >> { %v770_v57 = vpack.c.bf16 %v758_v54, %v757_v53 }
 0x1ac   : >> { %v769_v58 = vpack.c.bf16 %v756_v56, %v755_v55  ;;  %v3236_v59 = vpop.f32.mrb[8].mxu0  ;;  %3309 = vmatpush3.bf16.msra.mxu1 %v4528_v20 }
 0x1ad   : >> { %v729_v60 = vadd.f32 %v3236_v59, %v4779_v17  ;;  %v720_v61 = vpop.f32.mrb[9].mxu0  ;;  %3310 = vmatprep.subr.bf16.mxu1 %v4530_v22 }
 0x1ae   : >> { %v721_v62 = vadd.f32 %v4779_v17, %v720_v61  ;;  %v3237_v63 = vpop.f32.mrb[10].mxu0  ;;  %3262 = vmatprep.mubr.bf16.mxu1 %v769_v58 }
 0x1af   : >> { %v732_v6 = vadd.f32 %v3237_v63, %v4779_v17  ;;  %v723_v0 = vpop.f32.mrb[11].mxu0  ;;  %3263 = vmatmul.mubr.bf16.gmra.mrb[4].mxu1 %v770_v57  ;;  %v761_v2 = vmax.f32 %v729_v60, 0.0 }
 0x1b0   : >> { %v724_v1 = vadd.f32 %v4779_v17, %v723_v0  ;;  %3311 = vmatpush3.bf16.msra.mxu1 %v4530_v22  ;;  %v759_v20 = vmax.f32 %v721_v62, 0.0 }
 0x1b1   : >> { %v762_v3 = vmax.f32 %v732_v6, 0.0  ;;  %3312 = vmatprep.subr.bf16.mxu1 %v4534_v27 }
 0x1b2   : >> { %v760_v4 = vmax.f32 %v724_v1, 0.0 }
 0x1b3   : >> { %v772_v5 = vpack.c.bf16 %v762_v3, %v761_v2 }
 0x1b4   : >> { %v771_v7 = vpack.c.bf16 %v760_v4, %v759_v20  ;;  %v3240_v8 = vpop.f32.mrb[12].mxu0  ;;  %3313 = vmatpush3.bf16.msra.mxu1 %v4534_v27 }
 0x1b5   : >> { %v745_v9 = vadd.f32 %v3240_v8, %v4779_v17  ;;  %v736_v10 = vpop.f32.mrb[13].mxu0  ;;  %3314 = vmatprep.subr.bf16.mxu1 %v4536_v28 }
 0x1b6   : >> { %v737_v11 = vadd.f32 %v4779_v17, %v736_v10  ;;  %v3241_v12 = vpop.f32.mrb[14].mxu0  ;;  %3266 = vmatprep.mubr.bf16.mxu1 %v771_v7 }
 0x1b7   : >> { %v748_v22 = vadd.f32 %v3241_v12, %v4779_v17  ;;  %v739_v13 = vpop.f32.mrb[15].mxu0  ;;  %3267 = vmatmul.mubr.bf16.gmra.mrb[8].mxu1 %v772_v5  ;;  %v765_v15 = vmax.f32 %v745_v9, 0.0 }
 0x1b8   : >> { %v740_v14 = vadd.f32 %v4779_v17, %v739_v13  ;;  %3315 = vmatpush3.bf16.msra.mxu1 %v4536_v28  ;;  %v763_v27 = vmax.f32 %v737_v11, 0.0  ;;  %v4818_v28 = vpop.permute.xlu1 %1220  ;;  %v4820_v17 = vpop.permute.xlu0 %1140 }
 0x1b9   : >> { %v766_v16 = vmax.f32 %v748_v22, 0.0  ;;  %3316 = vmatprep.subr.bf16.mxu1 %v4540_v33 }
 0x1ba   : >> { %v764_v18 = vmax.f32 %v740_v14, 0.0 }
 0x1bb   : >> { %v774_v19 = vpack.c.bf16 %v766_v16, %v765_v15 }
 0x1bc   : >> { %v773_v21 = vpack.c.bf16 %v764_v18, %v763_v27  ;;  %3317 = vmatpush3.bf16.msra.mxu1 %v4540_v33  ;;  %v4822_v23 = vpop.permute.xlu1 %1223  ;;  %v4824_v33 = vpop.permute.xlu0 %1143 }
 0x1bd   : >> { %3318 = vmatprep.subr.bf16.mxu1 %v4542_v34 }
 0x1be   : >> { %3270 = vmatprep.mubr.bf16.mxu1 %v773_v21 }
 0x1bf   : >> { %3271 = vmatmul.mubr.bf16.gmra.mrb[12].mxu1 %v774_v19 }
 0x1c0   : >> { %3319 = vmatpush3.bf16.msra.mxu1 %v4542_v34  ;;  %v4826_v24 = vpop.permute.xlu1 %1149  ;;  %v4828_v34 = vpop.permute.xlu0 %1146 }
 0x1c1   : >> { %3320 = vmatprep.subr.bf16.mxu1 %v4546_v37 }
 0x1c4   : >> { %3321 = vmatpush3.bf16.msra.mxu1 %v4546_v37  ;;  %v4830_v25 = vpop.permute.xlu1 %1229  ;;  %v4832_v26 = vpop.permute.xlu0 %1226 }
 0x1c8   : >> { %v4834_v37 = vpop.permute.xlu1 %1155  ;;  %v4836_v29 = vpop.permute.xlu0 %1152 }
 0x1cc   : >> { %v4838_v30 = vpop.permute.xlu1 %1235  ;;  %v4840_v31 = vpop.permute.xlu0 %1232 }
 0x1d0   : >> { %v4842_v32 = vpop.permute.xlu1 %1161  ;;  %v4844_v35 = vpop.permute.xlu0 %1158 }
 0x1d4   : >> { %v4857_v36 = vpop.permute.xlu1 %1241  ;;  %v4860_v38 = vpop.permute.xlu0 %1238 }
 0x1d5   : >> { %4132 = shalt.err (!%p4129_p3)  }
 0x1d6   : >> { %s4133_s0 = scalar_lea.vmem %s554_s23, 1024  ;;  %p4140_p13 = scmp.lt.s32.totalorder %s554_s23, %s4445_s2 }
 0x1d7   : >> { %p4134_p11 = scmp.ne.s32.totalorder %s554_s23, %s4133_s0  ;;  %s5889_s21 = scalar_lea.vmem %s4445_s2, 2048 }
 0x1d8   : >> { %p4141_p10 = scmp.lt.s32.totalorder %s5889_s21, %s4133_s0 }
 0x1d9   : >> { %p4135_p12 = pnand %p4134_p11, %p3742_p8 }
 0x1da   : >> { %p4142_p7 = por %p4141_p10, %p4140_p13 }
 0x1db   : >> { %p4136_p5 = pneg %p4135_p12 }
 0x1dd   : >> { %p4143_p0 = pnand %p4142_p7, %p4136_p5 }
 0x1df   : >> { %4146 = shalt.err (!%p4143_p0)  }
 0x1e0   : >> { %3721 = dma.hbm_to_vmem [thread:$0]  (%p3742_p8), %s541_s30, 1024, %s554_s23, %s545_s17  ;;  %v1168_v39 = vpop.permute.xlu1 %1167  ;;  %v1165_v41 = vpop.permute.xlu0 %1164  ;;  %v1137_v46 = vlaneseq  ;;  %vm1267_vm0 = vcmp.eq.s32.totalorder %v4818_v28, 1  ;;  %vm1268_vm2 = vcmp.eq.s32.totalorder %v4822_v23, 1  ;;  %vm1270_vm5 = vcmp.eq.s32.totalorder %v4830_v25, 1  ;;  %v1422_v62 = vld [vmem:[%s5826_s11 + $0x10] sm:$0xff]  ;;  %v1425_v63 = vld [vmem:[%s5826_s11 + $0x28] sm:$0xff] }
 0x1e1   : >> { %v959_v42 = vld [vmem:[%s4522_s25] sm:$0xff]  ;;  %vm1269_vm8 = vcmp.eq.s32.totalorder %v4832_v26, 1  ;;  %vm1272_vm11 = vcmp.eq.s32.totalorder %v4838_v30, 1  ;;  %vm1271_vm14 = vcmp.eq.s32.totalorder %v4840_v31, 1  ;;  %v5844_v60 = vmov 1.0|1.0   ;;  %s6004_s23 = smov %s4847_s3 }
 0x1e2   : >> { %3290 = vmatprep.mubr.bf16.mxu0 %v959_v42  ;;  %v4883_v47 = vand.u32 127, %v1137_v46  ;;  %v3514_v1 = vpack.c.bf16 %v1425_v63, %v1422_v62  ;;  %v1428_v20 = vld [vmem:[%s5826_s11 + $0x40] sm:$0xff]  ;;  %v1431_v4 = vld [vmem:[%s5826_s11 + $0x58] sm:$0xff]  ;;  %v1434_v8 = vld [vmem:[%s5826_s11 + $0x70] sm:$0xff]  ;;  %s5921_s17 = sld [smem:[#allocation52_spill]]  ;;  %s5924_s29 = sld [smem:[#allocation48_spill]] }
 0x1e3   : >> { %v3518_v7 = vpack.c.bf16 %v1431_v4, %v1428_v20  ;;  %v1437_v9 = vld [vmem:[%s5826_s11 + $0x88] sm:$0xff]  ;;  %v1440_v12 = vld [vmem:[%s5826_s11 + $0xa0] sm:$0xff]  ;;  %v1443_v22 = vld [vmem:[%s5826_s11 + $0xb8] sm:$0xff]  ;;  %s5925_s4 = sld [smem:[#allocation49_spill]]  ;;  %s5926_s26 = sld [smem:[#allocation53_spill]] }
 0x1e4   : >> { %v1248_v43 = vpop.permute.xlu1 %1247  ;;  %v1245_v45 = vpop.permute.xlu0 %1244  ;;  %vm1187_vm1 = vcmp.eq.s32.totalorder %v4883_v47, %v4820_v17  ;;  %vm1188_vm3 = vcmp.eq.s32.totalorder %v4883_v47, %v4824_v33  ;;  %vm1190_vm4 = vcmp.eq.s32.totalorder %v4883_v47, %v4826_v24  ;;  %vm1189_vm7 = vcmp.eq.s32.totalorder %v4883_v47, %v4828_v34  ;;  %3515 = vmatprep.subr.bf16.mxu1 %v3514_v1  ;;  %v1446_v19 = vld [vmem:[%s5826_s11 + $0xd0] sm:$0xff]  ;;  %v1449_v21 = vld [vmem:[%s5826_s11 + $0xe8] sm:$0xff]  ;;  %v1452_v33 = vld [vmem:[%s5826_s11 + $0x100] sm:$0xff]  ;;  %p6005_p5 = scmp.ge.s32.totalorder %s4847_s3, 4 }
 0x1e5   : >> { %vm4898_vm6 = vmand %vm1267_vm0, %vm1187_vm1  ;;  %vm1192_vm10 = vcmp.eq.s32.totalorder %v4883_v47, %v4834_v37  ;;  %vm1191_vm13 = vcmp.eq.s32.totalorder %v4883_v47, %v4836_v29  ;;  %v3522_v10 = vpack.c.bf16 %v1437_v9, %v1434_v8  ;;  %v3526_v27 = vpack.c.bf16 %v1443_v22, %v1440_v12  ;;  %v1455_v24 = vld [vmem:[%s5826_s11 + $0x118] sm:$0xff]  ;;  %v1458_v25 = vld [vmem:[%s5826_s11 + $0x130] sm:$0xff]  ;;  %s6006_s16 = sld [smem:[#allocation25_spill]] (%p6005_p5)  ;;  %p6009_p7 = scmp.ne.s32.totalorder (%p6005_p5), %s4447_s19, %s4482_s24 }
 0x1e6   : >> { %vm4905_vm9 = vmand %vm1268_vm2, %vm1188_vm3  ;;  %v3530_v23 = vpack.c.bf16 %v1449_v21, %v1446_v19  ;;  %v3534_v34 = vpack.c.bf16 %v1455_v24, %v1452_v33  ;;  %v1461_v26 = vld [vmem:[%s5826_s11 + $0x148] sm:$0xff]  ;;  %v2981_v29 = vld [vmem:[%s5825_s10] ss:$0 sm:$0xff]  ;;  %p6010_p6 = scmp.ne.s32.totalorder (%p6005_p5), %s5883_s14, 0 }
 0x1e7   : >> { %vm4912_vm12 = vmand %vm1270_vm5, %vm1190_vm4  ;;  %vm1194_vm4 = vcmp.eq.s32.totalorder %v4883_v47, %v4842_v32  ;;  %vm1274_vm5 = vcmp.eq.s32.totalorder %v4857_v36, 1  ;;  %v3538_v37 = vpack.c.bf16 %v1461_v26, %v1458_v25  ;;  %v1421_v25 = vld [vmem:[%s5826_s11 + $0x8] sm:$0xff]  ;;  %v1424_v26 = vld [vmem:[%s5826_s11 + $0x20] sm:$0xff] }
 0x1e8   : >> { %v4885_v48 = vpop.permute.xlu1 %1173  ;;  %v4887_v49 = vpop.permute.xlu0 %1170  ;;  %vm4919_vm15 = vmand %vm1269_vm8, %vm1189_vm7  ;;  %vm1193_vm8 = vcmp.eq.s32.totalorder %v4883_v47, %v4844_v35 }
 0x1e9   : >> { %vm4923_vm0 = vmand %vm1272_vm11, %vm1192_vm10  ;;  %vm1276_vm10 = vcmp.eq.s32.totalorder %v1248_v43, 1 }
 0x1ea   : >> { %vm4927_vm1 = vmand %vm1271_vm14, %vm1191_vm13  ;;  %vm1275_vm13 = vcmp.eq.s32.totalorder %v1245_v45, 1 }
 0x1eb   : >> { %vm2990_vm2 = vmpackc.low %vm4905_vm9, %vm4898_vm6  ;;  %vm1273_vm6 = vcmp.eq.s32.totalorder %v4860_v38, 1  ;;  %vm1196_vm9 = vcmp.eq.s32.totalorder %v4883_v47, %v1168_v39  ;;  %s6007_s22 = sadd.s32 (%p6005_p5), 4294967295, %s6006_s16  }
 0x1ec   : >> { %v1254_v50 = vpop.permute.xlu1 %1253  ;;  %v1251_v52 = vpop.permute.xlu0 %1250  ;;  %vm2992_vm3 = vmpackc.low %vm4912_vm12, %vm4919_vm15  ;;  %3322 = vmatprep.mubr.msk.bf16.mxu1 %vm2990_vm2, %v5844_v60  ;;  %vm1195_vm12 = vcmp.eq.s32.totalorder %v4883_v47, %v1165_v41  ;;  %vm1198_vm2 = vcmp.eq.s32.totalorder %v4883_v47, %v4885_v48  ;;  %p5774_p13 = scmp.eq.s32.totalorder (%p6005_p5), %s6007_s22, 1 }
 0x1ed   : >> { %vm2994_vm7 = vmpackc.low %vm4923_vm0, %vm4927_vm1  ;;  %3323 = vmatmul.mubr.msk.bf16.vlgmr.msra.gmra.mrb[16].mxu1 %vm2992_vm3, %v5844_v60  ;;  %vm1278_vm3 = vcmp.eq.s32.totalorder %v1254_v50, 1 }
 0x1ee   : >> { %vm4951_vm11 = vmand %vm1274_vm5, %vm1194_vm4  ;;  %3326 = vmatprep.mubr.msk.bf16.mxu1 %vm2994_vm7, %v5844_v60  ;;  %3517 = vmatpush3.bf16.msra.mxu1 %v3514_v1  ;;  %vm1197_vm5 = vcmp.eq.s32.totalorder %v4883_v47, %v4887_v49  ;;  %vm1277_vm7 = vcmp.eq.s32.totalorder %v1251_v52, 1  ;;  %p4149_p8 = pnand (%p6005_p5), %p6009_p7, %p5774_p13 }
 0x1ef   : >> { %vm4963_vm14 = vmand %vm1273_vm6, %vm1193_vm8  ;;  %3519 = vmatprep.subr.bf16.mxu1 %v3518_v7 }
 0x1f0   : >> { %v1180_v58 = vpop.permute.xlu1 %1179  ;;  %v1177_v59 = vpop.permute.xlu0 %1176  ;;  %vm4968_vm15 = vmand %vm1276_vm10, %vm1196_vm9  ;;  %p4150_p10 = pneg (%p6005_p5), %p4149_p8 }
 0x1f1   : >> { %vm4978_vm0 = vmand %vm1275_vm13, %vm1195_vm12  ;;  %vm1200_vm8 = vcmp.eq.s32.totalorder %v4883_v47, %v1180_v58  ;;  %vm1199_vm10 = vcmp.eq.s32.totalorder %v4883_v47, %v1177_v59 }
 0x1f2   : >> { %vm2996_vm1 = vmpackc.low %vm4951_vm11, %vm4963_vm14  ;;  %3521 = vmatpush3.bf16.msra.mxu1 %v3518_v7  ;;  %p4157_p1 = pnand (%p6005_p5), %p4150_p10, %p6010_p6 }
 0x1f3   : >> { %vm2998_vm4 = vmpackc.low %vm4968_vm15, %vm4978_vm0  ;;  %3523 = vmatprep.subr.bf16.mxu1 %v3522_v10 }
 0x1f4   : >> { %v1260_v0 = vpop.permute.xlu1 %1259  ;;  %v1257_v3 = vpop.permute.xlu0 %1256  ;;  %vm5007_vm9 = vmand %vm1278_vm3, %vm1198_vm2 }
 0x1f5   : >> { %vm1280_vm6 = vcmp.eq.s32.totalorder %v1260_v0, 1  ;;  %vm1279_vm12 = vcmp.eq.s32.totalorder %v1257_v3, 1  ;;  %3327 = vmatmul.mubr.msk.bf16.gmra.mrb[20].mxu1 %vm2996_vm1, %v5844_v60  ;;  %vm5018_vm13 = vmand %vm1277_vm7, %vm1197_vm5 }
 0x1f6   : >> { %3330 = vmatprep.mubr.msk.bf16.mxu1 %vm2998_vm4, %v5844_v60  ;;  %vm5028_vm2 = vmand %vm1280_vm6, %vm1200_vm8  ;;  %3525 = vmatpush3.bf16.msra.mxu1 %v3522_v10 }
 0x1f7   : >> { %vm5032_vm11 = vmand %vm1279_vm12, %vm1199_vm10  ;;  %3527 = vmatprep.subr.bf16.mxu1 %v3526_v27 }
 0x1f8   : >> { %v1186_v11 = vpop.permute.xlu1 %1185  ;;  %v1183_v14 = vpop.permute.xlu0 %1182  ;;  %vm3000_vm14 = vmpackc.low %vm5007_vm9, %vm5018_vm13 }
 0x1f9   : >> { %vm3002_vm15 = vmpackc.low %vm5028_vm2, %vm5032_vm11  ;;  %vm1202_vm0 = vcmp.eq.s32.totalorder %v4883_v47, %v1186_v11  ;;  %vm1201_vm3 = vcmp.eq.s32.totalorder %v4883_v47, %v1183_v14 }
 0x1fa   : >> { %3529 = vmatpush3.bf16.msra.mxu1 %v3526_v27 }
 0x1fb   : >> { %3531 = vmatprep.subr.bf16.mxu1 %v3530_v23 }
 0x1fc   : >> { %v1266_v28 = vpop.permute.xlu1 %1265  ;;  %v1263_v17 = vpop.permute.xlu0 %1262 }
 0x1fd   : >> { %vm1282_vm1 = vcmp.eq.s32.totalorder %v1266_v28, 1  ;;  %vm1281_vm4 = vcmp.eq.s32.totalorder %v1263_v17, 1  ;;  %3331 = vmatmul.mubr.msk.bf16.gmra.mrb[24].mxu1 %vm3000_vm14, %v5844_v60 }
 0x1fe   : >> { %vm1298_vm5 = vmand %vm1282_vm1, %vm1202_vm0  ;;  %3334 = vmatprep.mubr.msk.bf16.mxu1 %vm3002_vm15, %v5844_v60  ;;  %3533 = vmatpush3.bf16.msra.mxu1 %v3530_v23 }
 0x1ff   : >> { %vm1297_vm7 = vmand %vm1281_vm4, %vm1201_vm3  ;;  %3535 = vmatprep.subr.bf16.mxu1 %v3534_v34 }
 0x200   : >> { %vm3004_vm8 = vmpackc.low %vm1298_vm5, %vm1297_vm7 }
 0x202   : >> { %3537 = vmatpush3.bf16.msra.mxu1 %v3534_v34 }
 0x203   : >> { %3539 = vmatprep.subr.bf16.mxu1 %v3538_v37 }
 0x205   : >> { %3335 = vmatmul.mubr.msk.bf16.gmra.mrb[28].mxu1 %vm3004_vm8, %v5844_v60 }
 0x206   : >> { %3541 = vmatpush3.bf16.msra.mxu1 %v3538_v37  ;;  %v3482_v37 = vpack.c.bf16 %v1424_v26, %v1421_v25  ;;  %v1796_v25 = vld [vmem:[#allocation9 + $0x28] sm:$0xff] }
 0x207   : >> { %v1792_v26 = vld [vmem:[#allocation9 + $0x8] sm:$0xff] }
 0x27a   : >> { %v3260_v30 = vpop.f32.mrb[0].mxu1 }
 0x27b   : >> { %v889_v31 = vadd.f32 %v3260_v30, %v2981_v29  ;;  %v880_v32 = vpop.f32.mrb[1].mxu1  ;;  %v1423_v30 = vld [vmem:[%s5826_s11 + $0x18] sm:$0xff] }
 0x27c   : >> { %v881_v35 = vadd.f32 %v2981_v29, %v880_v32  ;;  %v3261_v36 = vpop.f32.mrb[2].mxu1  ;;  %v1430_v32 = vld [vmem:[%s5826_s11 + $0x50] sm:$0xff] }
 0x27d   : >> { %v892_v38 = vadd.f32 %v3261_v36, %v2981_v29  ;;  %v883_v39 = vpop.f32.mrb[3].mxu1  ;;  %v945_v42 = vmax.f32 %v889_v31, 0.0  ;;  %v1427_v31 = vld [vmem:[%s5826_s11 + $0x38] sm:$0xff] }
 0x27e   : >> { %v884_v41 = vadd.f32 %v2981_v29, %v883_v39  ;;  %v943_v45 = vmax.f32 %v881_v35, 0.0  ;;  %v960_v35 = vld [vmem:[%s4522_s25 + $0x8] sm:$0xff]  ;;  %v3486_v39 = vpack.c.bf16 %v1430_v32, %v1427_v31 }
 0x27f   : >> { %v946_v43 = vmax.f32 %v892_v38, 0.0  ;;  %v961_v38 = vld [vmem:[%s4522_s25 + $0x10] sm:$0xff] }
 0x280   : >> { %v944_v47 = vmax.f32 %v884_v41, 0.0  ;;  %v1426_v41 = vld [vmem:[%s5826_s11 + $0x30] sm:$0xff] }
 0x281   : >> { %v968_v48 = vpack.c.bf16 %v946_v43, %v945_v42  ;;  %v1429_v42 = vld [vmem:[%s5826_s11 + $0x48] sm:$0xff] }
 0x282   : >> { %v967_v49 = vpack.c.bf16 %v944_v47, %v943_v45  ;;  %v3264_v50 = vpop.f32.mrb[4].mxu1  ;;  %v1433_v43 = vld [vmem:[%s5826_s11 + $0x68] sm:$0xff]  ;;  %v1436_v45 = vld [vmem:[%s5826_s11 + $0x80] sm:$0xff]  ;;  %v3488_v47 = vpack.c.bf16 %v1429_v42, %v1426_v41 }
 0x283   : >> { %v905_v51 = vadd.f32 %v3264_v50, %v2981_v29  ;;  %v896_v52 = vpop.f32.mrb[5].mxu1  ;;  %v1435_v50 = vld [vmem:[%s5826_s11 + $0x78] sm:$0xff] }
 0x284   : >> { %v897_v53 = vadd.f32 %v2981_v29, %v896_v52  ;;  %v3265_v54 = vpop.f32.mrb[6].mxu1  ;;  %3274 = vmatprep.subr.bf16.mxu0 %v967_v49  ;;  %v1442_v52 = vld [vmem:[%s5826_s11 + $0xb0] sm:$0xff] }
 0x285   : >> { %v908_v55 = vadd.f32 %v3265_v54, %v2981_v29  ;;  %v899_v56 = vpop.f32.mrb[7].mxu1  ;;  %3275 = vmatpush3.bf16.msra.mxu0 %v967_v49  ;;  %v949_v58 = vmax.f32 %v905_v51, 0.0  ;;  %v1432_v49 = vld [vmem:[%s5826_s11 + $0x60] sm:$0xff]  ;;  %v1439_v51 = vld [vmem:[%s5826_s11 + $0x98] sm:$0xff] }
 0x286   : >> { %v900_v57 = vadd.f32 %v2981_v29, %v899_v56  ;;  %3276 = vmatprep.subr.bf16.mxu0 %v968_v48  ;;  %v947_v61 = vmax.f32 %v897_v53, 0.0  ;;  %v962_v53 = vld [vmem:[%s4522_s25 + $0x18] sm:$0xff]  ;;  %v3492_v54 = vpack.c.bf16 %v1435_v50, %v1432_v49  ;;  %v3494_v56 = vpack.c.bf16 %v1442_v52, %v1439_v51 }
 0x287   : >> { %v950_v59 = vmax.f32 %v908_v55, 0.0  ;;  %v963_v55 = vld [vmem:[%s4522_s25 + $0x20] sm:$0xff] }
 0x288   : >> { %v948_v62 = vmax.f32 %v900_v57, 0.0  ;;  %v1438_v57 = vld [vmem:[%s5826_s11 + $0x90] sm:$0xff] }
 0x289   : >> { %v970_v63 = vpack.c.bf16 %v950_v59, %v949_v58  ;;  %3277 = vmatpush3.bf16.msra.mxu0 %v968_v48  ;;  %v3490_v48 = vpack.c.bf16 %v1436_v45, %v1433_v43  ;;  %v1441_v58 = vld [vmem:[%s5826_s11 + $0xa8] sm:$0xff] }
 0x28a   : >> { %v969_v6 = vpack.c.bf16 %v948_v62, %v947_v61  ;;  %v3268_v0 = vpop.f32.mrb[8].mxu1  ;;  %v1445_v59 = vld [vmem:[%s5826_s11 + $0xc8] sm:$0xff]  ;;  %v1448_v61 = vld [vmem:[%s5826_s11 + $0xe0] sm:$0xff]  ;;  %v3496_v62 = vpack.c.bf16 %v1441_v58, %v1438_v57 }
 0x28b   : >> { %v921_v1 = vadd.f32 %v3268_v0, %v2981_v29  ;;  %v912_v2 = vpop.f32.mrb[9].mxu1  ;;  %v1447_v0 = vld [vmem:[%s5826_s11 + $0xd8] sm:$0xff]  ;;  %v1799_v58 = vld [vmem:[#allocation9 + $0x40] sm:$0xff] }
 0x28c   : >> { %v913_v3 = vadd.f32 %v2981_v29, %v912_v2  ;;  %v3269_v20 = vpop.f32.mrb[10].mxu1  ;;  %3278 = vmatprep.subr.bf16.mxu0 %v969_v6  ;;  %v1454_v2 = vld [vmem:[%s5826_s11 + $0x110] sm:$0xff] }
 0x28d   : >> { %v924_v4 = vadd.f32 %v3269_v20, %v2981_v29  ;;  %v915_v5 = vpop.f32.mrb[11].mxu1  ;;  %3279 = vmatpush3.bf16.msra.mxu0 %v969_v6  ;;  %v953_v8 = vmax.f32 %v921_v1, 0.0  ;;  %v1444_v6 = vld [vmem:[%s5826_s11 + $0xc0] sm:$0xff]  ;;  %v1451_v1 = vld [vmem:[%s5826_s11 + $0xf8] sm:$0xff] }
 0x28e   : >> { %v916_v7 = vadd.f32 %v2981_v29, %v915_v5  ;;  %3280 = vmatprep.subr.bf16.mxu0 %v970_v63  ;;  %v951_v10 = vmax.f32 %v913_v3, 0.0  ;;  %v964_v3 = vld [vmem:[%s4522_s25 + $0x28] sm:$0xff]  ;;  %v3500_v20 = vpack.c.bf16 %v1447_v0, %v1444_v6  ;;  %v3502_v5 = vpack.c.bf16 %v1454_v2, %v1451_v1  ;;  %v1807_v2 = vld [vmem:[#allocation9 + $0x80] sm:$0xff] }
 0x28f   : >> { %v954_v9 = vmax.f32 %v924_v4, 0.0  ;;  %v965_v4 = vld [vmem:[%s4522_s25 + $0x30] sm:$0xff]  ;;  %v1800_v6 = vld [vmem:[#allocation9 + $0x48] sm:$0xff] }
 0x290   : >> { %v952_v11 = vmax.f32 %v916_v7, 0.0  ;;  %v1450_v7 = vld [vmem:[%s5826_s11 + $0xf0] sm:$0xff]  ;;  %v1804_v1 = vld [vmem:[#allocation9 + $0x68] sm:$0xff] }
 0x291   : >> { %v972_v12 = vpack.c.bf16 %v954_v9, %v953_v8  ;;  %3281 = vmatpush3.bf16.msra.mxu0 %v970_v63  ;;  %v3498_v63 = vpack.c.bf16 %v1448_v61, %v1445_v59  ;;  %v1453_v8 = vld [vmem:[%s5826_s11 + $0x108] sm:$0xff]  ;;  %v1802_v59 = vld [vmem:[#allocation9 + $0x58] sm:$0xff] }
 0x292   : >> { %v971_v22 = vpack.c.bf16 %v952_v11, %v951_v10  ;;  %v3272_v13 = vpop.f32.mrb[12].mxu1  ;;  %v1457_v9 = vld [vmem:[%s5826_s11 + $0x128] sm:$0xff]  ;;  %v1460_v10 = vld [vmem:[%s5826_s11 + $0x140] sm:$0xff]  ;;  %v3504_v11 = vpack.c.bf16 %v1453_v8, %v1450_v7  ;;  %v1805_v7 = vld [vmem:[#allocation9 + $0x70] sm:$0xff] }
 0x293   : >> { %v937_v14 = vadd.f32 %v3272_v13, %v2981_v29  ;;  %v928_v15 = vpop.f32.mrb[13].mxu1  ;;  %v1459_v13 = vld [vmem:[%s5826_s11 + $0x138] sm:$0xff]  ;;  %v1808_v8 = vld [vmem:[#allocation9 + $0x88] sm:$0xff] }
 0x294   : >> { %v929_v16 = vadd.f32 %v2981_v29, %v928_v15  ;;  %v3273_v27 = vpop.f32.mrb[14].mxu1  ;;  %3282 = vmatprep.subr.bf16.mxu0 %v971_v22  ;;  %v1466_v15 = vld [vmem:[%s5826_s11 + $0x170] sm:$0xff] }
 0x295   : >> { %v940_v18 = vadd.f32 %v3273_v27, %v2981_v29  ;;  %v931_v19 = vpop.f32.mrb[15].mxu1  ;;  %3283 = vmatpush3.bf16.msra.mxu0 %v971_v22  ;;  %v957_v28 = vmax.f32 %v937_v14, 0.0  ;;  %v1456_v22 = vld [vmem:[%s5826_s11 + $0x120] sm:$0xff]  ;;  %v1463_v14 = vld [vmem:[%s5826_s11 + $0x158] sm:$0xff] }
 0x296   : >> { %v932_v21 = vadd.f32 %v2981_v29, %v931_v19  ;;  %3284 = vmatprep.subr.bf16.mxu0 %v972_v12  ;;  %v955_v23 = vmax.f32 %v929_v16, 0.0  ;;  %v1420_v29 = vld [vmem:[%s5826_s11] sm:$0xff]  ;;  %v966_v16 = vld [vmem:[%s4522_s25 + $0x38] sm:$0xff]  ;;  %v3508_v27 = vpack.c.bf16 %v1459_v13, %v1456_v22  ;;  %v1462_v19 = vld [vmem:[%s5826_s11 + $0x150] sm:$0xff] }
 0x297   : >> { %v958_v17 = vmax.f32 %v940_v18, 0.0  ;;  %v3484_v36 = vpack.c.bf16 %v1423_v30, %v1420_v29  ;;  %v3510_v18 = vpack.c.bf16 %v1466_v15, %v1463_v14  ;;  %v1811_v22 = vld [vmem:[#allocation9 + $0xa0] sm:$0xff]  ;;  %v1814_v13 = vld [vmem:[#allocation9 + $0xb8] sm:$0xff] }
 0x298   : >> { %v956_v33 = vmax.f32 %v932_v21, 0.0  ;;  %v1465_v21 = vld [vmem:[%s5826_s11 + $0x168] sm:$0xff] }
 0x299   : >> { %v974_v24 = vpack.c.bf16 %v958_v17, %v957_v28  ;;  %3285 = vmatpush3.bf16.msra.mxu0 %v972_v12  ;;  %v3506_v12 = vpack.c.bf16 %v1460_v10, %v1457_v9  ;;  %v3512_v28 = vpack.c.bf16 %v1465_v21, %v1462_v19  ;;  %v1464_v17 = vld [vmem:[%s5826_s11 + $0x160] sm:$0xff]  ;;  %v3554_v9 = vpack.c.bf16 %v1807_v2, %v1804_v1  ;;  %v1809_v19 = vld [vmem:[#allocation9 + $0x90] sm:$0xff]  ;;  %v1812_v21 = vld [vmem:[#allocation9 + $0xa8] sm:$0xff] }
 0x29a   : >> { %v973_v34 = vpack.c.bf16 %v956_v33, %v955_v23  ;;  %v1467_v23 = vld [vmem:[%s5826_s11 + $0x178] sm:$0xff]  ;;  %v1803_v10 = vld [vmem:[#allocation9 + $0x60] sm:$0xff] }
 0x29b   : >> { %v3542_v33 = vpack.c.bf16 %v1467_v23, %v1464_v17  ;;  %v3590_v17 = vpack.c.bf16 %v1814_v13, %v1811_v22  ;;  %v1816_v23 = vld [vmem:[#allocation9 + $0xc8] sm:$0xff]  ;;  %v1835_v13 = vld [vmem:[#allocation9 + $0x160] sm:$0xff] }
 0x29c   : >> { %3286 = vmatprep.subr.bf16.mxu0 %v973_v34 }
 0x29d   : >> { %3287 = vmatpush3.bf16.msra.mxu0 %v973_v34  ;;  %3543 = vmatprep.subr.bf16.mxu1 %v3542_v33  ;;  %v1793_v34 = vld [vmem:[#allocation9 + $0x10] sm:$0xff] }
 0x29e   : >> { %3288 = vmatprep.subr.bf16.mxu0 %v974_v24  ;;  %3545 = vmatpush3.bf16.msra.mxu1 %v3542_v33  ;;  %v3578_v29 = vpack.c.bf16 %v1796_v25, %v1793_v34  ;;  %v1819_v33 = vld [vmem:[#allocation9 + $0xe0] sm:$0xff] }
 0x2a0   : >> { %3579 = vmatprep.subr.bf16.mxu1 %v3578_v29 }
 0x2a1   : >> { %3289 = vmatpush3.bf16.msra.mxu0 %v974_v24  ;;  %v4234_v24 = vmov 0.0  }
 0x2a2   : >> { %3483 = vmatprep.subr.bf16.mxu0 %v3482_v37  ;;  %v1795_v37 = vld [vmem:[#allocation9 + $0x20] sm:$0xff] }
 0x2a3   : >> { %v3546_v30 = vpack.c.bf16 %v1795_v37, %v1792_v26  ;;  %v1817_v26 = vld [vmem:[#allocation9 + $0xd0] sm:$0xff]  ;;  %v1820_v37 = vld [vmem:[#allocation9 + $0xe8] sm:$0xff] }
 0x2a4   : >> { %3291 = vmatmul.mubr.bf16.vlgmr.msra.gmra.mrb[16].mxu0 %v960_v35 }
 0x2a5   : >> { %3294 = vmatprep.mubr.bf16.mxu0 %v961_v38  ;;  %3485 = vmatpush1.bf16.msra.mxu0 %v3484_v36 }
 0x2a6   : >> { %3487 = vmatprep.subr.bf16.mxu0 %v3486_v39 }
 0x2a9   : >> { %3489 = vmatpush1.bf16.msra.mxu0 %v3488_v47 }
 0x2aa   : >> { %3491 = vmatprep.subr.bf16.mxu0 %v3490_v48 }
 0x2ac   : >> { %3295 = vmatmul.mubr.bf16.gmra.mrb[20].mxu0 %v962_v53  ;;  %v1791_v53 = vld [vmem:[#allocation9] sm:$0xff] }
 0x2ad   : >> { %3298 = vmatprep.mubr.bf16.mxu0 %v963_v55  ;;  %3493 = vmatpush1.bf16.msra.mxu0 %v3492_v54  ;;  %v1794_v54 = vld [vmem:[#allocation9 + $0x18] sm:$0xff] }
 0x2ae   : >> { %3495 = vmatprep.subr.bf16.mxu0 %v3494_v56  ;;  %v1798_v55 = vld [vmem:[#allocation9 + $0x38] sm:$0xff]  ;;  %v1801_v56 = vld [vmem:[#allocation9 + $0x50] sm:$0xff]  ;;  %v3548_v57 = vpack.c.bf16 %v1794_v54, %v1791_v53  ;;  %v1815_v53 = vld [vmem:[#allocation9 + $0xc0] sm:$0xff] }
 0x2af   : >> { %v1818_v54 = vld [vmem:[#allocation9 + $0xd8] sm:$0xff] }
 0x2b1   : >> { %3497 = vmatpush1.bf16.msra.mxu0 %v3496_v62  ;;  %v3550_v62 = vpack.c.bf16 %v1801_v56, %v1798_v55  ;;  %v3594_v55 = vpack.c.bf16 %v1820_v37, %v1817_v26  ;;  %v1823_v56 = vld [vmem:[#allocation9 + $0x100] sm:$0xff] }
 0x2b2   : >> { %3499 = vmatprep.subr.bf16.mxu0 %v3498_v63  ;;  %v1797_v63 = vld [vmem:[#allocation9 + $0x30] sm:$0xff] }
 0x2b4   : >> { %3299 = vmatmul.mubr.bf16.gmra.mrb[24].mxu0 %v964_v3 }
 0x2b5   : >> { %3302 = vmatprep.mubr.bf16.mxu0 %v965_v4  ;;  %3501 = vmatpush1.bf16.msra.mxu0 %v3500_v20  ;;  %v3582_v20 = vpack.c.bf16 %v1802_v59, %v1799_v58  ;;  %v3564_v59 = vpack.c.bf16 %v1818_v54, %v1815_v53 }
 0x2b6   : >> { %3503 = vmatprep.subr.bf16.mxu0 %v3502_v5  ;;  %v3552_v5 = vpack.c.bf16 %v1800_v6, %v1797_v63  ;;  %v1821_v6 = vld [vmem:[#allocation9 + $0xf0] sm:$0xff] }
 0x2b9   : >> { %3505 = vmatpush1.bf16.msra.mxu0 %v3504_v11  ;;  %v1806_v11 = vld [vmem:[#allocation9 + $0x78] sm:$0xff] }
 0x2ba   : >> { %3507 = vmatprep.subr.bf16.mxu0 %v3506_v12  ;;  %v3586_v12 = vpack.c.bf16 %v1808_v8, %v1805_v7  ;;  %v3556_v15 = vpack.c.bf16 %v1806_v11, %v1803_v10  ;;  %v1829_v7 = vld [vmem:[#allocation9 + $0x130] sm:$0xff]  ;;  %v1832_v8 = vld [vmem:[#allocation9 + $0x148] sm:$0xff]  ;;  %v1827_v11 = vld [vmem:[#allocation9 + $0x120] sm:$0xff] }
 0x2bb   : >> { %v3602_v22 = vpack.c.bf16 %v1832_v8, %v1829_v7 }
 0x2bc   : >> { %3303 = vmatmul.mubr.bf16.gmra.mrb[28].mxu0 %v966_v16  ;;  %v1810_v16 = vld [vmem:[#allocation9 + $0x98] sm:$0xff] }
 0x2bd   : >> { %3509 = vmatpush1.bf16.msra.mxu0 %v3508_v27  ;;  %1549 = vmatprep.mubr.f32.mxu0 %v4234_v24  ;;  %v1813_v27 = vld [vmem:[#allocation9 + $0xb0] sm:$0xff] }
 0x2be   : >> { %3511 = vmatprep.subr.bf16.mxu0 %v3510_v18  ;;  %v3558_v25 = vpack.c.bf16 %v1813_v27, %v1810_v16 }
 0x2c0   : >> { %v5180_v31 = vpop.f32.mrb[16].mxu1 }
 0x2c1   : >> { %3513 = vmatpush1.bf16.msra.mxu0 %v3512_v28  ;;  %v5182_v32 = vpop.f32.mrb[17].mxu1 }
 0x2c2   : >> { %3547 = vmatprep.subr.bf16.mxu0 %v3546_v30  ;;  %v5184_v35 = vpop.f32.mrb[18].mxu1  ;;  %v3562_v30 = vpack.c.bf16 %v1819_v33, %v1816_v23  ;;  %v1836_v23 = vld [vmem:[#allocation9 + $0x168] sm:$0xff] }
 0x2c3   : >> { %v5186_v36 = vpop.f32.mrb[19].mxu1 }
 0x2c8   : >> { %v5188_v38 = vpop.f32.mrb[20].mxu1 }
 0x2c9   : >> { %v5190_v39 = vpop.f32.mrb[21].mxu1 }
 0x2ca   : >> { %v5192_v41 = vpop.f32.mrb[22].mxu1 }
 0x2cb   : >> { %v5194_v42 = vpop.f32.mrb[23].mxu1 }
 0x2d0   : >> { %v5196_v43 = vpop.f32.mrb[24].mxu1 }
 0x2d1   : >> { %v5198_v45 = vpop.f32.mrb[25].mxu1 }
 0x2d2   : >> { %v5200_v47 = vpop.f32.mrb[26].mxu1 }
 0x2d3   : >> { %v5202_v48 = vpop.f32.mrb[27].mxu1 }
 0x2d8   : >> { %v5204_v49 = vpop.f32.mrb[28].mxu1 }
 0x2d9   : >> { %5918 = vst [vmem:[#allocation26_spill] sm:$0xff] %v5204_v49  ;;  %v5206_v50 = vpop.f32.mrb[29].mxu1 }
 0x2da   : >> { %v5208_v51 = vpop.f32.mrb[30].mxu1 }
 0x2db   : >> { %5919 = vst [vmem:[#allocation27_spill] sm:$0xff] %v5208_v51  ;;  %v5210_v52 = vpop.f32.mrb[31].mxu1 }
 0x2dc   : >> { %5920 = vst [vmem:[#allocation28_spill] sm:$0xff] %v5210_v52 }
 0x377   : >> { %v3292_v61 = vpop.f32.mrb[16].mxu0 }
 0x378   : >> { %v1009_v0 = vpop.f32.mrb[17].mxu0 }
 0x379   : >> { %v3293_v3 = vpop.f32.mrb[18].mxu0  ;;  %1550 = vmatmul.mubr.f32.vlgmr.msra.gmra.mrb[32].mxu0 %v1009_v0  ;;  %3370 = vmatprep.mubr.f32.mxu1 %v1009_v0  ;;  %v1824_v0 = vld [vmem:[#allocation9 + $0x108] sm:$0xff] }
 0x37a   : >> { %v1012_v4 = vpop.f32.mrb[19].mxu0  ;;  %3549 = vmatpush1.bf16.msra.mxu0 %v3548_v57  ;;  %1555 = vmatprep.mubr.f32.mxu0 %v4234_v24  ;;  %v1826_v57 = vld [vmem:[#allocation9 + $0x118] sm:$0xff] }
 0x37b   : >> { %3371 = vmatmul.mubr.f32.vlgmr.msra.gmra.mrb[32].mxu1 %v1012_v4  ;;  %3551 = vmatprep.subr.bf16.mxu0 %v3550_v62  ;;  %v1825_v62 = vld [vmem:[#allocation9 + $0x110] sm:$0xff]  ;;  %v3598_v2 = vpack.c.bf16 %v1826_v57, %v1823_v56 }
 0x37c   : >> { %3373 = vmatprep.mubr.f32.mxu1 %v3292_v61  ;;  %3581 = vmatpush3.bf16.msra.mxu1 %v3578_v29  ;;  %v3560_v29 = vpack.c.bf16 %v1812_v21, %v1809_v19  ;;  %v1837_v19 = vld [vmem:[#allocation9 + $0x170] sm:$0xff] }
 0x37d   : >> { %1556 = vmatmul.mubr.f32.gmra.mrb[34].mxu0 %v1012_v4  ;;  %3583 = vmatprep.subr.bf16.mxu1 %v3582_v20 }
 0x37e   : >> { %1561 = vmatprep.mubr.f32.mxu0 %v4234_v24  ;;  %3553 = vmatpush1.bf16.msra.mxu0 %v3552_v5 }
 0x37f   : >> { %v5214_v14 = vpop.f32.mrb[20].mxu0  ;;  %3374 = vmatmul.mubr.f32.gmra.mrb[34].mxu1 %v3293_v3  ;;  %3555 = vmatprep.subr.bf16.mxu0 %v3554_v9  ;;  %v3568_v9 = vpack.c.bf16 %v1824_v0, %v1821_v6 }
 0x380   : >> { %v1025_v18 = vpop.f32.mrb[21].mxu0  ;;  %3585 = vmatpush3.bf16.msra.mxu1 %v3582_v20  ;;  %v1831_v20 = vld [vmem:[#allocation9 + $0x140] sm:$0xff] }
 0x381   : >> { %v5216_v28 = vpop.f32.mrb[22].mxu0  ;;  %1562 = vmatmul.mubr.f32.gmra.mrb[36].mxu0 %v3292_v61  ;;  %3376 = vmatprep.mubr.f32.mxu1 %v1025_v18  ;;  %v1822_v61 = vld [vmem:[#allocation9 + $0xf8] sm:$0xff] }
 0x382   : >> { %v1028_v34 = vpop.f32.mrb[23].mxu0  ;;  %3587 = vmatprep.subr.bf16.mxu1 %v3586_v12  ;;  %1567 = vmatprep.mubr.f32.mxu0 %v4234_v24  ;;  %v3566_v5 = vpack.c.bf16 %v1825_v62, %v1822_v61 }
 0x383   : >> { %3377 = vmatmul.mubr.f32.gmra.mrb[36].mxu1 %v1028_v34  ;;  %3557 = vmatpush1.bf16.msra.mxu0 %v3556_v15  ;;  %v1838_v15 = vld [vmem:[#allocation9 + $0x178] sm:$0xff] }
 0x384   : >> { %3589 = vmatpush3.bf16.msra.mxu1 %v3586_v12  ;;  %3379 = vmatprep.mubr.f32.mxu1 %v5214_v14  ;;  %v1830_v12 = vld [vmem:[#allocation9 + $0x138] sm:$0xff] }
 0x385   : >> { %1568 = vmatmul.mubr.f32.gmra.mrb[38].mxu0 %v3293_v3  ;;  %3591 = vmatprep.subr.bf16.mxu1 %v3590_v17  ;;  %v1828_v3 = vld [vmem:[#allocation9 + $0x128] sm:$0xff]  ;;  %v3572_v27 = vpack.c.bf16 %v1830_v12, %v1827_v11 }
 0x386   : >> { %1573 = vmatprep.mubr.f32.mxu0 %v4234_v24  ;;  %3559 = vmatprep.subr.bf16.mxu0 %v3558_v25  ;;  %v3570_v10 = vpack.c.bf16 %v1831_v20, %v1828_v3 }
 0x387   : >> { %v5221_v58 = vpop.f32.mrb[24].mxu0  ;;  %3380 = vmatmul.mubr.f32.gmra.mrb[38].mxu1 %v5216_v28  ;;  %3561 = vmatpush1.bf16.msra.mxu0 %v3560_v29 }
 0x388   : >> { %v5224_v63 = vpop.f32.mrb[25].mxu0  ;;  %3593 = vmatpush3.bf16.msra.mxu1 %v3590_v17  ;;  %3563 = vmatprep.subr.bf16.mxu0 %v3562_v30  ;;  %v1833_v17 = vld [vmem:[#allocation9 + $0x150] sm:$0xff] }
 0x389   : >> { %v5226_v1 = vpop.f32.mrb[26].mxu0  ;;  %1574 = vmatmul.mubr.f32.gmra.mrb[40].mxu0 %v1025_v18  ;;  %3382 = vmatprep.mubr.f32.mxu1 %v5224_v63  ;;  %v1834_v18 = vld [vmem:[#allocation9 + $0x158] sm:$0xff]  ;;  %v3576_v37 = vpack.c.bf16 %v1836_v23, %v1833_v17  ;;  %v1839_v17 = vld [vmem:[%s5926_s26] sm:$0x7] }
 0x38a   : >> { %v1044_v4 = vpop.f32.mrb[27].mxu0  ;;  %3595 = vmatprep.subr.bf16.mxu1 %v3594_v55  ;;  %1579 = vmatprep.mubr.f32.mxu0 %v4234_v24  ;;  %v3574_v26 = vpack.c.bf16 %v1837_v19, %v1834_v18  ;;  %v2498_v19 = vld [vmem:[%s5924_s29] sm:$0x1] }
 0x38b   : >> { %3383 = vmatmul.mubr.f32.gmra.mrb[40].mxu1 %v1044_v4  ;;  %3565 = vmatpush1.bf16.msra.mxu0 %v3564_v59  ;;  %v2499_v23 = vadd.s32 %v2498_v19, %v4565_v44 }
 0x38c   : >> { %3597 = vmatpush3.bf16.msra.mxu1 %v3594_v55  ;;  %3385 = vmatprep.mubr.f32.mxu1 %v5221_v58 }
 0x38d   : >> { %1580 = vmatmul.mubr.f32.gmra.mrb[42].mxu0 %v1028_v34  ;;  %3599 = vmatprep.subr.bf16.mxu1 %v3598_v2  ;;  %v3606_v34 = vpack.c.bf16 %v1838_v15, %v1835_v13 }
 0x38e   : >> { %1585 = vmatprep.mubr.f32.mxu0 %v4234_v24  ;;  %3567 = vmatprep.subr.bf16.mxu0 %v3566_v5 }
 0x38f   : >> { %v3304_v16 = vpop.f32.mrb[28].mxu0  ;;  %3386 = vmatmul.mubr.f32.gmra.mrb[42].mxu1 %v5226_v1  ;;  %3569 = vmatpush1.bf16.msra.mxu0 %v3568_v9 }
 0x390   : >> { %v1057_v21 = vpop.f32.mrb[29].mxu0  ;;  %3601 = vmatpush3.bf16.msra.mxu1 %v3598_v2  ;;  %3571 = vmatprep.subr.bf16.mxu0 %v3570_v10 }
 0x391   : >> { %v3305_v33 = vpop.f32.mrb[30].mxu0  ;;  %1586 = vmatmul.mubr.f32.gmra.mrb[44].mxu0 %v5214_v14  ;;  %3388 = vmatprep.mubr.f32.mxu1 %v1057_v21 }
 0x392   : >> { %v1060_v25 = vpop.f32.mrb[31].mxu0  ;;  %3603 = vmatprep.subr.bf16.mxu1 %v3602_v22  ;;  %1591 = vmatprep.mubr.f32.mxu0 %v4234_v24 }
 0x393   : >> { %3389 = vmatmul.mubr.f32.gmra.mrb[44].mxu1 %v1060_v25  ;;  %3573 = vmatpush1.bf16.msra.mxu0 %v3572_v27 }
 0x394   : >> { %3605 = vmatpush3.bf16.msra.mxu1 %v3602_v22  ;;  %3391 = vmatprep.mubr.f32.mxu1 %v3304_v16 }
 0x395   : >> { %1592 = vmatmul.mubr.f32.gmra.mrb[46].mxu0 %v5216_v28  ;;  %3607 = vmatprep.subr.bf16.mxu1 %v3606_v34 }
 0x396   : >> { %1597 = vmatprep.mubr.f32.mxu0 %v4234_v24  ;;  %3575 = vmatprep.subr.bf16.mxu0 %v3574_v26 }
 0x397   : >> { %3392 = vmatmul.mubr.f32.gmra.mrb[46].mxu1 %v3305_v33  ;;  %3577 = vmatpush1.bf16.msra.mxu0 %v3576_v37 }
 0x398   : >> { %3609 = vmatpush3.bf16.msra.mxu1 %v3606_v34  ;;  %3426 = vmatprep.mubr.f32.mxu1 %v5182_v32 }
 0x399   : >> { %1598 = vmatmul.mubr.f32.gmra.mrb[48].mxu0 %v5224_v63  ;;  %v1468_v63 = vld [vmem:[%s5921_s17] sm:$0x7] }
 0x39a   : >> { %1603 = vmatprep.mubr.f32.mxu0 %v4234_v24 }
 0x39b   : >> { %3427 = vmatmul.mubr.f32.vlgmr.msra.gmra.mrb[48].mxu1 %v5186_v36 }
 0x39c   : >> { %3429 = vmatprep.mubr.f32.mxu1 %v5180_v31 }
 0x39d   : >> { %1604 = vmatmul.mubr.f32.gmra.mrb[50].mxu0 %v1044_v4 }
 0x39e   : >> { %1609 = vmatprep.mubr.f32.mxu0 %v4234_v24 }
 0x39f   : >> { %3430 = vmatmul.mubr.f32.gmra.mrb[50].mxu1 %v5184_v35 }
 0x3a0   : >> { %3432 = vmatprep.mubr.f32.mxu1 %v5190_v39 }
 0x3a1   : >> { %1610 = vmatmul.mubr.f32.gmra.mrb[52].mxu0 %v5221_v58  ;;  %v5316_v58 = vshrl.u32 %v1137_v46, 7 }
 0x3a2   : >> { %1615 = vmatprep.mubr.f32.mxu0 %v4234_v24 }
 0x3a3   : >> { %3433 = vmatmul.mubr.f32.gmra.mrb[52].mxu1 %v5194_v42  ;;  %v1480_v62 = vsub.s32 2, %v5316_v58  ;;  %v1472_v15 = vsub.s32 0, %v5316_v58  ;;  %v2506_v19 = vadd.s32 24, %v5316_v58 }
 0x3a4   : >> { %3435 = vmatprep.mubr.f32.mxu1 %v5188_v38 }
 0x3a5   : >> { %1616 = vmatmul.mubr.f32.gmra.mrb[54].mxu0 %v5226_v1  ;;  %v5330_v1 = vrot.slane %v1468_v63, %v1480_v62  ;;  %v1844_v34 = vrot.slane %v1839_v17, %v1472_v15  ;;  %v5379_v60 = vrot.slane %v2499_v23, %v1472_v15 }
 0x3a6   : >> { %1621 = vmatprep.mubr.f32.mxu0 %v4234_v24 }
 0x3a7   : >> { %3436 = vmatmul.mubr.f32.gmra.mrb[54].mxu1 %v5192_v41  ;;  %vm2523_vm9 = vcmp.eq.s32.totalorder %v5316_v58, %v5379_v60  ;;  %vm2526_vm14 = vcmp.eq.s32.totalorder %v2506_v19, %v5379_v60  ;;  %v5935_v19 = vmov 0 }
 0x3a8   : >> { %3438 = vmatprep.mubr.f32.mxu1 %v5198_v45 }
 0x3a9   : >> { %1622 = vmatmul.mubr.f32.gmra.mrb[56].mxu0 %v1057_v21  ;;  %v2500_v21 = vld [vmem:[%s5925_s4] sm:$0x1] }
 0x3aa   : >> { %1627 = vmatprep.mubr.f32.mxu0 %v4234_v24  ;;  %vm2501_vm6 = vcmp.lt.s32.totalorder %v4565_v44, %v2500_v21  ;;  %v5392_v44 = vrot.slane %v1839_v17, %v1480_v62  ;;  %v2507_v21 = vadd.s32 32, %v5316_v58 }
 0x3ab   : >> { %3439 = vmatmul.mubr.f32.gmra.mrb[56].mxu1 %v5202_v48  ;;  %v2539_v26 = vsel %vm2501_vm6, 1, %v4232_v40 }
 0x3ac   : >> { %3441 = vmatprep.mubr.f32.mxu1 %v5196_v43  ;;  %vm2527_vm3 = vcmp.eq.s32.totalorder %v2507_v21, %v5379_v60 }
 0x3ad   : >> { %1628 = vmatmul.mubr.f32.gmra.mrb[58].mxu0 %v1060_v25 }
 0x3ae   : >> { %1633 = vmatprep.mubr.f32.mxu0 %v4234_v24 }
 0x3af   : >> { %3442 = vmatmul.mubr.f32.gmra.mrb[58].mxu1 %v5200_v47 }
 0x3b0   : >> { %3444 = vmatprep.mubr.f32.mxu1 %v5206_v50 }
 0x3b1   : >> { %1634 = vmatmul.mubr.f32.gmra.mrb[60].mxu0 %v3304_v16  ;;  %v1476_v16 = vsub.s32 1, %v5316_v58 }
 0x3b2   : >> { %1639 = vmatprep.mubr.f32.mxu0 %v4234_v24 }
 0x3b3   : >> { %3445 = vmatmul.mubr.f32.gmra.mrb[60].mxu1 %v5210_v52  ;;  %v1477_v25 = vrot.slane %v1468_v63, %v1476_v16 }
 0x3b4   : >> { %3447 = vmatprep.mubr.f32.mxu1 %v5204_v49 }
 0x3b5   : >> { %1640 = vmatmul.mubr.f32.gmra.mrb[62].mxu0 %v3305_v33  ;;  %v1473_v33 = vrot.slane %v1468_v63, %v1472_v15 }
 0x3b6   : >> { %1920 = vmatprep.mubr.f32.mxu0 %v4234_v24 }
 0x3b7   : >> { %3448 = vmatmul.mubr.f32.gmra.mrb[62].mxu1 %v5208_v51  ;;  %v5394_v63 = vadd.f32 %v1844_v34, %v1473_v33  ;;  %v5931_v33 = vmov 1.0|1.0   ;;  %v5932_v34 = vmov 0 }
 0x3b9   : >> { %1921 = vmatmul.mubr.f32.vlgmr.msra.gmra.mrb[32].mxu0 %v5182_v32 }
 0x3ba   : >> { %1926 = vmatprep.mubr.f32.mxu0 %v4234_v24 }
 0x3bd   : >> { %1927 = vmatmul.mubr.f32.gmra.mrb[34].mxu0 %v5186_v36 }
 0x3be   : >> { %1932 = vmatprep.mubr.f32.mxu0 %v4234_v24 }
 0x3c1   : >> { %1933 = vmatmul.mubr.f32.gmra.mrb[36].mxu0 %v5180_v31 }
 0x3c2   : >> { %1938 = vmatprep.mubr.f32.mxu0 %v4234_v24 }
 0x3c5   : >> { %1939 = vmatmul.mubr.f32.gmra.mrb[38].mxu0 %v5184_v35 }
 0x3c6   : >> { %1944 = vmatprep.mubr.f32.mxu0 %v4234_v24 }
 0x3c9   : >> { %1945 = vmatmul.mubr.f32.gmra.mrb[40].mxu0 %v5190_v39 }
 0x3ca   : >> { %1950 = vmatprep.mubr.f32.mxu0 %v4234_v24 }
 0x3cd   : >> { %1951 = vmatmul.mubr.f32.gmra.mrb[42].mxu0 %v5194_v42 }
 0x3ce   : >> { %1956 = vmatprep.mubr.f32.mxu0 %v4234_v24 }
 0x3d1   : >> { %1957 = vmatmul.mubr.f32.gmra.mrb[44].mxu0 %v5188_v38 }
 0x3d2   : >> { %1962 = vmatprep.mubr.f32.mxu0 %v4234_v24 }
 0x3d5   : >> { %1963 = vmatmul.mubr.f32.gmra.mrb[46].mxu0 %v5192_v41 }
 0x3d6   : >> { %1968 = vmatprep.mubr.f32.mxu0 %v4234_v24 }
 0x3d9   : >> { %1969 = vmatmul.mubr.f32.gmra.mrb[48].mxu0 %v5198_v45 }
 0x3da   : >> { %1974 = vmatprep.mubr.f32.mxu0 %v4234_v24 }
 0x3dd   : >> { %1975 = vmatmul.mubr.f32.gmra.mrb[50].mxu0 %v5202_v48 }
 0x3de   : >> { %1980 = vmatprep.mubr.f32.mxu0 %v4234_v24 }
 0x3e1   : >> { %1981 = vmatmul.mubr.f32.gmra.mrb[52].mxu0 %v5196_v43 }
 0x3e2   : >> { %1986 = vmatprep.mubr.f32.mxu0 %v4234_v24 }
 0x3e5   : >> { %1987 = vmatmul.mubr.f32.gmra.mrb[54].mxu0 %v5200_v47 }
 0x3e6   : >> { %1992 = vmatprep.mubr.f32.mxu0 %v4234_v24 }
 0x3e9   : >> { %1993 = vmatmul.mubr.f32.gmra.mrb[56].mxu0 %v5206_v50 }
 0x3ea   : >> { %1998 = vmatprep.mubr.f32.mxu0 %v4234_v24 }
 0x3ed   : >> { %1999 = vmatmul.mubr.f32.gmra.mrb[58].mxu0 %v5210_v52 }
 0x3ee   : >> { %2004 = vmatprep.mubr.f32.mxu0 %v4234_v24 }
 0x3f1   : >> { %2005 = vmatmul.mubr.f32.gmra.mrb[60].mxu0 %v5204_v49  ;;  %v2518_v49 = vadd.s32 120, %v5316_v58 }
 0x3f2   : >> { %2010 = vmatprep.mubr.f32.mxu0 %v4234_v24 }
 0x3f5   : >> { %2011 = vmatmul.mubr.f32.gmra.mrb[62].mxu0 %v5208_v51 }
 0x44e   : >> { %v5295_v14 = vpop.f32.mrb[32].mxu1 }
 0x44f   : >> { %v5297_v28 = vpop.f32.mrb[33].mxu1 }
 0x452   : >> { %v5299_v29 = vpop.f32.mrb[34].mxu1 }
 0x453   : >> { %v5301_v30 = vpop.f32.mrb[35].mxu1 }
 0x456   : >> { %v5303_v53 = vpop.f32.mrb[36].mxu1 }
 0x457   : >> { %v5305_v54 = vpop.f32.mrb[37].mxu1 }
 0x45a   : >> { %v5307_v55 = vpop.f32.mrb[38].mxu1 }
 0x45b   : >> { %v5309_v56 = vpop.f32.mrb[39].mxu1 }
 0x45e   : >> { %v5311_v57 = vpop.f32.mrb[40].mxu1 }
 0x45f   : >> { %v5313_v24 = vpop.f32.mrb[41].mxu1 }
 0x462   : >> { %v5318_v59 = vpop.f32.mrb[42].mxu1 }
 0x463   : >> { %v5320_v61 = vpop.f32.mrb[43].mxu1 }
 0x466   : >> { %v5326_v6 = vpop.f32.mrb[44].mxu1 }
 0x467   : >> { %v5328_v0 = vpop.f32.mrb[45].mxu1 }
 0x46a   : >> { %v3393_v2 = vpop.f32.mrb[46].mxu1 }
 0x46b   : >> { %v5333_v46 = vadd.f32 %v3393_v2, %v5330_v1  ;;  %v1782_v3 = vpop.f32.mrb[47].mxu1  ;;  %v1848_v2 = vrot.slane %v1839_v17, %v1476_v16  ;;  %v2508_v17 = vadd.s32 40, %v5316_v58 }
 0x46c   : >> { %v5336_v20 = vadd.f32 %v1782_v3, %v5330_v1  ;;  %v2504_v3 = vadd.s32 8, %v5316_v58 }
 0x46d   : >> { %5922 = vst [vmem:[#allocation29_spill] sm:$0xff] %v5333_v46  ;;  %v2543_v46 = vrot.slane %v2539_v26, %v1472_v15  ;;  %v5399_v16 = vadd.f32 %v1848_v2, %v1477_v25  ;;  %v2509_v25 = vadd.s32 48, %v5316_v58  ;;  %v2510_v26 = vadd.s32 56, %v5316_v58 }
 0x46e   : >> { %5923 = vst [vmem:[#allocation30_spill] sm:$0xff] %v5336_v20  ;;  %v5338_v4 = vpop.f32.mrb[48].mxu1  ;;  %v2505_v20 = vadd.s32 16, %v5316_v58  ;;  %vm2524_vm10 = vcmp.eq.s32.totalorder %v2504_v3, %v5379_v60  ;;  %vm2528_vm4 = vcmp.eq.s32.totalorder %v2508_v17, %v5379_v60  ;;  %v5941_v17 = vmov 0 }
 0x46f   : >> { %v5340_v5 = vpop.f32.mrb[49].mxu1  ;;  %vm5388_vm12 = vcmp.eq.s32.totalorder %v2543_v46, 1  ;;  %vm2529_vm8 = vcmp.eq.s32.totalorder %v2509_v25, %v5379_v60 }
 0x470   : >> { %vm2545_vm13 = vmand %vm5388_vm12, %vm2523_vm9  ;;  %vm2525_vm2 = vcmp.eq.s32.totalorder %v2505_v20, %v5379_v60  ;;  %vm2530_vm9 = vcmp.eq.s32.totalorder %v2510_v26, %v5379_v60  ;;  %v5947_v26 = vmov 0 }
 0x471   : >> { %vm2546_vm11 = vmand %vm5388_vm12, %vm2524_vm10 }
 0x472   : >> { %v5342_v7 = vpop.f32.mrb[50].mxu1  ;;  %vm3038_vm15 = vmpackc.low %vm2546_vm11, %vm2545_vm13 }
 0x473   : >> { %v5344_v8 = vpop.f32.mrb[51].mxu1  ;;  %3466 = vmatprep.mubr.msk.bf16.mxu1 %vm3038_vm15, %v5931_v33  ;;  %vm5415_vm0 = vmand %vm5388_vm12, %vm2525_vm2 }
 0x474   : >> { %v5933_v34 = vsel %vm5415_vm0, 4294967295, %v5932_v34  ;;  %vm5424_vm1 = vmand %vm5388_vm12, %vm2526_vm14 }
 0x475   : >> { %5934 = vst [vmem:[#allocation33_spill] sm:$0xff] %v5933_v34  ;;  %v5936_v19 = vsel %vm5424_vm1, 4294967295, %v5935_v19  ;;  %vm5437_vm7 = vmand %vm5388_vm12, %vm2527_vm3 }
 0x476   : >> { %v5346_v9 = vpop.f32.mrb[52].mxu1  ;;  %5937 = vst [vmem:[#allocation34_spill] sm:$0xff] %v5936_v19  ;;  %vm5444_vm6 = vmand %vm5388_vm12, %vm2528_vm4 }
 0x477   : >> { %v5348_v10 = vpop.f32.mrb[53].mxu1  ;;  %v5942_v17 = vsel %vm5444_vm6, 4294967295, %v5941_v17  ;;  %vm5457_vm13 = vmand %vm5388_vm12, %vm2529_vm8 }
 0x478   : >> { %5943 = vst [vmem:[#allocation36_spill] sm:$0xff] %v5942_v17  ;;  %vm5463_vm2 = vmand %vm5388_vm12, %vm2530_vm9 }
 0x479   : >> { %v5948_v26 = vsel %vm5463_vm2, 4294967295, %v5947_v26 }
 0x47a   : >> { %v5350_v11 = vpop.f32.mrb[54].mxu1  ;;  %5949 = vst [vmem:[#allocation38_spill] sm:$0xff] %v5948_v26 }
 0x47b   : >> { %v5352_v12 = vpop.f32.mrb[55].mxu1 }
 0x47e   : >> { %v5354_v22 = vpop.f32.mrb[56].mxu1 }
 0x47f   : >> { %v5356_v13 = vpop.f32.mrb[57].mxu1 }
 0x482   : >> { %v5360_v27 = vpop.f32.mrb[58].mxu1 }
 0x483   : >> { %v5362_v18 = vpop.f32.mrb[59].mxu1 }
 0x486   : >> { %v5376_v37 = vpop.f32.mrb[60].mxu1 }
 0x487   : >> { %v5381_v51 = vpop.f32.mrb[61].mxu1 }
 0x48a   : >> { %v3449_v15 = vpop.f32.mrb[62].mxu1 }
 0x48b   : >> { %v5405_v46 = vadd.f32 %v3449_v15, %v5392_v44  ;;  %v2153_v62 = vpop.f32.mrb[63].mxu1 }
 0x48c   : >> { %v5410_v23 = vadd.f32 %v2153_v62, %v5392_v44  ;;  %v1922_v20 = vpop.f32.mrb[32].mxu0 }
 0x48d   : >> { %5929 = vst [vmem:[#allocation31_spill] sm:$0xff] %v5405_v46  ;;  %v3611_v2 = vadd.f32 %v5394_v63, %v1922_v20  ;;  %v1924_v3 = vpop.f32.mrb[33].mxu0  ;;  %v5938_v20 = vmov 0  ;;  %v2517_v46 = vadd.s32 112, %v5316_v58 }
 0x48e   : >> { %5930 = vst [vmem:[#allocation32_spill] sm:$0xff] %v5410_v23  ;;  %v3613_v15 = vadd.f32 %v5399_v16, %v1924_v3  ;;  %v5939_v20 = vsel %vm5437_vm7, 4294967295, %v5938_v20 }
 0x48f   : >> { %v3006_v62 = vmul.f32 -1.442695, %v3611_v2  ;;  %5940 = vst [vmem:[#allocation35_spill] sm:$0xff] %v5939_v20  ;;  %vm2537_vm10 = vcmp.eq.s32.totalorder %v2517_v46, %v5379_v60 }
 0x490   : >> { %v3022_v33 = vmul.f32 -1.442695, %v3613_v15  ;;  %v1928_v21 = vpop.f32.mrb[34].mxu0  ;;  %v5944_v15 = vmov 0 }
 0x491   : >> { %3809 = vpow2.f32 %v3006_v62  ;;  %v3615_v2 = vadd.f32 %v5394_v63, %v1928_v21  ;;  %v1930_v3 = vpop.f32.mrb[35].mxu0  ;;  %v5945_v15 = vsel %vm5457_vm13, 4294967295, %v5944_v15  ;;  %v2511_v62 = vadd.s32 64, %v5316_v58 }
 0x492   : >> { %3811 = vpow2.f32 %v3022_v33  ;;  %v3617_v25 = vadd.f32 %v5399_v16, %v1930_v3  ;;  %5946 = vst [vmem:[#allocation37_spill] sm:$0xff] %v5945_v15  ;;  %v2512_v21 = vadd.s32 72, %v5316_v58  ;;  %v2513_v3 = vadd.s32 80, %v5316_v58 }
 0x493   : >> { %v3007_v34 = vmul.f32 -1.442695, %v3615_v2  ;;  %v2514_v2 = vadd.s32 88, %v5316_v58  ;;  %vm2531_vm14 = vcmp.eq.s32.totalorder %v2511_v62, %v5379_v60  ;;  %v5950_v15 = vmov 0 }
 0x494   : >> { %v3023_v33 = vmul.f32 -1.442695, %v3617_v25  ;;  %v1934_v20 = vpop.f32.mrb[36].mxu0  ;;  %vm2532_vm15 = vcmp.eq.s32.totalorder %v2512_v21, %v5379_v60  ;;  %vm5481_vm3 = vmand %vm5388_vm12, %vm2531_vm14  ;;  %vm2533_vm4 = vcmp.eq.s32.totalorder %v2513_v3, %v5379_v60  ;;  %v5959_v3 = vmov 0 }
 0x495   : >> { %3813 = vpow2.f32 %v3007_v34  ;;  %v3619_v17 = vadd.f32 %v5394_v63, %v1934_v20  ;;  %v1936_v19 = vpop.f32.mrb[37].mxu0  ;;  %v5951_v15 = vsel %vm5481_vm3, 4294967295, %v5950_v15  ;;  %vm5488_vm8 = vmand %vm5388_vm12, %vm2532_vm15  ;;  %v5953_v34 = vmov 0 }
 0x496   : >> { %3815 = vpow2.f32 %v3023_v33  ;;  %v3621_v25 = vadd.f32 %v5399_v16, %v1936_v19  ;;  %5952 = vst [vmem:[#allocation39_spill] sm:$0xff] %v5951_v15  ;;  %v5954_v34 = vsel %vm5488_vm8, 4294967295, %v5953_v34  ;;  %vm2534_vm9 = vcmp.eq.s32.totalorder %v2514_v2, %v5379_v60  ;;  %vm5500_vm11 = vmand %vm5388_vm12, %vm2533_vm4 }
 0x497   : >> { %v3008_v26 = vmul.f32 -1.442695, %v3619_v17  ;;  %5955 = vst [vmem:[#allocation40_spill] sm:$0xff] %v5954_v34  ;;  %v5956_v17 = vmov 0  ;;  %vm5507_vm15 = vmand %vm5388_vm12, %vm2534_vm9 }
 0x498   : >> { %v3024_v20 = vmul.f32 -1.442695, %v3621_v25  ;;  %v1940_v62 = vpop.f32.mrb[38].mxu0  ;;  %v5957_v17 = vsel %vm5500_vm11, 4294967295, %v5956_v17  ;;  %v5960_v3 = vsel %vm5507_vm15, 4294967295, %v5959_v3  ;;  %v2515_v25 = vadd.s32 96, %v5316_v58 }
 0x499   : >> { %3817 = vpow2.f32 %v3008_v26  ;;  %v3623_v19 = vadd.f32 %v5394_v63, %v1940_v62  ;;  %v1942_v21 = vpop.f32.mrb[39].mxu0  ;;  %5958 = vst [vmem:[#allocation41_spill] sm:$0xff] %v5957_v17  ;;  %5961 = vst [vmem:[#allocation42_spill] sm:$0xff] %v5960_v3  ;;  %v2516_v62 = vadd.s32 104, %v5316_v58  ;;  %vm2538_vm11 = vcmp.eq.s32.totalorder %v2518_v49, %v5379_v60 }
 0x49a   : >> { %3819 = vpow2.f32 %v3024_v20  ;;  %v3625_v33 = vadd.f32 %v5399_v16, %v1942_v21  ;;  %vm2535_vm4 = vcmp.eq.s32.totalorder %v2515_v25, %v5379_v60  ;;  %v5968_v49 = vmov 0  ;;  %vm5553_vm15 = vmand %vm5388_vm12, %vm2538_vm11 }
 0x49b   : >> { %v3810_v2 = vpop.eup %3809  ;;  %v3009_v26 = vmul.f32 -1.442695, %v3623_v19  ;;  %vm2536_vm9 = vcmp.eq.s32.totalorder %v2516_v62, %v5379_v60  ;;  %vm5525_vm14 = vmand %vm5388_vm12, %vm2535_vm4 }
 0x49c   : >> { %v3812_v20 = vpop.eup %3811  ;;  %v2226_v15 = vadd.f32 1.0, %v3810_v2  ;;  %v3025_v21 = vmul.f32 -1.442695, %v3625_v33  ;;  %v1946_v34 = vpop.f32.mrb[40].mxu0  ;;  %v5962_v33 = vmov 0  ;;  %vm5532_vm5 = vmand %vm5388_vm12, %vm2536_vm9 }
 0x49d   : >> { %v2338_v23 = vadd.f32 1.0, %v3812_v20  ;;  %3821 = vpow2.f32 %v3009_v26  ;;  %v3627_v19 = vadd.f32 %v5394_v63, %v1946_v34  ;;  %v1948_v17 = vpop.f32.mrb[41].mxu0  ;;  %v5963_v33 = vsel %vm5525_vm14, 4294967295, %v5962_v33  ;;  %vm3050_vm4 = vmpackc.low %vm5532_vm5, %vm5525_vm14 }
 0x49e   : >> { %3823 = vrcp.f32 %v2226_v15  ;;  %v3629_v3 = vadd.f32 %v5399_v16, %v1948_v17  ;;  %5964 = vst [vmem:[#allocation43_spill] sm:$0xff] %v5963_v33  ;;  %v5965_v34 = vmov 0  ;;  %vm5546_vm9 = vmand %vm5388_vm12, %vm2537_vm10 }
 0x49f   : >> { %v3814_v58 = vpop.eup %3813  ;;  %3825 = vrcp.f32 %v2338_v23  ;;  %v3010_v2 = vmul.f32 -1.442695, %v3627_v19  ;;  %v5966_v34 = vsel %vm5532_vm5, 4294967295, %v5965_v34  ;;  %v5969_v49 = vsel %vm5546_vm9, 4294967295, %v5968_v49  ;;  %vm5984_vm12 = vmpackc.low %vm5424_vm1, %vm5415_vm0 }
 0x4a0   : >> { %5967 = vst [vmem:[#allocation44_spill] sm:$0xff] %v5966_v34  ;;  %v3816_v15 = vpop.eup %3815  ;;  %v2227_v17 = vadd.f32 1.0, %v3814_v58  ;;  %3827 = vpow2.f32 %v3025_v21  ;;  %v3026_v26 = vmul.f32 -1.442695, %v3629_v3  ;;  %v1952_v25 = vpop.f32.mrb[42].mxu0  ;;  %5970 = vst [vmem:[#allocation45_spill] sm:$0xff] %v5969_v49 }
 0x4a1   : >> { %v2339_v23 = vadd.f32 1.0, %v3816_v15  ;;  %3829 = vpow2.f32 %v3010_v2  ;;  %v3631_v62 = vadd.f32 %v5394_v63, %v1952_v25  ;;  %v1954_v20 = vpop.f32.mrb[43].mxu0  ;;  %v5971_v21 = vmov 0  ;;  %vm5987_vm11 = vmpackc.low %vm5444_vm6, %vm5437_vm7 }
 0x4a2   : >> { %3831 = vrcp.f32 %v2227_v17  ;;  %v3633_v3 = vadd.f32 %v5399_v16, %v1954_v20  ;;  %v5972_v21 = vsel %vm5553_vm15, 4294967295, %v5971_v21  ;;  %vm5990_vm10 = vmpackc.low %vm5463_vm2, %vm5457_vm13 }
 0x4a3   : >> { %5973 = vst [vmem:[#allocation46_spill] sm:$0xff] %v5972_v21  ;;  %v3818_v19 = vpop.eup %3817  ;;  %3833 = vrcp.f32 %v2339_v23  ;;  %v3011_v58 = vmul.f32 -1.442695, %v3631_v62  ;;  %v2084_v62 = vadd.f32 %v5340_v5, %v5392_v44  ;;  %vm5993_vm0 = vmpackc.low %vm5488_vm8, %vm5481_vm3 }
 0x4a4   : >> { %v3820_v60 = vpop.eup %3819  ;;  %v2228_v46 = vadd.f32 1.0, %v3818_v19  ;;  %3835 = vpow2.f32 %v3026_v26  ;;  %v3027_v2 = vmul.f32 -1.442695, %v3633_v3  ;;  %v1958_v15 = vpop.f32.mrb[44].mxu0  ;;  %vm6003_vm13 = vmpackc.low %vm5553_vm15, %vm5546_vm9 }
 0x4a5   : >> { %v2340_v17 = vadd.f32 1.0, %v3820_v60  ;;  %3837 = vpow2.f32 %v3011_v58  ;;  %v3635_v40 = vadd.f32 %v5394_v63, %v1958_v15  ;;  %v1960_v25 = vpop.f32.mrb[45].mxu0  ;;  %v1713_v58 = vadd.f32 %v5297_v28, %v5330_v1 }
 0x4a6   : >> { %3839 = vrcp.f32 %v2228_v46  ;;  %v3637_v20 = vadd.f32 %v5399_v16, %v1960_v25 }
 0x4a7   : >> { %v3822_v23 = vpop.eup %3821  ;;  %3841 = vrcp.f32 %v2340_v17  ;;  %v3012_v49 = vmul.f32 -1.442695, %v3635_v40 }
 0x4a8   : >> { %v3824_v21 = vpop.eup %3823  ;;  %v2229_v33 = vadd.f32 1.0, %v3822_v23  ;;  %3843 = vpow2.f32 %v3027_v2  ;;  %v3028_v26 = vmul.f32 -1.442695, %v3637_v20  ;;  %v1964_v3 = vpop.f32.mrb[46].mxu0  ;;  %v2089_v2 = vadd.f32 %v5338_v4, %v5392_v44 }
 0x4a9   : >> { %v5565_v19 = vpop.eup %3825  ;;  %v2386_v60 = vmul.f32 %v3824_v21, %v2084_v62  ;;  %3845 = vpow2.f32 %v3012_v49  ;;  %v3639_v46 = vadd.f32 %v5394_v63, %v1964_v3  ;;  %v1966_v15 = vpop.f32.mrb[47].mxu0  ;;  %v1728_v4 = vadd.f32 %v5299_v29, %v5330_v1 }
 0x4aa   : >> { %v3828_v25 = vpop.eup %3827  ;;  %3847 = vrcp.f32 %v2229_v33  ;;  %v5572_v5 = vmul.f32 %v5565_v19, %v5182_v32  ;;  %v3641_v49 = vadd.f32 %v5399_v16, %v1966_v15  ;;  %v1718_v33 = vadd.f32 %v5295_v14, %v5330_v1 }
 0x4ab   : >> { %v3830_v17 = vpop.eup %3829  ;;  %v2402_v40 = vadd.f32 %v2386_v60, %v1713_v58  ;;  %v2341_v20 = vadd.f32 1.0, %v3828_v25  ;;  %3849 = vpow2.f32 %v3028_v26  ;;  %v3013_v21 = vmul.f32 -1.442695, %v3639_v46 }
 0x4ac   : >> { %v3832_v23 = vpop.eup %3831  ;;  %v2230_v28 = vadd.f32 1.0, %v3830_v17  ;;  %v1970_v62 = vpop.f32.mrb[48].mxu0  ;;  %v2094_v60 = vadd.f32 %v5344_v8, %v5392_v44  ;;  %v1723_v25 = vadd.f32 %v5301_v30, %v5330_v1  ;;  %v1733_v8 = vadd.f32 %v5305_v54, %v5330_v1 }
 0x4ad   : >> { %v5577_v3 = vpop.eup %3833  ;;  %3851 = vtanh.f32 %v2402_v40  ;;  %v2387_v32 = vmul.f32 %v3832_v23, %v2089_v2  ;;  %v1972_v34 = vpop.f32.mrb[49].mxu0  ;;  %v3029_v2 = vmul.f32 -1.442695, %v3641_v49  ;;  %v2099_v30 = vadd.f32 %v5342_v7, %v5392_v44 }
 0x4ae   : >> { %v3836_v52 = vpop.eup %3835  ;;  %3853 = vrcp.f32 %v2341_v20  ;;  %v5585_v26 = vmul.f32 %v5577_v3, %v5186_v36  ;;  %v5595_v36 = vadd.f32 %v5303_v53, %v5330_v1  ;;  %v3645_v54 = vadd.f32 %v5399_v16, %v1972_v34 }
 0x4af   : >> { %v3838_v58 = vpop.eup %3837  ;;  %v2403_v46 = vadd.f32 %v2387_v32, %v1718_v33  ;;  %3855 = vrcp.f32 %v2230_v28  ;;  %v2342_v15 = vadd.f32 1.0, %v3836_v52  ;;  %v3643_v28 = vadd.f32 %v5394_v63, %v1970_v62 }
 0x4b0   : >> { %v3840_v14 = vpop.eup %3839  ;;  %v2231_v17 = vadd.f32 1.0, %v3838_v58  ;;  %3857 = vpow2.f32 %v3013_v21  ;;  %v1976_v29 = vpop.f32.mrb[50].mxu0  ;;  %v5609_v58 = vadd.f32 %v5307_v55, %v5330_v1  ;;  %v2434_v34 = vsub.f32 1.0, %v5565_v19 }
 0x4b1   : >> { %v5591_v40 = vpop.eup %3841  ;;  %3859 = vtanh.f32 %v2403_v46  ;;  %v2388_v20 = vmul.f32 %v3840_v14, %v2094_v60  ;;  %v1978_v52 = vpop.f32.mrb[51].mxu0  ;;  %v3647_v7 = vadd.f32 %v5394_v63, %v1976_v29 }
 0x4b2   : >> { %v3844_v23 = vpop.eup %3843  ;;  %3861 = vrcp.f32 %v2342_v15  ;;  %v5604_v21 = vmul.f32 %v5591_v40, %v5180_v31  ;;  %v5614_v31 = vadd.f32 %v5309_v56, %v5330_v1  ;;  %v3649_v55 = vadd.f32 %v5399_v16, %v1978_v52 }
 0x4b3   : >> { %v3846_v49 = vpop.eup %3845  ;;  %v2404_v53 = vadd.f32 %v2388_v20, %v1723_v25  ;;  %3863 = vrcp.f32 %v2231_v17  ;;  %v2343_v33 = vadd.f32 1.0, %v3844_v23  ;;  %v3014_v17 = vmul.f32 -1.442695, %v3643_v28 }
 0x4b4   : >> { %v3848_v32 = vpop.eup %3847  ;;  %v2232_v60 = vadd.f32 1.0, %v3846_v49  ;;  %3865 = vpow2.f32 %v3029_v2  ;;  %v1982_v62 = vpop.f32.mrb[52].mxu0  ;;  %v2104_v2 = vadd.f32 %v5348_v10, %v5392_v44  ;;  %v3030_v23 = vmul.f32 -1.442695, %v3645_v54 }
 0x4b5   : >> { %v3850_v46 = vpop.eup %3849  ;;  %3867 = vtanh.f32 %v2404_v53  ;;  %v2389_v15 = vmul.f32 %v3848_v32, %v2099_v30  ;;  %v1984_v14 = vpop.f32.mrb[53].mxu0  ;;  %v3015_v56 = vmul.f32 -1.442695, %v3647_v7  ;;  %v3651_v30 = vadd.f32 %v5394_v63, %v1982_v62 }
 0x4b6   : >> { %3869 = vrcp.f32 %v2343_v33  ;;  %v2344_v25 = vadd.f32 1.0, %v3850_v46  ;;  %v2109_v28 = vadd.f32 %v5346_v9, %v5392_v44  ;;  %v2435_v32 = vsub.f32 1.0, %v5577_v3 }
 0x4b7   : >> { %v3852_v20 = vpop.eup %3851  ;;  %v2405_v29 = vadd.f32 %v2389_v15, %v1728_v4  ;;  %3871 = vrcp.f32 %v2232_v60  ;;  %v3031_v60 = vmul.f32 -1.442695, %v3649_v55  ;;  %v3653_v15 = vadd.f32 %v5399_v16, %v1984_v14 }
 0x4b8   : >> { %v5620_v49 = vpop.eup %3853  ;;  %3873 = vrcp.f32 %v2344_v25  ;;  %v1988_v53 = vpop.f32.mrb[54].mxu0  ;;  %v2450_v19 = vmul.f32 %v3852_v20, %v2434_v34  ;;  %v3016_v25 = vmul.f32 -1.442695, %v3651_v30 }
 0x4b9   : >> { %v3856_v33 = vpop.eup %3855  ;;  %3875 = vtanh.f32 %v2405_v29  ;;  %v1990_v52 = vpop.f32.mrb[55].mxu0  ;;  %v5628_v10 = vmul.f32 %v5620_v49, %v5184_v35  ;;  %v3655_v9 = vadd.f32 %v5394_v63, %v1988_v53 }
 0x4ba   : >> { %v3858_v4 = vpop.eup %3857  ;;  %v2390_v54 = vmul.f32 %v3856_v33, %v2104_v2  ;;  %3877 = vpow2.f32 %v3014_v17  ;;  %v2482_v7 = vadd.f32 %v5572_v5, %v2450_v19  ;;  %v2114_v17 = vadd.f32 %v5352_v12, %v5392_v44 }
 0x4bb   : >> { %v3860_v62 = vpop.eup %3859  ;;  %v2233_v46 = vadd.f32 1.0, %v3858_v4  ;;  %3879 = vpow2.f32 %v3030_v23  ;;  %v3657_v5 = vadd.f32 %v5399_v16, %v1990_v52  ;;  %v3032_v19 = vmul.f32 -1.442695, %v3653_v15 }
 0x4bc   : >> { %v5633_v34 = vpop.eup %3861  ;;  %v2406_v3 = vadd.f32 %v2390_v54, %v1733_v8  ;;  %3881 = vpow2.f32 %v3015_v56  ;;  %v1994_v35 = vpop.f32.mrb[56].mxu0  ;;  %v2451_v20 = vmul.f32 %v3860_v62, %v2435_v32  ;;  %v2436_v56 = vsub.f32 1.0, %v5591_v40 }
 0x4bd   : >> { %v3864_v29 = vpop.eup %3863  ;;  %3883 = vrcp.f32 %v2233_v46  ;;  %v1996_v55 = vpop.f32.mrb[57].mxu0  ;;  %v5640_v14 = vmul.f32 %v5633_v34, %v5190_v39  ;;  %v3017_v12 = vmul.f32 -1.442695, %v3655_v9  ;;  %v3659_v39 = vadd.f32 %v5394_v63, %v1994_v35 }
 0x4be   : >> { %v3866_v2 = vpop.eup %3865  ;;  %3885 = vtanh.f32 %v2406_v3  ;;  %v2391_v23 = vmul.f32 %v3864_v29, %v2109_v28  ;;  %v2483_v8 = vadd.f32 %v5585_v26, %v2451_v20  ;;  %v2119_v26 = vadd.f32 %v5350_v11, %v5392_v44 }
 0x4bf   : >> { %v3868_v30 = vpop.eup %3867  ;;  %v2345_v53 = vadd.f32 1.0, %v3866_v2  ;;  %3887 = vpow2.f32 %v3031_v60  ;;  %v3033_v40 = vmul.f32 -1.442695, %v3657_v5  ;;  %v3661_v9 = vadd.f32 %v5399_v16, %v1996_v55 }
 0x4c0   : >> { %v5644_v33 = vpop.eup %3869  ;;  %v2407_v52 = vadd.f32 %v2391_v23, %v5595_v36  ;;  %3889 = vpow2.f32 %v3016_v25  ;;  %v2000_v32 = vpop.f32.mrb[58].mxu0  ;;  %v2585_v4 = vpack.c.bf16 %v2483_v8, %v2482_v7  ;;  %v2452_v62 = vmul.f32 %v3868_v30, %v2436_v56 }
 0x4c1   : >> { %v3872_v54 = vpop.eup %3871  ;;  %3891 = vrcp.f32 %v2345_v53  ;;  %v2002_v28 = vpop.f32.mrb[59].mxu0  ;;  %v2437_v36 = vsub.f32 1.0, %v5620_v49  ;;  %v5655_v15 = vmul.f32 %v5644_v33, %v5194_v42  ;;  %v2438_v3 = vsub.f32 1.0, %v5633_v34 }
 0x4c2   : >> { %v5650_v60 = vpop.eup %3873  ;;  %3893 = vtanh.f32 %v2407_v52  ;;  %v2392_v46 = vmul.f32 %v3872_v54, %v2114_v17  ;;  %3450 = vmatprep.subr.bf16.mxu1 %v2585_v4  ;;  %v2484_v11 = vadd.f32 %v5604_v21, %v2452_v62  ;;  %v3018_v20 = vmul.f32 -1.442695, %v3659_v39 }
 0x4c3   : >> { %v3876_v7 = vpop.eup %3875  ;;  %3895 = vpow2.f32 %v3032_v19  ;;  %3451 = vmatpush3.bf16.msra.mxu1 %v2585_v4  ;;  %v5664_v55 = vmul.f32 %v5650_v60, %v5188_v38  ;;  %v3034_v30 = vmul.f32 -1.442695, %v3661_v9  ;;  %v3663_v53 = vadd.f32 %v5394_v63, %v2000_v32 }
 0x4c4   : >> { %v3878_v25 = vpop.eup %3877  ;;  %v2408_v35 = vadd.f32 %v2392_v46, %v5614_v31  ;;  %3897 = vpow2.f32 %v3017_v12  ;;  %v2006_v29 = vpop.f32.mrb[60].mxu0  ;;  %v2453_v49 = vmul.f32 %v3876_v7, %v2437_v36  ;;  %v2439_v38 = vsub.f32 1.0, %v5644_v33 }
 0x4c5   : >> { %v3880_v17 = vpop.eup %3879  ;;  %v2234_v5 = vadd.f32 1.0, %v3878_v25  ;;  %3899 = vpow2.f32 %v3033_v40  ;;  %v3667_v42 = vadd.f32 %v5394_v63, %v2006_v29  ;;  %v2008_v2 = vpop.f32.mrb[61].mxu0  ;;  %v3665_v54 = vadd.f32 %v5399_v16, %v2002_v28 }
 0x4c6   : >> { %v3882_v21 = vpop.eup %3881  ;;  %3901 = vtanh.f32 %v2408_v35  ;;  %v2346_v34 = vadd.f32 1.0, %v3880_v17  ;;  %v3669_v23 = vadd.f32 %v5399_v16, %v2008_v2  ;;  %v2485_v31 = vadd.f32 %v5628_v10, %v2453_v49 }
 0x4c7   : >> { %v3884_v8 = vpop.eup %3883  ;;  %3903 = vrcp.f32 %v2234_v5  ;;  %v2235_v56 = vadd.f32 1.0, %v3882_v21  ;;  %v3019_v33 = vmul.f32 -1.442695, %v3663_v53  ;;  %v3035_v49 = vmul.f32 -1.442695, %v3665_v54 }
 0x4c8   : >> { %v3886_v19 = vpop.eup %3885  ;;  %v2393_v12 = vmul.f32 %v3884_v8, %v2119_v26  ;;  %3905 = vrcp.f32 %v2346_v34  ;;  %v2012_v52 = vpop.f32.mrb[62].mxu0  ;;  %v2586_v39 = vpack.c.bf16 %v2485_v31, %v2484_v11  ;;  %v3020_v2 = vmul.f32 -1.442695, %v3667_v42 }
 0x4c9   : >> { %v3888_v4 = vpop.eup %3887  ;;  %3907 = vrcp.f32 %v2235_v56  ;;  %v5672_v40 = vadd.f32 %v5394_v63, %v2012_v52  ;;  %v2014_v10 = vpop.f32.mrb[63].mxu0  ;;  %v2454_v62 = vmul.f32 %v3886_v19, %v2438_v3  ;;  %v3036_v34 = vmul.f32 -1.442695, %v3669_v23 }
 0x4ca   : >> { %v3890_v46 = vpop.eup %3889  ;;  %v2409_v36 = vadd.f32 %v2393_v12, %v5609_v58  ;;  %v2347_v32 = vadd.f32 1.0, %v3888_v4  ;;  %3909 = vpow2.f32 %v3018_v20  ;;  %v3673_v26 = vadd.f32 %v5399_v16, %v2014_v10  ;;  %3452 = vmatprep.subr.bf16.mxu1 %v2586_v39 }
 0x4cb   : >> { %v3892_v7 = vpop.eup %3891  ;;  %v2236_v9 = vadd.f32 1.0, %v3890_v46  ;;  %3911 = vpow2.f32 %v3034_v30  ;;  %3453 = vmatpush3.bf16.msra.mxu1 %v2586_v39  ;;  %v2486_v28 = vadd.f32 %v5640_v14, %v2454_v62  ;;  %v2440_v16 = vsub.f32 1.0, %v5650_v60 }
 0x4cc   : >> { %v3894_v11 = vpop.eup %3893  ;;  %3913 = vtanh.f32 %v2409_v36  ;;  %v2473_v63 = vmul.f32 %v3892_v7, %v5192_v41  ;;  %v2124_v14 = vadd.f32 %v5356_v13, %v5392_v44  ;;  %v1753_v60 = vadd.f32 %v5313_v24, %v5330_v1 }
 0x4cd   : >> { %v3896_v3 = vpop.eup %3895  ;;  %3915 = vrcp.f32 %v2347_v32  ;;  %v2455_v25 = vmul.f32 %v3894_v11, %v2439_v38  ;;  %v1758_v19 = vadd.f32 %v5311_v57, %v5330_v1  ;;  %v2441_v39 = vsub.f32 1.0, %v3892_v7 }
 0x4ce   : >> { %v3898_v58 = vpop.eup %3897  ;;  %3917 = vrcp.f32 %v2236_v9  ;;  %v2348_v35 = vadd.f32 1.0, %v3896_v3  ;;  %v3021_v54 = vmul.f32 -1.442695, %v5672_v40  ;;  %v2134_v10 = vadd.f32 %v5362_v18, %v5392_v44 }
 0x4cf   : >> { %v3900_v20 = vpop.eup %3899  ;;  %v2237_v29 = vadd.f32 1.0, %v3898_v58  ;;  %3919 = vpow2.f32 %v3019_v33  ;;  %v2487_v17 = vadd.f32 %v5655_v15, %v2455_v25  ;;  %v2129_v15 = vadd.f32 %v5354_v22, %v5392_v44 }
 0x4d0   : >> { %v3902_v5 = vpop.eup %3901  ;;  %3921 = vrcp.f32 %v2348_v35  ;;  %v2349_v41 = vadd.f32 1.0, %v3900_v20  ;;  %v3037_v57 = vmul.f32 -1.442695, %v3673_v26  ;;  %v1763_v7 = vadd.f32 %v5320_v61, %v5330_v1 }
 0x4d1   : >> { %v3904_v21 = vpop.eup %3903  ;;  %3923 = vrcp.f32 %v2237_v29  ;;  %v2587_v31 = vpack.c.bf16 %v2487_v17, %v2486_v28  ;;  %v2456_v8 = vmul.f32 %v3902_v5, %v2440_v16  ;;  %v2139_v40 = vadd.f32 %v5360_v27, %v5392_v44 }
 0x4d2   : >> { %v5682_v56 = vpop.eup %3905  ;;  %v2394_v30 = vmul.f32 %v3904_v21, %v2124_v14  ;;  %3925 = vrcp.f32 %v2349_v41 }
 0x4d3   : >> { %v3908_v53 = vpop.eup %3907  ;;  %3927 = vpow2.f32 %v3035_v49  ;;  %3454 = vmatprep.subr.bf16.mxu1 %v2587_v31  ;;  %v2488_v13 = vadd.f32 %v5664_v55, %v2456_v8  ;;  %v5691_v42 = vmul.f32 %v5682_v56, %v5198_v45  ;;  %v2442_v17 = vsub.f32 1.0, %v5682_v56 }
 0x4d4   : >> { %v3910_v23 = vpop.eup %3909  ;;  %v2410_v12 = vadd.f32 %v2394_v30, %v1753_v60  ;;  %v2395_v24 = vmul.f32 %v3908_v53, %v2129_v15  ;;  %3929 = vpow2.f32 %v3020_v2  ;;  %3455 = vmatpush3.bf16.msra.mxu1 %v2587_v31  ;;  %v2149_v53 = vadd.f32 %v5376_v37, %v5392_v44 }
 0x4d5   : >> { %v3912_v22 = vpop.eup %3911  ;;  %v2238_v52 = vadd.f32 1.0, %v3910_v23  ;;  %3931 = vpow2.f32 %v3036_v34 }
 0x4d6   : >> { %v3914_v38 = vpop.eup %3913  ;;  %3933 = vtanh.f32 %v2410_v12  ;;  %v2411_v4 = vadd.f32 %v2395_v24, %v1758_v19  ;;  %v2350_v55 = vadd.f32 1.0, %v3912_v22  ;;  %v1778_v22 = vadd.f32 %v5326_v6, %v5330_v1 }
 0x4d7   : >> { %v3916_v45 = vpop.eup %3915  ;;  %3935 = vrcp.f32 %v2238_v52  ;;  %v2457_v62 = vmul.f32 %v3914_v38, %v2441_v39 }
 0x4d8   : >> { %v3918_v46 = vpop.eup %3917  ;;  %3937 = vtanh.f32 %v2411_v4  ;;  %v2475_v36 = vmul.f32 %v3916_v45, %v5202_v48  ;;  %v1768_v48 = vadd.f32 %v5318_v59, %v5330_v1  ;;  %v2144_v59 = vadd.f32 %v5381_v51, %v5392_v44 }
 0x4d9   : >> { %v3920_v32 = vpop.eup %3919  ;;  %v2396_v9 = vmul.f32 %v3918_v46, %v2134_v10  ;;  %3939 = vrcp.f32 %v2350_v55  ;;  %v2489_v33 = vadd.f32 %v2473_v63, %v2457_v62  ;;  %v2443_v41 = vsub.f32 1.0, %v3916_v45  ;;  %v5974_v45 = vld [vmem:[#allocation28_spill] sm:$0xff]  ;;  %v5976_v46 = vld [vmem:[#allocation26_spill] sm:$0xff] }
 0x4da   : >> { %v3922_v28 = vpop.eup %3921  ;;  %v2239_v11 = vadd.f32 1.0, %v3920_v32  ;;  %3941 = vpow2.f32 %v3021_v54  ;;  %v5975_v62 = vld [vmem:[#allocation32_spill] sm:$0xff]  ;;  %v5977_v32 = vld [vmem:[#allocation30_spill] sm:$0xff] }
 0x4db   : >> { %v3924_v18 = vpop.eup %3923  ;;  %v2412_v26 = vadd.f32 %v2396_v9, %v1763_v7  ;;  %3943 = vpow2.f32 %v3037_v57  ;;  %v2588_v3 = vpack.c.bf16 %v2489_v33, %v2488_v13  ;;  %v2476_v61 = vmul.f32 %v3922_v28, %v5196_v43 }
 0x4dc   : >> { %v3926_v25 = vpop.eup %3925  ;;  %v2397_v58 = vmul.f32 %v3924_v18, %v2139_v40  ;;  %3945 = vrcp.f32 %v2239_v11  ;;  %v2444_v12 = vsub.f32 1.0, %v3922_v28 }
 0x4dd   : >> { %v3928_v35 = vpop.eup %3927  ;;  %3947 = vtanh.f32 %v2412_v26  ;;  %3456 = vmatprep.subr.bf16.mxu1 %v2588_v3  ;;  %v2477_v63 = vmul.f32 %v3926_v25, %v5200_v47  ;;  %v1773_v47 = vadd.f32 %v5328_v0, %v5330_v1  ;;  %v2445_v38 = vsub.f32 1.0, %v3926_v25  ;;  %v5978_v26 = vld [vmem:[#allocation31_spill] sm:$0xff] }
 0x4de   : >> { %v3930_v27 = vpop.eup %3929  ;;  %v2413_v16 = vadd.f32 %v2397_v58, %v1768_v48  ;;  %v2351_v20 = vadd.f32 1.0, %v3928_v35  ;;  %3457 = vmatpush3.bf16.msra.mxu1 %v2588_v3  ;;  %v5979_v48 = vld [vmem:[#allocation27_spill] sm:$0xff] }
 0x4df   : >> { %v3932_v29 = vpop.eup %3931  ;;  %v2240_v49 = vadd.f32 1.0, %v3930_v27 }
 0x4e0   : >> { %v3934_v5 = vpop.eup %3933  ;;  %3949 = vtanh.f32 %v2413_v16  ;;  %v2352_v14 = vadd.f32 1.0, %v3932_v29 }
 0x4e1   : >> { %v3936_v43 = vpop.eup %3935  ;;  %3951 = vrcp.f32 %v2351_v20  ;;  %v2458_v2 = vmul.f32 %v3934_v5, %v2442_v17 }
 0x4e2   : >> { %v3938_v21 = vpop.eup %3937  ;;  %v2398_v34 = vmul.f32 %v3936_v43, %v2144_v59  ;;  %3953 = vrcp.f32 %v2240_v49 }
 0x4e3   : >> { %v3940_v31 = vpop.eup %3939  ;;  %3955 = vrcp.f32 %v2352_v14  ;;  %v2459_v8 = vmul.f32 %v3938_v21, %v2443_v41  ;;  %v2490_v56 = vadd.f32 %v5691_v42, %v2458_v2 }
 0x4e4   : >> { %v3942_v60 = vpop.eup %3941  ;;  %v2414_v15 = vadd.f32 %v2398_v34, %v1773_v47  ;;  %v2478_v51 = vmul.f32 %v3940_v31, %v5206_v50  ;;  %v2446_v33 = vsub.f32 1.0, %v3940_v31  ;;  %v5981_v47 = vmov 1.0|1.0  }
 0x4e5   : >> { %v3944_v30 = vpop.eup %3943  ;;  %v2241_v13 = vadd.f32 1.0, %v3942_v60  ;;  %v2491_v23 = vadd.f32 %v2475_v36, %v2459_v8 }
 0x4e6   : >> { %v3946_v19 = vpop.eup %3945  ;;  %3957 = vtanh.f32 %v2414_v15  ;;  %v2353_v0 = vadd.f32 1.0, %v3944_v30 }
 0x4e7   : >> { %v3948_v24 = vpop.eup %3947  ;;  %v2399_v52 = vmul.f32 %v3946_v19, %v2149_v53  ;;  %3959 = vrcp.f32 %v2241_v13  ;;  %v2589_v42 = vpack.c.bf16 %v2491_v23, %v2490_v56  ;;  %v5994_v53 = vld [vmem:[#allocation42_spill] sm:$0xff]  ;;  %v5996_v13 = vld [vmem:[#allocation41_spill] sm:$0xff]  ;;  %v3981_v56 = vld [vmem:[#allocation10 + $0x70] sm:$0xff] }
 0x4e8   : >> { %3961 = vrcp.f32 %v2353_v0  ;;  %v2460_v39 = vmul.f32 %v3948_v24, %v2444_v12  ;;  %vm5995_vm1 = vnez %v5994_v53  ;;  %vm5997_vm7 = vnez %v5996_v13  ;;  %v2740_v24 = vpop.permute.xlu0 %2739  ;;  %v3983_v13 = vld [vmem:[#allocation10 + $0x78] sm:$0xff]  ;;  %v3984_v0 = vld [vmem:[#allocation10 + $0x68] sm:$0xff] }
 0x4e9   : >> { %v2415_v50 = vadd.f32 %v2399_v52, %v1778_v22  ;;  %3458 = vmatprep.subr.bf16.mxu1 %v2589_v42  ;;  %vm5998_vm6 = vmpackc.low %vm5995_vm1, %vm5997_vm7  ;;  %v2743_v22 = vpop.permute.xlu1 %2742  ;;  %vm2786_vm3 = vcmp.eq.s32.totalorder %v2740_v24, 1 }
 0x4ea   : >> { %v3950_v4 = vpop.eup %3949  ;;  %3459 = vmatpush3.bf16.msra.mxu1 %v2589_v42  ;;  %v2492_v37 = vadd.f32 %v2476_v61, %v2460_v39  ;;  %v5980_v61 = vld [vmem:[#allocation29_spill] sm:$0xff]  ;;  %vm2787_vm8 = vcmp.eq.s32.totalorder %v2743_v22, 1 }
 0x4eb   : >> { %v3952_v44 = vpop.eup %3951  ;;  %3963 = vtanh.f32 %v2415_v50  ;;  %v2461_v55 = vmul.f32 %v3950_v4, %v2445_v38 }
 0x4ec   : >> { %v3954_v54 = vpop.eup %3953  ;;  %v2479_v10 = vmul.f32 %v3952_v44, %v5974_v45  ;;  %v2746_v52 = vpop.permute.xlu0 %2745  ;;  %v3970_v45 = vld [vmem:[#allocation10] sm:$0xff] }
 0x4ed   : >> { %v3956_v57 = vpop.eup %3955  ;;  %v2400_v6 = vmul.f32 %v3954_v54, %v5975_v62  ;;  %v2493_v1 = vadd.f32 %v2477_v63, %v2461_v55  ;;  %v2447_v63 = vsub.f32 1.0, %v3952_v44  ;;  %v2749_v42 = vpop.permute.xlu1 %2748  ;;  %vm2788_vm2 = vcmp.eq.s32.totalorder %v2746_v52, 1  ;;  %v3969_v44 = vld [vmem:[#allocation10 + $0x10] sm:$0xff] }
 0x4ee   : >> { %v2480_v36 = vmul.f32 %v3956_v57, %v5976_v46  ;;  %v2448_v49 = vsub.f32 1.0, %v3956_v57  ;;  %vm2789_vm5 = vcmp.eq.s32.totalorder %v2749_v42, 1 }
 0x4ef   : >> { %v2416_v7 = vadd.f32 %v2400_v6, %v5977_v32  ;;  %v2590_v9 = vpack.c.bf16 %v2493_v1, %v2492_v37  ;;  %v3971_v6 = vld [vmem:[#allocation10 + $0x18] sm:$0xff] }
 0x4f0   : >> { %v3958_v28 = vpop.eup %3957  ;;  %v2752_v39 = vpop.permute.xlu0 %2751 }
 0x4f1   : >> { %v3960_v40 = vpop.eup %3959  ;;  %3965 = vtanh.f32 %v2416_v7  ;;  %3460 = vmatprep.subr.bf16.mxu1 %v2590_v9  ;;  %v2462_v11 = vmul.f32 %v3958_v28, %v2446_v33  ;;  %v2755_v50 = vpop.permute.xlu1 %2754  ;;  %vm2790_vm15 = vcmp.eq.s32.totalorder %v2752_v39, 1  ;;  %v3973_v28 = vld [vmem:[#allocation10 + $0x30] sm:$0xff] }
 0x4f2   : >> { %v3962_v18 = vpop.eup %3961  ;;  %v2401_v3 = vmul.f32 %v3960_v40, %v5978_v26  ;;  %3461 = vmatpush3.bf16.msra.mxu1 %v2590_v9  ;;  %vm2791_vm9 = vcmp.eq.s32.totalorder %v2755_v50, 1 }
 0x4f3   : >> { %v2494_v25 = vadd.f32 %v2478_v51, %v2462_v11  ;;  %v2481_v58 = vmul.f32 %v3962_v18, %v5979_v48  ;;  %v2449_v14 = vsub.f32 1.0, %v3962_v18  ;;  %v3974_v18 = vld [vmem:[#allocation10 + $0x20] sm:$0xff]  ;;  %v3975_v48 = vld [vmem:[#allocation10 + $0x38] sm:$0xff] }
 0x4f4   : >> { %v2417_v35 = vadd.f32 %v2401_v3, %v5980_v61  ;;  %v2758_v38 = vpop.permute.xlu0 %2757  ;;  %v3982_v51 = vld [vmem:[#allocation10 + $0x60] sm:$0xff] }
 0x4f5   : >> { %v3964_v27 = vpop.eup %3963  ;;  %v2761_v4 = vpop.permute.xlu1 %2760  ;;  %vm2792_vm14 = vcmp.eq.s32.totalorder %v2758_v38, 1 }
 0x4f6   : >> { %3967 = vtanh.f32 %v2417_v35  ;;  %v2463_v16 = vmul.f32 %v3964_v27, %v2447_v63  ;;  %v3976_v35 = vld [vmem:[#allocation10 + $0x28] sm:$0xff] }
 0x4f8   : >> { %v2495_v20 = vadd.f32 %v2479_v10, %v2463_v16  ;;  %v2764_v62 = vpop.permute.xlu0 %2763 }
 0x4f9   : >> { %v2767_v7 = vpop.permute.xlu1 %2766 }
 0x4fa   : >> { %v2591_v29 = vpack.c.bf16 %v2495_v20, %v2494_v25 }
 0x4fb   : >> { %v3966_v17 = vpop.eup %3965 }
 0x4fc   : >> { %3462 = vmatprep.subr.bf16.mxu1 %v2591_v29  ;;  %v2464_v5 = vmul.f32 %v3966_v17, %v2448_v49  ;;  %v2770_v33 = vpop.permute.xlu0 %2769 }
 0x4fd   : >> { %3463 = vmatpush3.bf16.msra.mxu1 %v2591_v29  ;;  %v2773_v25 = vpop.permute.xlu1 %2772  ;;  %v3977_v29 = vld [vmem:[#allocation10 + $0x50] sm:$0xff] }
 0x4fe   : >> { %v2496_v59 = vadd.f32 %v2480_v36, %v2464_v5  ;;  %v3972_v36 = vld [vmem:[#allocation10 + $0x8] sm:$0xff]  ;;  %v3978_v5 = vld [vmem:[#allocation10 + $0x40] sm:$0xff] }
 0x500   : >> { %v3968_v43 = vpop.eup %3967  ;;  %v2776_v27 = vpop.permute.xlu0 %2775 }
 0x501   : >> { %v2465_v41 = vmul.f32 %v3968_v43, %v2449_v14  ;;  %v2779_v20 = vpop.permute.xlu1 %2778  ;;  %v3979_v43 = vld [vmem:[#allocation10 + $0x58] sm:$0xff]  ;;  %vm2798_vm7 = vcmp.eq.s32.totalorder %v2776_v27, 1 }
 0x503   : >> { %v2497_v2 = vadd.f32 %v2481_v58, %v2465_v41 }
 0x504   : >> { %v2782_v34 = vpop.permute.xlu0 %2781 }
 0x505   : >> { %v2592_v21 = vpack.c.bf16 %v2497_v2, %v2496_v59  ;;  %v2785_v31 = vpop.permute.xlu1 %2784  ;;  %vm2800_vm1 = vcmp.eq.s32.totalorder %v2782_v34, 1 }
 0x507   : >> { %3464 = vmatprep.subr.bf16.mxu1 %v2592_v21 }
 0x508   : >> { %3465 = vmatpush3.bf16.msra.mxu1 %v2592_v21  ;;  %v3980_v21 = vld [vmem:[#allocation10 + $0x48] sm:$0xff] }
 0x50b   : >> { %3467 = vmatmul.mubr.msk.bf16.vlgmr.msra.gmra.mrb[64].mxu1 %vm5984_vm12, %v5981_v47  ;;  %vm2794_vm12 = vcmp.eq.s32.totalorder %v2764_v62, 1 }
 0x50c   : >> { %3470 = vmatprep.mubr.msk.bf16.mxu1 %vm5987_vm11, %v5981_v47  ;;  %vm2797_vm11 = vcmp.eq.s32.totalorder %v2773_v25, 1 }
 0x513   : >> { %3471 = vmatmul.mubr.msk.bf16.gmra.mrb[68].mxu1 %vm5990_vm10, %v5981_v47  ;;  %vm2796_vm10 = vcmp.eq.s32.totalorder %v2770_v33, 1 }
 0x514   : >> { %3474 = vmatprep.mubr.msk.bf16.mxu1 %vm5993_vm0, %v5981_v47  ;;  %vm2795_vm0 = vcmp.eq.s32.totalorder %v2767_v7, 1 }
 0x51b   : >> { %3475 = vmatmul.mubr.msk.bf16.gmra.mrb[72].mxu1 %vm5998_vm6, %v5981_v47  ;;  %vm2801_vm6 = vcmp.eq.s32.totalorder %v2785_v31, 1 }
 0x51c   : >> { %3478 = vmatprep.mubr.msk.bf16.mxu1 %vm3050_vm4, %v5981_v47  ;;  %vm2793_vm4 = vcmp.eq.s32.totalorder %v2761_v4, 1 }
 0x523   : >> { %3479 = vmatmul.mubr.msk.bf16.gmra.mrb[76].mxu1 %vm6003_vm13, %v5981_v47  ;;  %vm2799_vm13 = vcmp.eq.s32.totalorder %v2779_v20, 1 }
 0x5de   : >> { %v3468_v37 = vpop.f32.mrb[64].mxu1 }
 0x5df   : >> { %v2804_v55 = vsel %vm2788_vm2, %v3468_v37, %v3969_v44  ;;  %v2627_v54 = vpop.f32.mrb[65].mxu1 }
 0x5e0   : >> { %2820 = vst [vmem:[#allocation10 + $0x10] sm:$0xff] %v2804_v55  ;;  %v2802_v10 = vsel %vm2786_vm3, %v2627_v54, %v3970_v45  ;;  %v3469_v57 = vpop.f32.mrb[66].mxu1 }
 0x5e1   : >> { %2818 = vst [vmem:[#allocation10] sm:$0xff] %v2802_v10  ;;  %v2805_v1 = vsel %vm2789_vm5, %v3469_v57, %v3971_v6  ;;  %v2630_v46 = vpop.f32.mrb[67].mxu1 }
 0x5e2   : >> { %2821 = vst [vmem:[#allocation10 + $0x18] sm:$0xff] %v2805_v1  ;;  %v2803_v32 = vsel %vm2787_vm8, %v2630_v46, %v3972_v36 }
 0x5e3   : >> { %2819 = vst [vmem:[#allocation10 + $0x8] sm:$0xff] %v2803_v32 }
 0x5e6   : >> { %v3472_v9 = vpop.f32.mrb[68].mxu1 }
 0x5e7   : >> { %v2808_v40 = vsel %vm2792_vm14, %v3472_v9, %v3973_v28  ;;  %v2643_v11 = vpop.f32.mrb[69].mxu1 }
 0x5e8   : >> { %2824 = vst [vmem:[#allocation10 + $0x30] sm:$0xff] %v2808_v40  ;;  %v2806_v26 = vsel %vm2790_vm15, %v2643_v11, %v3974_v18  ;;  %v3473_v3 = vpop.f32.mrb[70].mxu1 }
 0x5e9   : >> { %2822 = vst [vmem:[#allocation10 + $0x20] sm:$0xff] %v2806_v26  ;;  %v2809_v58 = vsel %vm2793_vm4, %v3473_v3, %v3975_v48  ;;  %v2646_v61 = vpop.f32.mrb[71].mxu1 }
 0x5ea   : >> { %2825 = vst [vmem:[#allocation10 + $0x38] sm:$0xff] %v2809_v58  ;;  %v2807_v63 = vsel %vm2791_vm9, %v2646_v61, %v3976_v35 }
 0x5eb   : >> { %2823 = vst [vmem:[#allocation10 + $0x28] sm:$0xff] %v2807_v63 }
 0x5ee   : >> { %v3476_v16 = vpop.f32.mrb[72].mxu1 }
 0x5ef   : >> { %v2812_v49 = vsel %vm2796_vm10, %v3476_v16, %v3977_v29  ;;  %v2659_v17 = vpop.f32.mrb[73].mxu1 }
 0x5f0   : >> { %2828 = vst [vmem:[#allocation10 + $0x50] sm:$0xff] %v2812_v49  ;;  %v2810_v59 = vsel %vm2794_vm12, %v2659_v17, %v3978_v5  ;;  %v3477_v14 = vpop.f32.mrb[74].mxu1 }
 0x5f1   : >> { %2826 = vst [vmem:[#allocation10 + $0x40] sm:$0xff] %v2810_v59  ;;  %v2813_v41 = vsel %vm2797_vm11, %v3477_v14, %v3979_v43  ;;  %v2662_v2 = vpop.f32.mrb[75].mxu1 }
 0x5f2   : >> { %2829 = vst [vmem:[#allocation10 + $0x58] sm:$0xff] %v2813_v41  ;;  %v2811_v47 = vsel %vm2795_vm0, %v2662_v2, %v3980_v21 }
 0x5f3   : >> { %2827 = vst [vmem:[#allocation10 + $0x48] sm:$0xff] %v2811_v47 }
 0x5f5   : > { %508 = sbr.rel (!%p6005_p5) target bundleno = 157 (0x9d), region = 145 }
 0x5f6   : >> { %v3480_v8 = vpop.f32.mrb[76].mxu1 }
 0x5f7   : >> { %v2816_v60 = vsel %vm2800_vm1, %v3480_v8, %v3981_v56  ;;  %v2675_v15 = vpop.f32.mrb[77].mxu1 }
 0x5f8   : >> { %2832 = vst [vmem:[#allocation10 + $0x70] sm:$0xff] %v2816_v60  ;;  %v2814_v30 = vsel %vm2798_vm7, %v2675_v15, %v3982_v51  ;;  %v3481_v53 = vpop.f32.mrb[78].mxu1 }
 0x5f9   : >> { %2830 = vst [vmem:[#allocation10 + $0x60] sm:$0xff] %v2814_v30  ;;  %v2817_v23 = vsel %vm2801_vm6, %v3481_v53, %v3983_v13  ;;  %v2678_v19 = vpop.f32.mrb[79].mxu1 }
 0x5fa   : >> { %2833 = vst [vmem:[#allocation10 + $0x78] sm:$0xff] %v2817_v23  ;;  %v2815_v12 = vsel %vm2799_vm13, %v2678_v19, %v3984_v0 }
 0x5fb   : >> { %2831 = vst [vmem:[#allocation10 + $0x68] sm:$0xff] %v2815_v12 }
 0x5fc   : > { %4160 = shalt.err (!%p4157_p1)
}
 0x5fd   : > { %s6011_s30 = sld [smem:[#allocation54_spill]] }
 0x603   : > { %s4161_s18 = scalar_lea.hbm %s6011_s30, 2048 }
 0x604   : > { %p4162_p4 = scmp.ne.s32.totalorder %s6011_s30, %s4161_s18  ;;  %p4167_p3 = scmp.lt.u32.totalorder %s4161_s18, %s6011_s30 }
 0x606   : > { %p4163_p9 = pnand %p4162_p4, %p5774_p13 }
 0x608   : > { %p4164_p2 = pneg %p4163_p9 }
 0x60a   : > { %p4169_p11 = pnand %p4167_p3, %p4164_p2 }
 0x60c   : > { %4172 = shalt.err (!%p4169_p11)
}
 0x60d   : > { %s4235_s24 = smov 128   ;;  %s4236_s14 = smov 8  }
 0x60e   : > { %3723 = dma.vmem_to_hbm [thread:$0]  (%p5774_p13), %s4447_s19, 2048, %s6011_s30, [#allocation6], %s4235_s24, %s4235_s24, %s4236_s14  }
 0x60f   : > { %4204 = dma.done.wait (%p5774_p13), [#allocation6], 2048  }
 0x610   : > { %4206 = vsyncadd (%p5774_p13), [#allocation6], 4294965248 }
 0x611 PF: > { %s6012_s0 = sld [smem:[#allocation25_spill]]  ;;  %s6013_s18 = sld [smem:[#allocation24_spill]] }
 0x612   : > { %s6014_s19 = smov %s6016_s27 }
 0x617   : > { %s28_s20 = sadd.s32 1, %s6012_s0  }
 0x618   : > { %p25_p12 = scmp.ge.s32.totalorder %s28_s20, 4  }
 0x61a   :  { %27 = sbr.rel (!%p25_p12) target bundleno = 13 (0xd), region = 156 }
 0x621   :  { %2856 = vsyncpa [#allocation5], 1 }
 0x622   :  { %2858 = vsyncpa [#allocation5 + $0x1], 1 }
 0x623   :  { %2859 = vsyncpa [#allocation8], 1 }
 0x624   :  { %2860 = vsyncpa [#allocation6], 1 }
 0x625   :  { %2862 = vsyncpa [#allocation6 + $0x1], 1 }
 0x626   :  { %2863 = vsyncmov [#allocation3] }
 0x629   :  { %s2864_s21 = vpop.sfrf %2863 }
 0x62a   :  { %p3058_p0 = scmp.ne.s32.totalorder %s2864_s21, 0 }
 0x62c   :  { %2868 = shalt.err (%p3058_p0)  }
 0x62d   :  { %2870 = vsyncmov [#allocation3 + $0x1] }
 0x630   :  { %s2871_s4 = vpop.sfrf %2870 }
 0x631   :  { %p3059_p5 = scmp.ne.s32.totalorder %s2871_s4, 0 }
 0x633   :  { %2875 = shalt.err (%p3059_p5)  }
 0x634   :  { %2877 = vsyncmov [#allocation3 + $0x2] }
 0x637   :  { %s2878_s5 = vpop.sfrf %2877 }
 0x638   :  { %p3060_p13 = scmp.ne.s32.totalorder %s2878_s5, 0 }
 0x63a   :  { %2882 = shalt.err (%p3060_p13)  }

</bundles_post_ra>
